<compile_context>
chip_gen: v7x
topology: tpu7x:2x2x1
jax: 0.10.0
libtpu: 0.0.40
codegen_flags: <defaults>
</compile_context>

<pallas_src>
import functools

import jax
import jax.numpy as jnp
from jax.experimental import pallas as pl
from jax.experimental.pallas import tpu as pltpu


def _round_up(x, m):
    return (x + m - 1) // m * m


# --------------------- fused camera-encoder kernel -------------------------

def _cam_encode_kernel(a_ref, wt_ref, bt_ref, wd_ref, bd_ref, o_ref, *, D, Cp):
    # trunk: patch-embed matmul (bf16 MXU, f32 acc) + SiLU (Gencov activation)
    feat512 = jnp.dot(a_ref[...], wt_ref[...],
                      preferred_element_type=jnp.float32) + bt_ref[...]
    feat512 = feat512 * jax.nn.sigmoid(feat512)
    # depthnet 1x1 conv as matmul.  Columns packed [features (Cp, zero-padded past
    # camC) | depth logits (D) | pad] so both slices start on 128-lane boundaries.
    logits = jnp.dot(feat512.astype(jnp.bfloat16), wd_ref[...],
                     preferred_element_type=jnp.float32) + bd_ref[...]
    feat = logits[:, :Cp]                      # (tm, Cp) f32, cols >= camC are zero
    dl = logits[:, Cp:Cp + D]                  # (tm, D)  f32, starts at lane Cp
    m = jnp.max(dl, axis=-1, keepdims=True)
    e = jnp.exp(dl - m)
    dist = e / jnp.sum(e, axis=-1, keepdims=True)   # exact softmax (parity w/ torch)
    # outer product out[:, d*Cp + c] = dist[:, d] * feat[:, c]: build the full slab
    # from vreg-aligned 128-wide pieces and do ONE unmasked lane-dense store.
    parts = [dist[:, d:d + 1] * feat for d in range(D)]      # static unroll, D small
    o_ref[...] = jnp.concatenate(parts, axis=-1).astype(o_ref.dtype)


def cam_encode_fused(patches, w_trunk, b_trunk, w_depth_p, b_depth_p,
                     *, D, Cp, tm=256):
    """(P, K) patches -> (P, D*Cp) bf16 depth-weighted features (lane-dense slab).

    tm defaults to 256 to fill the 256-wide v6e/v7x MXU (128 already fills v5e's);
    it is clamped so tiny inputs are not over-padded.  P is zero-padded up to a
    tile multiple and sliced back afterwards.
    """
    P, K = patches.shape
    tm = max(128, min(tm, _round_up(P, 128)))
    Pp = _round_up(P, tm)
    if Pp != P:
        patches = jnp.pad(patches, ((0, Pp - P), (0, 0)))
    NH = w_trunk.shape[1]
    NDP = w_depth_p.shape[1]
    out = pl.pallas_call(
        functools.partial(_cam_encode_kernel, D=D, Cp=Cp),
        out_shape=jax.ShapeDtypeStruct((Pp, D * Cp), jnp.bfloat16),
        grid_spec=pltpu.PrefetchScalarGridSpec(
            num_scalar_prefetch=0,
            grid=(Pp // tm,),
            in_specs=[
                pl.BlockSpec((tm, K), lambda i: (i, 0)),
                pl.BlockSpec((K, NH), lambda i: (0, 0)),     # weights resident
                pl.BlockSpec((1, NH), lambda i: (0, 0)),
                pl.BlockSpec((NH, NDP), lambda i: (0, 0)),
                pl.BlockSpec((1, NDP), lambda i: (0, 0)),
            ],
            out_specs=pl.BlockSpec((tm, D * Cp), lambda i: (i, 0)),
        ),
        compiler_params=pltpu.CompilerParams(
            dimension_semantics=("parallel",),
            vmem_limit_bytes=32 * 1024 * 1024),   # safe on v7x's 64 MiB VMEM too
    )(patches.astype(jnp.bfloat16), w_trunk, b_trunk, w_depth_p, b_depth_p)
    return out[:P]


# ------------- fused voxel pooling + z-max + 1x1 BEV conv kernel -----------

def _pool_zmax_bev_kernel(idx_ref, x_ref, w_ref, b_ref, o_ref, acc_ref,
                          *, nz, Mp, tm):
    k = pl.program_id(1)

    @pl.when(k == 0)
    def _init():
        acc_ref[...] = jnp.zeros_like(acc_ref)

    x = x_ref[...]                                            # (tk, Cp) bf16
    idx = idx_ref[...]                                        # (1, tk) int32
    # Single fused one-hot over all z slices: stacked row r in [0, nz*tm) targets
    # bin (r // tm) * Mp + pid*tm + (r % tm).  One compare + one MXU matmul per chunk.
    r = jax.lax.broadcasted_iota(jnp.int32, (nz * tm, 1), 0)
    z = r // tm
    target = z * Mp + (pl.program_id(0) * tm) + (r - z * tm)  # (nz*tm, 1)
    onehot = jnp.where(idx == target,
                       jnp.ones((), jnp.bfloat16),
                       jnp.zeros((), jnp.bfloat16))           # (nz*tm, tk)
    acc_ref[...] += jnp.dot(onehot, x, preferred_element_type=jnp.float32)

    @pl.when(k == pl.num_programs(1) - 1)
    def _finish():
        pooled = acc_ref[0:tm, :]                             # max over z slices
        for zz in range(1, nz):                               # static unroll, nz small
            pooled = jnp.maximum(pooled, acc_ref[zz * tm:(zz + 1) * tm, :])
        o_ref[...] = (jnp.dot(pooled.astype(jnp.bfloat16), w_ref[...],
                              preferred_element_type=jnp.float32)
                      + b_ref[...])


def pool_zmax_bev(flat_idx, feats2d, w_bev_p, b_bev_p, *, nz, Mp, tm=128, tk=512):
    """flat_idx: (Nprime,) int32 bin id (z*Mp + bev_row) or -1 if dropped.
    feats2d: (Nprime, Cp) bf16, Cp a multiple of 128.  Returns (Mp, NBP) BEV rows."""
    # TODO(synk): for production-scale grids, sort points by BEV bin and use scalar
    # prefetch so each row tile only streams its own point range (O(Nprime) work).
    Nprime, Cp = feats2d.shape
    NBP = w_bev_p.shape[1]
    tk = max(128, min(tk, _round_up(Nprime, 128)))
    Np = _round_up(Nprime, tk)
    if Np != Nprime:
        feats2d = jnp.pad(feats2d, ((0, Np - Nprime), (0, 0)))
        flat_idx = jnp.pad(flat_idx, (0, Np - Nprime), constant_values=-1)
    idx2d = flat_idx.reshape(1, Np).astype(jnp.int32)
    return pl.pallas_call(
        functools.partial(_pool_zmax_bev_kernel, nz=nz, Mp=Mp, tm=tm),
        out_shape=jax.ShapeDtypeStruct((Mp, NBP), jnp.float32),
        grid_spec=pltpu.PrefetchScalarGridSpec(
            num_scalar_prefetch=0,
            grid=(Mp // tm, Np // tk),                        # reduction axis last
            in_specs=[
                pl.BlockSpec((1, tk), lambda i, k: (0, k)),
                pl.BlockSpec((tk, Cp), lambda i, k: (k, 0)),
                pl.BlockSpec((Cp, NBP), lambda i, k: (0, 0)),
                pl.BlockSpec((1, NBP), lambda i, k: (0, 0)),
            ],
            out_specs=pl.BlockSpec((tm, NBP), lambda i, k: (i, 0)),
            scratch_shapes=[pltpu.VMEM((nz * tm, Cp), jnp.float32)],
        ),
        compiler_params=pltpu.CompilerParams(
            dimension_semantics=("parallel", "arbitrary"),
            vmem_limit_bytes=32 * 1024 * 1024),
    )(idx2d, feats2d.astype(jnp.bfloat16), w_bev_p, b_bev_p)


# ------------------------------- JAX glue ----------------------------------

def gen_dx_bx(xbound, ybound, zbound):
    rows = (xbound, ybound, zbound)
    dx = jnp.array([r[2] for r in rows], jnp.float32)
    bx = jnp.array([r[0] + r[2] / 2.0 for r in rows], jnp.float32)
    nx = jnp.array([int((r[1] - r[0]) / r[2]) for r in rows], jnp.int32)
    return dx, bx, nx


def create_frustum(dbound, final_dim, downsample):
    ogfH, ogfW = final_dim
    fH, fW = ogfH // downsample, ogfW // downsample
    d = jnp.arange(dbound[0], dbound[1], dbound[2], dtype=jnp.float32)
    D = d.shape[0]
    d_coords = jnp.broadcast_to(d[:, None, None], (D, fH, fW))
    x_coords = jnp.broadcast_to(
        jnp.linspace(0.0, ogfW - 1, fW, dtype=jnp.float32)[None, None, :], (D, fH, fW))
    y_coords = jnp.broadcast_to(
        jnp.linspace(0.0, ogfH - 1, fH, dtype=jnp.float32)[None, :, None], (D, fH, fW))
    ones = jnp.ones_like(d_coords)
    return jnp.stack([x_coords, y_coords, d_coords, ones], axis=-1)  # (D, fH, fW, 4)


def get_geometry(frustum, rots, trans, intrins, post_rots, post_trans):
    B, N = intrins.shape[:2]
    D, H, W, _ = frustum.shape
    eye = jnp.broadcast_to(jnp.eye(4, dtype=jnp.float32), (B, N, 4, 4))
    s2e = eye.at[:, :, :3, :3].set(rots).at[:, :, :3, 3].set(trans)
    intr = eye.at[:, :, :3, :3].set(intrins)
    ida = eye.at[:, :, :3, :3].set(post_rots).at[:, :, :3, 3].set(post_trans)

    pts = jnp.broadcast_to(frustum[None, None], (B, N, D, H, W, 4))
    pts = jnp.einsum('bnij,bndhwj->bndhwi', jnp.linalg.inv(ida), pts)
    pts = jnp.concatenate([pts[..., :2] * pts[..., 2:3], pts[..., 2:]], axis=-1)
    combine = jnp.matmul(s2e, jnp.linalg.inv(intr))
    pts = jnp.einsum('bnij,bndhwj->bndhwi', combine, pts)
    return pts[..., :3]  # (B, N, D, H, W, 3)


def cam_encode(imgs_bn, params, D, Cp, downsample):
    """imgs_bn: (B*N, 3, imH, imW) -> (B*N*fH*fW, D*Cp) bf16 slab, rows in (b,n,h,w)."""
    BN, Cin, imH, imW = imgs_bn.shape
    fH, fW = imH // downsample, imW // downsample
    # non-overlapping 16x16 patch embedding (im2col + matmul) as the camera trunk
    p = imgs_bn.reshape(BN, Cin, fH, downsample, fW, downsample)
    p = p.transpose(0, 2, 4, 1, 3, 5).reshape(BN * fH * fW, Cin * downsample * downsample)
    # TODO(synk): RepViTBlock / C2f / SPPELAN / PSA / C2fCIB are not defined in the
    # reference source; the CamEncoder trunk is stood in by one patch-embed matmul+SiLU.
    return cam_encode_fused(p, params['w_trunk'], params['b_trunk'],
                            params['w_depth_p'], params['b_depth_p'],
                            D=D, Cp=Cp)                        # (P, D*Cp) bf16


def voxel_pooling(geom, feats2d, dx, bx, nx, w_bev_p, b_bev_p, *, B, tm=128, tk=512):
    """geom: (B,N,D,H,W,3); feats2d: (Nprime, Cp) with rows ordered (b,n,h,w,d).
    Returns (B*nx0*nx1, NBP), rows in (b, x, y) row-major order."""
    nx0, nx1, nx2 = nx
    Nprime = feats2d.shape[0]
    # Match the (b,n,h,w,d) point ordering of the cam slab (transpose only the small
    # geometry tensor instead of relaying out the big feature tensor).
    geom = jnp.transpose(geom, (0, 1, 3, 4, 2, 5))             # (B,N,H,W,D,3)
    gidx = ((geom - (bx - dx / 2.0)) / dx).astype(jnp.int32).reshape(Nprime, 3)
    batch_ix = jnp.repeat(jnp.arange(B, dtype=jnp.int32), Nprime // B)
    kept = ((gidx[:, 0] >= 0) & (gidx[:, 0] < nx0) &
            (gidx[:, 1] >= 0) & (gidx[:, 1] < nx1) &
            (gidx[:, 2] >= 0) & (gidx[:, 2] < nx2))
    M = B * nx0 * nx1
    Mp = _round_up(M, tm)
    m_idx = (batch_ix * nx0 + gidx[:, 0]) * nx1 + gidx[:, 1]   # (b, x, y) row-major
    flat = jnp.where(kept, gidx[:, 2] * Mp + m_idx, -1)        # dropped points never match
    bev = pool_zmax_bev(flat, feats2d, w_bev_p, b_bev_p, nz=int(nx2), Mp=Mp, tm=tm, tk=tk)
    return bev[:M]


class RepBEVVitPallas:
    def __init__(self, grid_conf, data_aug_conf, outC, key):
        self.grid_conf = grid_conf
        self.data_aug_conf = data_aug_conf
        self.downsample = 16
        self.camC = 64
        self.Cp = _round_up(self.camC, 128)        # lane-padded channel width
        self.outC = outC
        dx, bx, nx = gen_dx_bx(grid_conf['xbound'], grid_conf['ybound'], grid_conf['zbound'])
        self.dx, self.bx = dx, bx
        self.nx = tuple(int(v) for v in nx)
        self.frustum = create_frustum(grid_conf['dbound'],
                                      data_aug_conf['final_dim'], self.downsample)
        self.D = self.frustum.shape[0]

        k1, k2, k3, k4 = jax.random.split(key, 4)
        kpatch = 3 * self.downsample * self.downsample
        D, camC, Cp = self.D, self.camC, self.Cp
        NDP = Cp + _round_up(D, 128)       # [features(Cp) | depth logits | pad]
        NBP = _round_up(outC, 128)         # padded BEV conv width (lane-dense)

        w_trunk = 0.02 * jax.random.normal(k1, (kpatch, 512), jnp.float32)
        b_trunk = jnp.zeros((512,), jnp.float32)
        w_depth = 0.02 * jax.random.normal(k2, (512, D + camC), jnp.float32)
        b_depth = 0.02 * jax.random.normal(k3, (D + camC,), jnp.float32)
        w_bev = 0.02 * jax.random.normal(k4, (camC, outC), jnp.float32)
        b_bev = jnp.zeros((outC,), jnp.float32)

        # pack depthnet into vreg-aligned columns: features at 0..camC-1 (zero-padded
        # to Cp), depth logits starting at lane Cp (vreg boundary), zero pad after.
        w_depth_p = (jnp.zeros((512, NDP), jnp.float32)
                     .at[:, :camC].set(w_depth[:, D:])
                     .at[:, Cp:Cp + D].set(w_depth[:, :D]))
        b_depth_p = (jnp.zeros((NDP,), jnp.float32)
                     .at[:camC].set(b_depth[D:])
                     .at[Cp:Cp + D].set(b_depth[:D]))
        w_bev_p = jnp.zeros((Cp, NBP), jnp.float32).at[:camC, :outC].set(w_bev)
        b_bev_p = jnp.zeros((NBP,), jnp.float32).at[:outC].set(b_bev)

        self.params = {
            'w_trunk': w_trunk.astype(jnp.bfloat16),      # bf16 MXU weights
            'b_trunk': b_trunk.reshape(1, -1),            # biases stay f32
            'w_depth_p': w_depth_p.astype(jnp.bfloat16),
            'b_depth_p': b_depth_p.reshape(1, -1),
            'w_bev_p': w_bev_p.astype(jnp.bfloat16),
            'b_bev_p': b_bev_p.reshape(1, -1),
        }

    def __call__(self, x, rots, trans, intrins, post_rots, post_trans):
        geom = get_geometry(self.frustum, rots, trans, intrins, post_rots, post_trans)
        B, N, Cin, imH, imW = x.shape
        slab = cam_encode(x.reshape(B * N, Cin, imH, imW), self.params,
                          self.D, self.Cp, self.downsample)       # (P, D*Cp) bf16
        # rows ordered (b,n,h,w); columns d-major -> pure reshape, no relayout
        feats2d = slab.reshape(slab.shape[0] * self.D, self.Cp)   # (Nprime, Cp)
        # TODO(synk): BevEncoder's RepViT/C2f/SPPF/PSA stack is not defined in the
        # reference; stood in by a single 1x1 conv (camC -> outC) fused into the
        # voxel-pooling kernel epilogue (preserves spatial size, net stride 1).
        bev = voxel_pooling(geom, feats2d, self.dx, self.bx, self.nx,
                            self.params['w_bev_p'], self.params['b_bev_p'], B=B)
        out2d = bev[:, :self.outC]                                # drop lane padding
        out = out2d.reshape(B, self.nx[0], self.nx[1], self.outC).transpose(0, 3, 1, 2)
        return out  # (B, outC, nx0, nx1), NCHW


if __name__ == "__main__":
    grid_conf = {
        'xbound': [-20.0, 20.0, 2.5],   # nx0 = 16
        'ybound': [-20.0, 20.0, 2.5],   # nx1 = 16
        'zbound': [-8.0, 8.0, 8.0],     # nz  = 2
        'dbound': [4.0, 20.0, 4.0],     # D   = 4
    }
    data_aug_conf = {'final_dim': (32, 32)}
    outC = 16
    B, Ncam = 1, 2
    imH, imW = data_aug_conf['final_dim']

    key = jax.random.PRNGKey(0)
    k_img, k_par = jax.random.split(key)
    model = RepBEVVitPallas(grid_conf, data_aug_conf, outC, k_par)

    imgs = jax.random.normal(k_img, (B, Ncam, 3, imH, imW), jnp.float32)
    R_cam2ego = jnp.array([[0., 0., 1.], [-1., 0., 0.], [0., -1., 0.]], jnp.float32)
    rots = jnp.broadcast_to(R_cam2ego, (B, Ncam, 3, 3))
    trans = jnp.zeros((B, Ncam, 3), jnp.float32)
    K = jnp.array([[16., 0., 16.], [0., 16., 16.], [0., 0., 1.]], jnp.float32)
    intrins = jnp.broadcast_to(K, (B, Ncam, 3, 3))
    post_rots = jnp.broadcast_to(jnp.eye(3, dtype=jnp.float32), (B, Ncam, 3, 3))
    post_trans = jnp.zeros((B, Ncam, 3), jnp.float32)

    out = model(imgs, rots, trans, intrins, post_rots, post_trans)
    out = jax.block_until_ready(out)
    assert out.shape == (B, outC, model.nx[0], model.nx[1]), out.shape
    assert bool(jnp.isfinite(out).all())
    print("KERNEL_OK")
</pallas_src>

<mosaic_0001>
module attributes {stable_mosaic.version = 11 : i64} {
  func.func @_cam_encode_kernel(%arg0: i32, %arg1: memref<128x768xbf16, #tpu.memory_space<vmem>>, %arg2: memref<768x512xbf16, #tpu.memory_space<vmem>>, %arg3: memref<1x512xf32, #tpu.memory_space<vmem>>, %arg4: memref<512x256xbf16, #tpu.memory_space<vmem>>, %arg5: memref<1x256xf32, #tpu.memory_space<vmem>>, %arg6: memref<128x512xbf16, #tpu.memory_space<vmem>>) attributes {dimension_semantics = [#tpu.dimension_semantics<parallel>], iteration_bounds = array<i64: 1>, scalar_prefetch = 0 : i64, scratch_operands = 0 : i64, tpu.core_type = #tpu.core_type<tc>, window_params = [{transform_indices = @transform_0, window_bounds = array<i64: 128, 768>}, {pipeline_mode = #tpu.pipeline_mode<synchronous>, transform_indices = @transform_1, window_bounds = array<i64: 768, 512>}, {pipeline_mode = #tpu.pipeline_mode<synchronous>, transform_indices = @transform_2, window_bounds = array<i64: 1, 512>}, {pipeline_mode = #tpu.pipeline_mode<synchronous>, transform_indices = @transform_3, window_bounds = array<i64: 512, 256>}, {pipeline_mode = #tpu.pipeline_mode<synchronous>, transform_indices = @transform_4, window_bounds = array<i64: 1, 256>}, {transform_indices = @transform_5, window_bounds = array<i64: 128, 512>}]} {
    %c0 = arith.constant 0 : index
    %c0_0 = arith.constant 0 : index
    %0 = vector.load %arg1[%c0, %c0_0] : memref<128x768xbf16, #tpu.memory_space<vmem>>, vector<128x768xbf16>
    %c0_1 = arith.constant 0 : index
    %c0_2 = arith.constant 0 : index
    %1 = vector.load %arg2[%c0_1, %c0_2] : memref<768x512xbf16, #tpu.memory_space<vmem>>, vector<768x512xbf16>
    %cst = arith.constant dense<0.000000e+00> : vector<128x512xf32>
    %2 = tpu.matmul %0, %1, %cst {dimension_numbers = #tpu.dot_dimension_numbers<[1], [0], [0], [1], [0, 0, 1, 1], [], []>} : vector<128x768xbf16>, vector<768x512xbf16>, vector<128x512xf32> -> vector<128x512xf32>
    %c0_3 = arith.constant 0 : index
    %c0_4 = arith.constant 0 : index
    %3 = vector.load %arg3[%c0_3, %c0_4] : memref<1x512xf32, #tpu.memory_space<vmem>>, vector<1x512xf32>
    %4 = vector.broadcast %3 : vector<1x512xf32> to vector<128x512xf32>
    %5 = arith.addf %2, %4 : vector<128x512xf32>
    %6 = arith.negf %5 : vector<128x512xf32>
    %7 = math.exp %6 : vector<128x512xf32>
    %cst_5 = arith.constant 1.000000e+00 : f32
    %8 = vector.broadcast %cst_5 : f32 to vector<128x512xf32>
    %9 = arith.addf %8, %7 : vector<128x512xf32>
    %10 = arith.divf %8, %9 : vector<128x512xf32>
    %11 = arith.mulf %5, %10 : vector<128x512xf32>
    %12 = arith.truncf %11 : vector<128x512xf32> to vector<128x512xbf16>
    %c0_6 = arith.constant 0 : index
    %c0_7 = arith.constant 0 : index
    %13 = vector.load %arg4[%c0_6, %c0_7] : memref<512x256xbf16, #tpu.memory_space<vmem>>, vector<512x256xbf16>
    %cst_8 = arith.constant dense<0.000000e+00> : vector<128x256xf32>
    %14 = tpu.matmul %12, %13, %cst_8 {dimension_numbers = #tpu.dot_dimension_numbers<[1], [0], [0], [1], [0, 0, 1, 1], [], []>} : vector<128x512xbf16>, vector<512x256xbf16>, vector<128x256xf32> -> vector<128x256xf32>
    %c0_9 = arith.constant 0 : index
    %c0_10 = arith.constant 0 : index
    %15 = vector.load %arg5[%c0_9, %c0_10] : memref<1x256xf32, #tpu.memory_space<vmem>>, vector<1x256xf32>
    %16 = vector.broadcast %15 : vector<1x256xf32> to vector<128x256xf32>
    %17 = arith.addf %14, %16 : vector<128x256xf32>
    %18 = vector.extract_strided_slice %17 {offsets = [0, 0], sizes = [128, 128], strides = [1, 1]} : vector<128x256xf32> to vector<128x128xf32>
    %19 = vector.extract_strided_slice %17 {offsets = [0, 128], sizes = [128, 4], strides = [1, 1]} : vector<128x256xf32> to vector<128x4xf32>
    %cst_11 = arith.constant dense<0xFF800000> : vector<128xf32>
    %20 = vector.multi_reduction <maximumf>, %19, %cst_11 [1] : vector<128x4xf32> to vector<128xf32>
    %21 = vector.shape_cast %20 : vector<128xf32> to vector<128x1xf32>
    %22 = vector.broadcast %21 : vector<128x1xf32> to vector<128x4xf32>
    %23 = arith.subf %19, %22 : vector<128x4xf32>
    %24 = math.exp %23 : vector<128x4xf32>
    %cst_12 = arith.constant dense<0.000000e+00> : vector<128xf32>
    %25 = vector.multi_reduction <add>, %24, %cst_12 [1] : vector<128x4xf32> to vector<128xf32>
    %26 = vector.shape_cast %25 : vector<128xf32> to vector<128x1xf32>
    %27 = vector.broadcast %26 : vector<128x1xf32> to vector<128x4xf32>
    %28 = arith.divf %24, %27 : vector<128x4xf32>
    %29 = vector.extract_strided_slice %28 {offsets = [0, 0], sizes = [128, 1], strides = [1, 1]} : vector<128x4xf32> to vector<128x1xf32>
    %30 = vector.broadcast %29 : vector<128x1xf32> to vector<128x128xf32>
    %31 = arith.mulf %30, %18 : vector<128x128xf32>
    %32 = vector.extract_strided_slice %28 {offsets = [0, 1], sizes = [128, 1], strides = [1, 1]} : vector<128x4xf32> to vector<128x1xf32>
    %33 = vector.broadcast %32 : vector<128x1xf32> to vector<128x128xf32>
    %34 = arith.mulf %33, %18 : vector<128x128xf32>
    %35 = vector.extract_strided_slice %28 {offsets = [0, 2], sizes = [128, 1], strides = [1, 1]} : vector<128x4xf32> to vector<128x1xf32>
    %36 = vector.broadcast %35 : vector<128x1xf32> to vector<128x128xf32>
    %37 = arith.mulf %36, %18 : vector<128x128xf32>
    %38 = vector.extract_strided_slice %28 {offsets = [0, 3], sizes = [128, 1], strides = [1, 1]} : vector<128x4xf32> to vector<128x1xf32>
    %39 = vector.broadcast %38 : vector<128x1xf32> to vector<128x128xf32>
    %40 = arith.mulf %39, %18 : vector<128x128xf32>
    %41 = tpu.concatenate %31, %34, %37, %40 in 1 : vector<128x128xf32>, vector<128x128xf32>, vector<128x128xf32>, vector<128x128xf32> -> vector<128x512xf32>
    %42 = arith.truncf %41 : vector<128x512xf32> to vector<128x512xbf16>
    %c0_13 = arith.constant 0 : index
    %c0_14 = arith.constant 0 : index
    %43 = vector.load %arg6[%c0_13, %c0_14] : memref<128x512xbf16, #tpu.memory_space<vmem>>, vector<128x512xbf16>
    tpu.vector_store %arg6[%c0_13, %c0_14], %42 {strides = array<i32>} : memref<128x512xbf16, #tpu.memory_space<vmem>>, vector<128x512xbf16>,
    return
  }
  func.func @transform_0(%arg0: i32) -> (i32, i32) {
    %c0_i32 = arith.constant 0 : i32
    %c0_i32_0 = arith.constant 0 : i32
    return %arg0, %c0_i32 : i32, i32
  }
  func.func @transform_1(%arg0: i32) -> (i32, i32) {
    %c0_i32 = arith.constant 0 : i32
    %c0_i32_0 = arith.constant 0 : i32
    %c0_i32_1 = arith.constant 0 : i32
    return %c0_i32, %c0_i32_0 : i32, i32
  }
  func.func @transform_2(%arg0: i32) -> (i32, i32) {
    %c0_i32 = arith.constant 0 : i32
    %c0_i32_0 = arith.constant 0 : i32
    %c0_i32_1 = arith.constant 0 : i32
    return %c0_i32, %c0_i32_0 : i32, i32
  }
  func.func @transform_3(%arg0: i32) -> (i32, i32) {
    %c0_i32 = arith.constant 0 : i32
    %c0_i32_0 = arith.constant 0 : i32
    %c0_i32_1 = arith.constant 0 : i32
    return %c0_i32, %c0_i32_0 : i32, i32
  }
  func.func @transform_4(%arg0: i32) -> (i32, i32) {
    %c0_i32 = arith.constant 0 : i32
    %c0_i32_0 = arith.constant 0 : i32
    %c0_i32_1 = arith.constant 0 : i32
    return %c0_i32, %c0_i32_0 : i32, i32
  }
  func.func @transform_5(%arg0: i32) -> (i32, i32) {
    %c0_i32 = arith.constant 0 : i32
    %c0_i32_0 = arith.constant 0 : i32
    return %arg0, %c0_i32 : i32, i32
  }
}

</mosaic_0001>

<bundles_post_ra>
// kernel: tpu_custom_call.1
= control target key start
LH: loop header
LB: loop body
LE: loop exit
PB: predicated region body
PF: predicated region fallthrough
CT: control target
= control target key end

     0   :  { %10 = vsyncpa [#allocation3], 0  ;;  %s6806_s0 = inlined_call_operand.hbm [shape: bf16[128,768], index: 0, kind: input, shape index: {}]   ;;  %s6807_s1 = inlined_call_operand.hbm [shape: bf16[768,512], index: 1, kind: input, shape index: {}]   ;;  %s6808_s2 = inlined_call_operand.vmem [shape: f32[1,512], index: 2, kind: input, shape index: {}]   ;;  %s6809_s3 = inlined_call_operand.hbm [shape: bf16[512,256], index: 3, kind: input, shape index: {}]   ;;  %s6810_s4 = inlined_call_operand.vmem [shape: f32[1,256], index: 4, kind: input, shape index: {}]   ;;  %s6811_s5 = inlined_call_operand.hbm [shape: bf16[128,512], index: 5, kind: output, shape index: {}]  }
   0x1   :  { %11 = vsyncpa [#allocation6], 0 }
   0x2   :  { %12 = vsyncpa [#allocation4], 0  ;;  %s5698_s18 = smov [#allocation5]   ;;  %s5604_s22 = scalar_lea.hbm %s6807_s1, 24576 }
   0x3   :  { %s30_s19 = sshll.u32 %s5698_s18, 4  ;;  %p5605_p0 = scmp.ne.s32.totalorder %s6807_s1, %s5604_s22  ;;  %s31_s19 = int_to_ptr.vmem [resolvable:$true] %s30_s19 }
   0x4   :  { %p5608_p1 = scmp.lt.u32.totalorder %s5604_s22, %s6807_s1 }
   0x6   :  { %p5610_p2 = pnand %p5608_p1, %p5605_p0 }
   0x8   :  { %5613 = shalt.err (!%p5610_p2)
}
   0x9   :  { %s5614_s27 = scalar_lea.vmem %s31_s19, 24576  ;;  %p5619_p4 = scmp.lt.s32.totalorder %s31_s19, %s31_s19 }
   0xa   :  { %p5615_p3 = scmp.ne.s32.totalorder %s31_s19, %s5614_s27  ;;  %p5620_p5 = scmp.lt.s32.totalorder %s5614_s27, %s5614_s27 }
   0xc   :  { %p5621_p6 = por %p5620_p5, %p5619_p4 }
   0xe   :  { %p5622_p7 = pnand %p5621_p6, %p5615_p3 }
  0x10   :  { %5625 = shalt.err (!%p5622_p7)
}
  0x11   :  { %s5699_s28 = smov 256   ;;  %s5700_s29 = smov 16  }
  0x12   :  { %36 = dma.hbm_to_vmem [thread:$0]  %s6807_s1, 24576, %s31_s19, [#allocation6], %s5699_s28, %s5699_s28, %s5700_s29  }
  0x13   :  { %s5701_s7 = smov [#allocation2]   ;;  %s5626_s11 = scalar_lea.hbm %s6806_s0, 6144 }
  0x14   :  { %s18_s8 = sshll.u32 %s5701_s7, 4  ;;  %p5627_p8 = scmp.ne.s32.totalorder %s6806_s0, %s5626_s11  ;;  %s19_s8 = int_to_ptr.vmem [resolvable:$true] %s18_s8 }
  0x15   :  { %p5630_p9 = scmp.lt.u32.totalorder %s5626_s11, %s6806_s0 }
  0x17   :  { %p5632_p10 = pnand %p5630_p9, %p5627_p8 }
  0x19   :  { %5635 = shalt.err (!%p5632_p10)
}
  0x1a   :  { %s5636_s16 = scalar_lea.vmem %s19_s8, 6144  ;;  %p5641_p12 = scmp.lt.s32.totalorder %s19_s8, %s19_s8 }
  0x1b   :  { %p5637_p11 = scmp.ne.s32.totalorder %s19_s8, %s5636_s16  ;;  %p5642_p13 = scmp.lt.s32.totalorder %s5636_s16, %s5636_s16 }
  0x1d   :  { %p5643_p0 = por %p5642_p13, %p5641_p12 }
  0x1f   :  { %p5644_p1 = pnand %p5643_p0, %p5637_p11 }
  0x21   :  { %5647 = shalt.err (!%p5644_p1)
}
  0x22   :  { %s5702_s1 = smov 384   ;;  %s5703_s17 = smov 24  }
  0x23   :  { %24 = dma.hbm_to_vmem [thread:$0]  %s6806_s0, 6144, %s19_s8, [#allocation3], %s5702_s1, %s5702_s1, %s5703_s17  }
  0x24   :  { %s5704_s20 = smov [#allocation7]   ;;  %s5648_s24 = scalar_lea.hbm %s6809_s3, 8192 }
  0x25   :  { %s44_s21 = sshll.u32 %s5704_s20, 4  ;;  %p5649_p2 = scmp.ne.s32.totalorder %s6809_s3, %s5648_s24  ;;  %s45_s21 = int_to_ptr.vmem [resolvable:$true] %s44_s21 }
  0x26   :  { %p5652_p3 = scmp.lt.u32.totalorder %s5648_s24, %s6809_s3 }
  0x28   :  { %p5654_p4 = pnand %p5652_p3, %p5649_p2 }
  0x2a   :  { %5657 = shalt.err (!%p5654_p4)
}
  0x2b   :  { %s5658_s6 = scalar_lea.vmem %s45_s21, 8192  ;;  %p5663_p6 = scmp.lt.s32.totalorder %s45_s21, %s45_s21 }
  0x2c   :  { %p5659_p5 = scmp.ne.s32.totalorder %s45_s21, %s5658_s6  ;;  %p5664_p7 = scmp.lt.s32.totalorder %s5658_s6, %s5658_s6 }
  0x2e   :  { %p5665_p8 = por %p5664_p7, %p5663_p6 }
  0x30   :  { %p5666_p9 = pnand %p5665_p8, %p5659_p5 }
  0x32   :  { %5669 = shalt.err (!%p5666_p9)
}
  0x33   :  { %s5705_s0 = smov 128   ;;  %s5706_s7 = smov 8  }
  0x34   :  { %50 = dma.hbm_to_vmem [thread:$0]  %s6809_s3, 8192, %s45_s21, [#allocation6], %s5705_s0, %s5705_s0, %s5706_s7  }
  0x35   :  { %5692 = dma.done.wait [#allocation3], 6144  }
  0x36   :  { %5693 = vsyncadd [#allocation3], 4294961152 }
  0x37   :  { %5694 = dma.done.wait [#allocation6], 32768  }
  0x38   :  { %5695 = vsyncadd [#allocation6], 4294934528  ;;  %v4825_v0 = vld [vmem:[#allocation5 + $0x4] ss:$16 sps:$4 sm:$0xff]   ;;  %v4829_v2 = vld [vmem:[#allocation5] ss:$16 sps:$4 sm:$0xff]  }
  0x39   :  { %v4827_v1 = vld [vmem:[#allocation5 + $0x204] ss:$16 sps:$4 sm:$0xff]   ;;  %1524 = vmatprep.subr.bf16.mxu1 %v4825_v0  ;;  %v4830_v3 = vld [vmem:[#allocation5 + $0x200] ss:$16 sps:$4 sm:$0xff]   ;;  %vm3304_vm0 = vcmask 31744  }
  0x3a   :  { %1637 = vmatprep.subr.bf16.mxu0 %v4827_v1  ;;  %v4831_v4 = vld [vmem:[#allocation5 + $0x24] ss:$16 sps:$4 sm:$0xff]   ;;  %1525 = vmatpush1.bf16.msra.mxu1 %v4829_v2  ;;  %v4835_v6 = vld [vmem:[#allocation5 + $0x20] ss:$16 sps:$4 sm:$0xff]  }
  0x3b   :  { %1638 = vmatpush1.bf16.msra.mxu0 %v4830_v3  ;;  %v4833_v5 = vld [vmem:[#allocation5 + $0x224] ss:$16 sps:$4 sm:$0xff]   ;;  %1526 = vmatprep.subr.bf16.mxu1 %v4831_v4  ;;  %v4836_v7 = vld [vmem:[#allocation5 + $0x220] ss:$16 sps:$4 sm:$0xff]   ;;  %v4932_v3 = vld [vmem:[#allocation5 + $0xc] ss:$16 sps:$4 sm:$0xff]  }
  0x3c   :  { %1639 = vmatprep.subr.bf16.mxu0 %v4833_v5  ;;  %v4837_v8 = vld [vmem:[#allocation5 + $0x44] ss:$16 sps:$4 sm:$0xff]   ;;  %v4841_v10 = vld [vmem:[#allocation5 + $0x40] ss:$16 sps:$4 sm:$0xff]  }
  0x3d   :  { %v4839_v9 = vld [vmem:[#allocation5 + $0x244] ss:$16 sps:$4 sm:$0xff]   ;;  %v4842_v11 = vld [vmem:[#allocation5 + $0x240] ss:$16 sps:$4 sm:$0xff]  }
  0x3e   :  { %1527 = vmatpush1.bf16.msra.mxu1 %v4835_v6  ;;  %v4843_v12 = vld [vmem:[#allocation5 + $0x64] ss:$16 sps:$4 sm:$0xff]   ;;  %v4847_v14 = vld [vmem:[#allocation5 + $0x60] ss:$16 sps:$4 sm:$0xff]  }
  0x3f   :  { %1640 = vmatpush1.bf16.msra.mxu0 %v4836_v7  ;;  %1528 = vmatprep.subr.bf16.mxu1 %v4837_v8  ;;  %v4845_v13 = vld [vmem:[#allocation5 + $0x264] ss:$16 sps:$4 sm:$0xff]   ;;  %v4848_v15 = vld [vmem:[#allocation5 + $0x260] ss:$16 sps:$4 sm:$0xff]   ;;  %v4930_v7 = vld [vmem:[#allocation5 + $0x8] ss:$16 sps:$4 sm:$0xff]  }
  0x40   :  { %1641 = vmatprep.subr.bf16.mxu0 %v4839_v9  ;;  %v4849_v16 = vld [vmem:[#allocation5 + $0x84] ss:$16 sps:$4 sm:$0xff]   ;;  %v4853_v18 = vld [vmem:[#allocation5 + $0x80] ss:$16 sps:$4 sm:$0xff]   ;;  %v4938_v9 = vld [vmem:[#allocation5 + $0x2c] ss:$16 sps:$4 sm:$0xff]  }
  0x41   :  { %v4851_v17 = vld [vmem:[#allocation5 + $0x284] ss:$16 sps:$4 sm:$0xff]   ;;  %v4854_v19 = vld [vmem:[#allocation5 + $0x280] ss:$16 sps:$4 sm:$0xff]  }
  0x42   :  { %1529 = vmatpush1.bf16.msra.mxu1 %v4841_v10  ;;  %v4855_v20 = vld [vmem:[#allocation5 + $0xa4] ss:$16 sps:$4 sm:$0xff]   ;;  %v4859_v22 = vld [vmem:[#allocation5 + $0xa0] ss:$16 sps:$4 sm:$0xff]  }
  0x43   :  { %1642 = vmatpush1.bf16.msra.mxu0 %v4842_v11  ;;  %1530 = vmatprep.subr.bf16.mxu1 %v4843_v12  ;;  %v4857_v21 = vld [vmem:[#allocation5 + $0x2a4] ss:$16 sps:$4 sm:$0xff]   ;;  %v4860_v23 = vld [vmem:[#allocation5 + $0x2a0] ss:$16 sps:$4 sm:$0xff]  }
  0x44   :  { %1643 = vmatprep.subr.bf16.mxu0 %v4845_v13  ;;  %v4861_v24 = vld [vmem:[#allocation5 + $0xc4] ss:$16 sps:$4 sm:$0xff]   ;;  %v4865_v26 = vld [vmem:[#allocation5 + $0xc0] ss:$16 sps:$4 sm:$0xff]   ;;  %v4936_v13 = vld [vmem:[#allocation5 + $0x28] ss:$16 sps:$4 sm:$0xff]  }
  0x45   :  { %v4863_v25 = vld [vmem:[#allocation5 + $0x2c4] ss:$16 sps:$4 sm:$0xff]   ;;  %v4866_v27 = vld [vmem:[#allocation5 + $0x2c0] ss:$16 sps:$4 sm:$0xff]  }
  0x46   :  { %1531 = vmatpush1.bf16.msra.mxu1 %v4847_v14  ;;  %v4867_v28 = vld [vmem:[#allocation5 + $0xe4] ss:$16 sps:$4 sm:$0xff]   ;;  %v4871_v30 = vld [vmem:[#allocation5 + $0xe0] ss:$16 sps:$4 sm:$0xff]  }
  0x47   :  { %1644 = vmatpush1.bf16.msra.mxu0 %v4848_v15  ;;  %1532 = vmatprep.subr.bf16.mxu1 %v4849_v16  ;;  %v4869_v29 = vld [vmem:[#allocation5 + $0x2e4] ss:$16 sps:$4 sm:$0xff]   ;;  %v4872_v31 = vld [vmem:[#allocation5 + $0x2e0] ss:$16 sps:$4 sm:$0xff]   ;;  %v4950_v15 = vld [vmem:[#allocation5 + $0x4c] ss:$16 sps:$4 sm:$0xff]  }
  0x48   :  { %1645 = vmatprep.subr.bf16.mxu0 %v4851_v17  ;;  %v4873_v32 = vld [vmem:[#allocation5 + $0x104] ss:$16 sps:$4 sm:$0xff]   ;;  %v4877_v34 = vld [vmem:[#allocation5 + $0x100] ss:$16 sps:$4 sm:$0xff]  }
  0x49   :  { %v4875_v33 = vld [vmem:[#allocation5 + $0x304] ss:$16 sps:$4 sm:$0xff]   ;;  %v4878_v35 = vld [vmem:[#allocation5 + $0x300] ss:$16 sps:$4 sm:$0xff]  }
  0x4a   :  { %1533 = vmatpush1.bf16.msra.mxu1 %v4853_v18  ;;  %v4879_v36 = vld [vmem:[#allocation5 + $0x124] ss:$16 sps:$4 sm:$0xff]   ;;  %v4883_v38 = vld [vmem:[#allocation5 + $0x120] ss:$16 sps:$4 sm:$0xff]  }
  0x4b   :  { %1646 = vmatpush1.bf16.msra.mxu0 %v4854_v19  ;;  %1534 = vmatprep.subr.bf16.mxu1 %v4855_v20  ;;  %v4881_v37 = vld [vmem:[#allocation5 + $0x324] ss:$16 sps:$4 sm:$0xff]   ;;  %v4884_v39 = vld [vmem:[#allocation5 + $0x320] ss:$16 sps:$4 sm:$0xff]   ;;  %v4948_v19 = vld [vmem:[#allocation5 + $0x48] ss:$16 sps:$4 sm:$0xff]  }
  0x4c   :  { %1647 = vmatprep.subr.bf16.mxu0 %v4857_v21  ;;  %v4885_v40 = vld [vmem:[#allocation5 + $0x144] ss:$16 sps:$4 sm:$0xff]   ;;  %v4889_v42 = vld [vmem:[#allocation5 + $0x140] ss:$16 sps:$4 sm:$0xff]   ;;  %v4956_v21 = vld [vmem:[#allocation5 + $0x6c] ss:$16 sps:$4 sm:$0xff]  }
  0x4d   :  { %v4887_v41 = vld [vmem:[#allocation5 + $0x344] ss:$16 sps:$4 sm:$0xff]   ;;  %v4890_v43 = vld [vmem:[#allocation5 + $0x340] ss:$16 sps:$4 sm:$0xff]  }
  0x4e   :  { %1535 = vmatpush1.bf16.msra.mxu1 %v4859_v22  ;;  %v4891_v44 = vld [vmem:[#allocation5 + $0x164] ss:$16 sps:$4 sm:$0xff]   ;;  %v4895_v46 = vld [vmem:[#allocation5 + $0x160] ss:$16 sps:$4 sm:$0xff]  }
  0x4f   :  { %1648 = vmatpush1.bf16.msra.mxu0 %v4860_v23  ;;  %1536 = vmatprep.subr.bf16.mxu1 %v4861_v24  ;;  %v4893_v45 = vld [vmem:[#allocation5 + $0x364] ss:$16 sps:$4 sm:$0xff]   ;;  %v4896_v47 = vld [vmem:[#allocation5 + $0x360] ss:$16 sps:$4 sm:$0xff]  }
  0x50   :  { %1649 = vmatprep.subr.bf16.mxu0 %v4863_v25  ;;  %v4897_v48 = vld [vmem:[#allocation5 + $0x184] ss:$16 sps:$4 sm:$0xff]   ;;  %v4901_v52 = vld [vmem:[#allocation5 + $0x180] ss:$16 sps:$4 sm:$0xff]   ;;  %v4954_v25 = vld [vmem:[#allocation5 + $0x68] ss:$16 sps:$4 sm:$0xff]  }
  0x51   :  { %v5781_v49 = vld [vmem:[#allocation2 + $0x4] ss:$24 sps:$4 sm:$0xff]   ;;  %v4902_v53 = vld [vmem:[#allocation5 + $0x380] ss:$16 sps:$4 sm:$0xff]   ;;  %v5786_v10 = vld [vmem:[#allocation2 + $0x34] ss:$24 sps:$4 sm:$0xff]  }
  0x52   :  { %1537 = vmatpush1.bf16.msra.mxu1 %v4865_v26  ;;  %v4899_v50 = vld [vmem:[#allocation5 + $0x384] ss:$16 sps:$4 sm:$0xff]   ;;  %1556 = vmatprep.mubr.bf16.mxu1 %v5781_v49  ;;  %v4907_v56 = vld [vmem:[#allocation5 + $0x1a0] ss:$16 sps:$4 sm:$0xff]  }
  0x53   :  { %1650 = vmatpush1.bf16.msra.mxu0 %v4866_v27  ;;  %1538 = vmatprep.subr.bf16.mxu1 %v4867_v28  ;;  %v4926_v51 = vld [vmem:[#allocation2 + $0xc] ss:$24 sps:$4 sm:$0xff]   ;;  %v4908_v57 = vld [vmem:[#allocation5 + $0x3a0] ss:$16 sps:$4 sm:$0xff]   ;;  %v4941_v11 = vld [vmem:[#allocation2 + $0x3c] ss:$24 sps:$4 sm:$0xff]  }
  0x54   :  { %1651 = vmatprep.subr.bf16.mxu0 %v4869_v29  ;;  %1669 = vmatprep.mubr.bf16.mxu0 %v4926_v51  ;;  %v4903_v54 = vld [vmem:[#allocation5 + $0x1a4] ss:$16 sps:$4 sm:$0xff]   ;;  %v4913_v60 = vld [vmem:[#allocation5 + $0x1c0] ss:$16 sps:$4 sm:$0xff]   ;;  %v4968_v27 = vld [vmem:[#allocation5 + $0x8c] ss:$16 sps:$4 sm:$0xff]  }
  0x55   :  { %v4905_v55 = vld [vmem:[#allocation5 + $0x3a4] ss:$16 sps:$4 sm:$0xff]   ;;  %v4914_v61 = vld [vmem:[#allocation5 + $0x3c0] ss:$16 sps:$4 sm:$0xff]  }
  0x56   :  { %1539 = vmatpush1.bf16.msra.mxu1 %v4871_v30  ;;  %v4909_v58 = vld [vmem:[#allocation5 + $0x1c4] ss:$16 sps:$4 sm:$0xff]   ;;  %v4919_v0 = vld [vmem:[#allocation5 + $0x1e0] ss:$16 sps:$4 sm:$0xff]  }
  0x57   :  { %1652 = vmatpush1.bf16.msra.mxu0 %v4872_v31  ;;  %1540 = vmatprep.subr.bf16.mxu1 %v4873_v32  ;;  %v4911_v59 = vld [vmem:[#allocation5 + $0x3c4] ss:$16 sps:$4 sm:$0xff]   ;;  %v4920_v1 = vld [vmem:[#allocation5 + $0x3e0] ss:$16 sps:$4 sm:$0xff]   ;;  %v4966_v31 = vld [vmem:[#allocation5 + $0x88] ss:$16 sps:$4 sm:$0xff]  }
  0x58   :  { %1653 = vmatprep.subr.bf16.mxu0 %v4875_v33  ;;  %v4915_v62 = vld [vmem:[#allocation5 + $0x1e4] ss:$16 sps:$4 sm:$0xff]   ;;  %v5784_v4 = vld [vmem:[#allocation2] ss:$24 sps:$4 sm:$0xff]   ;;  %v5790_v16 = vld [vmem:[#allocation2 + $0x30] ss:$24 sps:$4 sm:$0xff]  }
  0x59   :  { %v4917_v63 = vld [vmem:[#allocation5 + $0x3e4] ss:$16 sps:$4 sm:$0xff]   ;;  %v4924_v5 = vld [vmem:[#allocation2 + $0x8] ss:$24 sps:$4 sm:$0xff]   ;;  %v5792_v17 = vld [vmem:[#allocation2 + $0x38] ss:$24 sps:$4 sm:$0xff]  }
  0x5a   :  { %1541 = vmatpush1.bf16.msra.mxu1 %v4877_v34  ;;  %v4929_v2 = vld [vmem:[#allocation5 + $0x404] ss:$16 sps:$4 sm:$0xff]   ;;  %v4927_v6 = vld [vmem:[#allocation5 + $0x400] ss:$16 sps:$4 sm:$0xff]   ;;  %v4974_v33 = vld [vmem:[#allocation5 + $0xac] ss:$16 sps:$4 sm:$0xff]  }
  0x5b   :  { %1654 = vmatpush1.bf16.msra.mxu0 %v4878_v35  ;;  %1542 = vmatprep.subr.bf16.mxu1 %v4879_v36  ;;  %v4935_v8 = vld [vmem:[#allocation5 + $0x424] ss:$16 sps:$4 sm:$0xff]   ;;  %v4933_v12 = vld [vmem:[#allocation5 + $0x420] ss:$16 sps:$4 sm:$0xff]  }
  0x5c   :  { %1655 = vmatprep.subr.bf16.mxu0 %v4881_v37  ;;  %v4947_v14 = vld [vmem:[#allocation5 + $0x444] ss:$16 sps:$4 sm:$0xff]   ;;  %v4945_v18 = vld [vmem:[#allocation5 + $0x440] ss:$16 sps:$4 sm:$0xff]   ;;  %v4972_v37 = vld [vmem:[#allocation5 + $0xa8] ss:$16 sps:$4 sm:$0xff]  }
  0x5d   :  { %v4953_v20 = vld [vmem:[#allocation5 + $0x464] ss:$16 sps:$4 sm:$0xff]   ;;  %v4951_v24 = vld [vmem:[#allocation5 + $0x460] ss:$16 sps:$4 sm:$0xff]  }
  0x5e   :  { %1543 = vmatpush1.bf16.msra.mxu1 %v4883_v38  ;;  %v5794_v22 = vld [vmem:[#allocation2 + $0x64] ss:$24 sps:$4 sm:$0xff]   ;;  %v5802_v28 = vld [vmem:[#allocation2 + $0x60] ss:$24 sps:$4 sm:$0xff]   ;;  %v5806_v34 = vld [vmem:[#allocation2 + $0x94] ss:$24 sps:$4 sm:$0xff]  }
  0x5f   :  { %1656 = vmatpush1.bf16.msra.mxu0 %v4884_v39  ;;  %1544 = vmatprep.subr.bf16.mxu1 %v4885_v40  ;;  %v5796_v23 = vld [vmem:[#allocation2 + $0x6c] ss:$24 sps:$4 sm:$0xff]   ;;  %v5804_v29 = vld [vmem:[#allocation2 + $0x68] ss:$24 sps:$4 sm:$0xff]   ;;  %v5808_v35 = vld [vmem:[#allocation2 + $0x9c] ss:$24 sps:$4 sm:$0xff]  }
  0x60   :  { %1657 = vmatprep.subr.bf16.mxu0 %v4887_v41  ;;  %v4965_v26 = vld [vmem:[#allocation5 + $0x484] ss:$16 sps:$4 sm:$0xff]   ;;  %v4963_v30 = vld [vmem:[#allocation5 + $0x480] ss:$16 sps:$4 sm:$0xff]   ;;  %v4986_v39 = vld [vmem:[#allocation5 + $0xcc] ss:$16 sps:$4 sm:$0xff]  }
  0x61   :  { %v4971_v32 = vld [vmem:[#allocation5 + $0x4a4] ss:$16 sps:$4 sm:$0xff]   ;;  %v4969_v36 = vld [vmem:[#allocation5 + $0x4a0] ss:$16 sps:$4 sm:$0xff]  }
  0x62   :  { %1545 = vmatpush1.bf16.msra.mxu1 %v4889_v42  ;;  %v4983_v38 = vld [vmem:[#allocation5 + $0x4c4] ss:$16 sps:$4 sm:$0xff]   ;;  %v5814_v40 = vld [vmem:[#allocation2 + $0x90] ss:$24 sps:$4 sm:$0xff]  }
  0x63   :  { %1658 = vmatpush1.bf16.msra.mxu0 %v4890_v43  ;;  %1546 = vmatprep.subr.bf16.mxu1 %v4891_v44  ;;  %v5816_v41 = vld [vmem:[#allocation2 + $0x98] ss:$24 sps:$4 sm:$0xff]   ;;  %v4989_v44 = vld [vmem:[#allocation5 + $0x4e4] ss:$16 sps:$4 sm:$0xff]  }
  0x64   :  { %1659 = vmatprep.subr.bf16.mxu0 %v4893_v45  ;;  %v4981_v42 = vld [vmem:[#allocation5 + $0x4c0] ss:$16 sps:$4 sm:$0xff]   ;;  %v4984_v43 = vld [vmem:[#allocation5 + $0xc8] ss:$16 sps:$4 sm:$0xff]   ;;  %v4992_v45 = vld [vmem:[#allocation5 + $0xec] ss:$16 sps:$4 sm:$0xff]  }
  0x65   :  { %v5001_v51 = vld [vmem:[#allocation5 + $0x504] ss:$16 sps:$4 sm:$0xff]  }
  0x66   :  { %1547 = vmatpush1.bf16.msra.mxu1 %v4895_v46  ;;  %v5818_v46 = vld [vmem:[#allocation2 + $0xc4] ss:$24 sps:$4 sm:$0xff]  }
  0x67   :  { %1660 = vmatpush1.bf16.msra.mxu0 %v4896_v47  ;;  %1548 = vmatprep.subr.bf16.mxu1 %v4897_v48  ;;  %v5820_v47 = vld [vmem:[#allocation2 + $0xcc] ss:$24 sps:$4 sm:$0xff]   ;;  %v4987_v48 = vld [vmem:[#allocation5 + $0x4e0] ss:$16 sps:$4 sm:$0xff]  }
  0x68   :  { %1661 = vmatprep.subr.bf16.mxu0 %v4899_v50  ;;  %v4990_v50 = vld [vmem:[#allocation5 + $0xe8] ss:$16 sps:$4 sm:$0xff]  }
  0x6a   :  { %1549 = vmatpush1.bf16.msra.mxu1 %v4901_v52  ;;  %v5004_v52 = vld [vmem:[#allocation5 + $0x10c] ss:$16 sps:$4 sm:$0xff]  }
  0x6b   :  { %1662 = vmatpush1.bf16.msra.mxu0 %v4902_v53  ;;  %1550 = vmatprep.subr.bf16.mxu1 %v4903_v54  ;;  %v5826_v53 = vld [vmem:[#allocation2 + $0xc0] ss:$24 sps:$4 sm:$0xff]  }
  0x6c   :  { %1663 = vmatprep.subr.bf16.mxu0 %v4905_v55  ;;  %v5828_v54 = vld [vmem:[#allocation2 + $0xc8] ss:$24 sps:$4 sm:$0xff]  }
  0x6d   :  { %v4999_v55 = vld [vmem:[#allocation5 + $0x500] ss:$16 sps:$4 sm:$0xff]  }
  0x6e   :  { %1551 = vmatpush1.bf16.msra.mxu1 %v4907_v56  ;;  %v5002_v56 = vld [vmem:[#allocation5 + $0x108] ss:$16 sps:$4 sm:$0xff]  }
  0x6f   :  { %1664 = vmatpush1.bf16.msra.mxu0 %v4908_v57  ;;  %1552 = vmatprep.subr.bf16.mxu1 %v4909_v58  ;;  %v5007_v57 = vld [vmem:[#allocation5 + $0x524] ss:$16 sps:$4 sm:$0xff]   ;;  %v5010_v58 = vld [vmem:[#allocation5 + $0x12c] ss:$16 sps:$4 sm:$0xff]  }
  0x70   :  { %1665 = vmatprep.subr.bf16.mxu0 %v4911_v59  ;;  %v5830_v59 = vld [vmem:[#allocation2 + $0xf4] ss:$24 sps:$4 sm:$0xff]  }
  0x72   :  { %1553 = vmatpush1.bf16.msra.mxu1 %v4913_v60  ;;  %v5832_v60 = vld [vmem:[#allocation2 + $0xfc] ss:$24 sps:$4 sm:$0xff]  }
  0x73   :  { %1666 = vmatpush1.bf16.msra.mxu0 %v4914_v61  ;;  %1554 = vmatprep.subr.bf16.mxu1 %v4915_v62  ;;  %v5005_v61 = vld [vmem:[#allocation5 + $0x520] ss:$16 sps:$4 sm:$0xff]   ;;  %v5008_v62 = vld [vmem:[#allocation5 + $0x128] ss:$16 sps:$4 sm:$0xff]  }
  0x74   :  { %1667 = vmatprep.subr.bf16.mxu0 %v4917_v63  ;;  %v5019_v63 = vld [vmem:[#allocation5 + $0x544] ss:$16 sps:$4 sm:$0xff]  }
  0x76   :  { %1555 = vmatpush1.bf16.msra.mxu1 %v4919_v0  ;;  %v5022_v0 = vld [vmem:[#allocation5 + $0x14c] ss:$16 sps:$4 sm:$0xff]  }
  0x77   :  { %1668 = vmatpush1.bf16.msra.mxu0 %v4920_v1  ;;  %1863 = vmatprep.subr.bf16.mxu1 %v4932_v3  ;;  %v5838_v1 = vld [vmem:[#allocation2 + $0xf0] ss:$24 sps:$4 sm:$0xff]  }
  0x78   :  { %1750 = vmatprep.subr.bf16.mxu0 %v4929_v2  ;;  %v5840_v2 = vld [vmem:[#allocation2 + $0xf8] ss:$24 sps:$4 sm:$0xff]  }
  0x79   :  { %1557 = vmatmul.mubr.bf16.vlgmr.msra.gmra.mrb[0].mxu1 %v5784_v4  ;;  %v5017_v3 = vld [vmem:[#allocation5 + $0x540] ss:$16 sps:$4 sm:$0xff]  }
  0x7a   :  { %1670 = vmatmul.mubr.bf16.vlgmr.msra.gmra.mrb[0].mxu0 %v4924_v5  ;;  %1864 = vmatpush1.bf16.msra.mxu1 %v4930_v7  ;;  %v5020_v5 = vld [vmem:[#allocation5 + $0x148] ss:$16 sps:$4 sm:$0xff]   ;;  %v5028_v7 = vld [vmem:[#allocation5 + $0x16c] ss:$16 sps:$4 sm:$0xff]  }
  0x7b   :  { %1751 = vmatpush1.bf16.msra.mxu0 %v4927_v6  ;;  %1865 = vmatprep.subr.bf16.mxu1 %v4938_v9  ;;  %v5025_v6 = vld [vmem:[#allocation5 + $0x564] ss:$16 sps:$4 sm:$0xff]  }
  0x7c   :  { %1752 = vmatprep.subr.bf16.mxu0 %v4935_v8  ;;  %1566 = vmatprep.mubr.bf16.mxu1 %v5786_v10  ;;  %v5842_v8 = vld [vmem:[#allocation2 + $0x124] ss:$24 sps:$4 sm:$0xff]  }
  0x7d   :  { %1679 = vmatprep.mubr.bf16.mxu0 %v4941_v11  ;;  %v5844_v9 = vld [vmem:[#allocation2 + $0x12c] ss:$24 sps:$4 sm:$0xff]   ;;  %v5023_v11 = vld [vmem:[#allocation5 + $0x560] ss:$16 sps:$4 sm:$0xff]  }
  0x7e   :  { %1866 = vmatpush1.bf16.msra.mxu1 %v4936_v13  ;;  %v5037_v13 = vld [vmem:[#allocation5 + $0x584] ss:$16 sps:$4 sm:$0xff]  }
  0x7f   :  { %1753 = vmatpush1.bf16.msra.mxu0 %v4933_v12  ;;  %1867 = vmatprep.subr.bf16.mxu1 %v4950_v15  ;;  %v5026_v12 = vld [vmem:[#allocation5 + $0x168] ss:$16 sps:$4 sm:$0xff]  }
  0x80   :  { %1754 = vmatprep.subr.bf16.mxu0 %v4947_v14  ;;  %v5040_v14 = vld [vmem:[#allocation5 + $0x18c] ss:$16 sps:$4 sm:$0xff]   ;;  %v5850_v15 = vld [vmem:[#allocation2 + $0x120] ss:$24 sps:$4 sm:$0xff]  }
  0x81   :  { %1567 = vmatmul.mubr.bf16.gmra.mrb[4].mxu1 %v5790_v16 }
  0x82   :  { %1680 = vmatmul.mubr.bf16.gmra.mrb[4].mxu0 %v5792_v17  ;;  %1868 = vmatpush1.bf16.msra.mxu1 %v4948_v19  ;;  %v5035_v19 = vld [vmem:[#allocation5 + $0x580] ss:$16 sps:$4 sm:$0xff]  }
  0x83   :  { %1755 = vmatpush1.bf16.msra.mxu0 %v4945_v18  ;;  %1869 = vmatprep.subr.bf16.mxu1 %v4956_v21  ;;  %v5852_v18 = vld [vmem:[#allocation2 + $0x128] ss:$24 sps:$4 sm:$0xff]   ;;  %v5043_v21 = vld [vmem:[#allocation5 + $0x5a4] ss:$16 sps:$4 sm:$0xff]  }
  0x84   :  { %1756 = vmatprep.subr.bf16.mxu0 %v4953_v20  ;;  %1576 = vmatprep.mubr.bf16.mxu1 %v5794_v22  ;;  %v5038_v20 = vld [vmem:[#allocation5 + $0x188] ss:$16 sps:$4 sm:$0xff]  }
  0x85   :  { %1689 = vmatprep.mubr.bf16.mxu0 %v5796_v23 }
  0x86   :  { %1870 = vmatpush1.bf16.msra.mxu1 %v4954_v25  ;;  %v5854_v25 = vld [vmem:[#allocation2 + $0x154] ss:$24 sps:$4 sm:$0xff]  }
  0x87   :  { %1757 = vmatpush1.bf16.msra.mxu0 %v4951_v24  ;;  %1871 = vmatprep.subr.bf16.mxu1 %v4968_v27  ;;  %v5046_v24 = vld [vmem:[#allocation5 + $0x1ac] ss:$16 sps:$4 sm:$0xff]   ;;  %v5041_v27 = vld [vmem:[#allocation5 + $0x5a0] ss:$16 sps:$4 sm:$0xff]  }
  0x88   :  { %1758 = vmatprep.subr.bf16.mxu0 %v4965_v26  ;;  %v5856_v26 = vld [vmem:[#allocation2 + $0x15c] ss:$24 sps:$4 sm:$0xff]  }
  0x89   :  { %1577 = vmatmul.mubr.bf16.gmra.mrb[8].mxu1 %v5802_v28 }
  0x8a   :  { %1690 = vmatmul.mubr.bf16.gmra.mrb[8].mxu0 %v5804_v29  ;;  %1872 = vmatpush1.bf16.msra.mxu1 %v4966_v31  ;;  %v5055_v31 = vld [vmem:[#allocation5 + $0x5c4] ss:$16 sps:$4 sm:$0xff]  }
  0x8b   :  { %1759 = vmatpush1.bf16.msra.mxu0 %v4963_v30  ;;  %1873 = vmatprep.subr.bf16.mxu1 %v4974_v33  ;;  %v5044_v30 = vld [vmem:[#allocation5 + $0x1a8] ss:$16 sps:$4 sm:$0xff]  }
  0x8c   :  { %1760 = vmatprep.subr.bf16.mxu0 %v4971_v32  ;;  %1586 = vmatprep.mubr.bf16.mxu1 %v5806_v34  ;;  %v5058_v32 = vld [vmem:[#allocation5 + $0x1cc] ss:$16 sps:$4 sm:$0xff]   ;;  %v5862_v33 = vld [vmem:[#allocation2 + $0x150] ss:$24 sps:$4 sm:$0xff]  }
  0x8d   :  { %1699 = vmatprep.mubr.bf16.mxu0 %v5808_v35 }
  0x8e   :  { %1874 = vmatpush1.bf16.msra.mxu1 %v4972_v37  ;;  %v5053_v37 = vld [vmem:[#allocation5 + $0x5c0] ss:$16 sps:$4 sm:$0xff]  }
  0x8f   :  { %1761 = vmatpush1.bf16.msra.mxu0 %v4969_v36  ;;  %1875 = vmatprep.subr.bf16.mxu1 %v4986_v39  ;;  %v5864_v36 = vld [vmem:[#allocation2 + $0x158] ss:$24 sps:$4 sm:$0xff]   ;;  %v5061_v39 = vld [vmem:[#allocation5 + $0x5e4] ss:$16 sps:$4 sm:$0xff]  }
  0x90   :  { %1762 = vmatprep.subr.bf16.mxu0 %v4983_v38  ;;  %v5056_v38 = vld [vmem:[#allocation5 + $0x1c8] ss:$16 sps:$4 sm:$0xff]  }
  0x91   :  { %1587 = vmatmul.mubr.bf16.gmra.mrb[12].mxu1 %v5814_v40 }
  0x92   :  { %1700 = vmatmul.mubr.bf16.gmra.mrb[12].mxu0 %v5816_v41  ;;  %1876 = vmatpush1.bf16.msra.mxu1 %v4984_v43  ;;  %v5866_v43 = vld [vmem:[#allocation2 + $0x14] ss:$24 sps:$4 sm:$0xff]  }
  0x93   :  { %1763 = vmatpush1.bf16.msra.mxu0 %v4981_v42  ;;  %1877 = vmatprep.subr.bf16.mxu1 %v4992_v45  ;;  %v5064_v42 = vld [vmem:[#allocation5 + $0x1ec] ss:$16 sps:$4 sm:$0xff]   ;;  %v5062_v45 = vld [vmem:[#allocation5 + $0x1e8] ss:$16 sps:$4 sm:$0xff]  }
  0x94   :  { %1764 = vmatprep.subr.bf16.mxu0 %v4989_v44  ;;  %1596 = vmatprep.mubr.bf16.mxu1 %v5818_v46  ;;  %v5059_v44 = vld [vmem:[#allocation5 + $0x5e0] ss:$16 sps:$4 sm:$0xff]  }
  0x95   :  { %1709 = vmatprep.mubr.bf16.mxu0 %v5820_v47 }
  0x96   :  { %1878 = vmatpush1.bf16.msra.mxu1 %v4990_v50  ;;  %v5872_v50 = vld [vmem:[#allocation2 + $0x10] ss:$24 sps:$4 sm:$0xff]  }
  0x97   :  { %1765 = vmatpush1.bf16.msra.mxu0 %v4987_v48  ;;  %1879 = vmatprep.subr.bf16.mxu1 %v5004_v52  ;;  %v5070_v48 = vld [vmem:[#allocation5 + $0x20c] ss:$16 sps:$4 sm:$0xff]  }
  0x98   :  { %1766 = vmatprep.subr.bf16.mxu0 %v5001_v51  ;;  %v5068_v51 = vld [vmem:[#allocation5 + $0x208] ss:$16 sps:$4 sm:$0xff]   ;;  %v5874_v52 = vld [vmem:[#allocation2 + $0x44] ss:$24 sps:$4 sm:$0xff]  }
  0x99   :  { %1597 = vmatmul.mubr.bf16.gmra.mrb[16].mxu1 %v5826_v53 }
  0x9a   :  { %1710 = vmatmul.mubr.bf16.gmra.mrb[16].mxu0 %v5828_v54  ;;  %1880 = vmatpush1.bf16.msra.mxu1 %v5002_v56  ;;  %v5071_v56 = vld [vmem:[#allocation5 + $0x228] ss:$16 sps:$4 sm:$0xff]  }
  0x9b   :  { %1767 = vmatpush1.bf16.msra.mxu0 %v4999_v55  ;;  %1881 = vmatprep.subr.bf16.mxu1 %v5010_v58  ;;  %v5073_v55 = vld [vmem:[#allocation5 + $0x22c] ss:$16 sps:$4 sm:$0xff]   ;;  %v5077_v58 = vld [vmem:[#allocation5 + $0x248] ss:$16 sps:$4 sm:$0xff]  }
  0x9c   :  { %1768 = vmatprep.subr.bf16.mxu0 %v5007_v57  ;;  %1606 = vmatprep.mubr.bf16.mxu1 %v5830_v59  ;;  %v5880_v57 = vld [vmem:[#allocation2 + $0x40] ss:$24 sps:$4 sm:$0xff]  }
  0x9d   :  { %1719 = vmatprep.mubr.bf16.mxu0 %v5832_v60 }
  0x9e   :  { %1882 = vmatpush1.bf16.msra.mxu1 %v5008_v62  ;;  %v5082_v62 = vld [vmem:[#allocation5 + $0x26c] ss:$16 sps:$4 sm:$0xff]  }
  0x9f   :  { %1769 = vmatpush1.bf16.msra.mxu0 %v5005_v61  ;;  %1883 = vmatprep.subr.bf16.mxu1 %v5022_v0  ;;  %v5882_v61 = vld [vmem:[#allocation2 + $0x74] ss:$24 sps:$4 sm:$0xff]   ;;  %v5086_v0 = vld [vmem:[#allocation5 + $0x288] ss:$16 sps:$4 sm:$0xff]  }
  0xa0   :  { %1770 = vmatprep.subr.bf16.mxu0 %v5019_v63  ;;  %v5888_v63 = vld [vmem:[#allocation2 + $0x70] ss:$24 sps:$4 sm:$0xff]  }
  0xa1   :  { %1607 = vmatmul.mubr.bf16.gmra.mrb[20].mxu1 %v5838_v1 }
  0xa2   :  { %1720 = vmatmul.mubr.bf16.gmra.mrb[20].mxu0 %v5840_v2  ;;  %1884 = vmatpush1.bf16.msra.mxu1 %v5020_v5  ;;  %v5091_v5 = vld [vmem:[#allocation5 + $0x2ac] ss:$16 sps:$4 sm:$0xff]  }
  0xa3   :  { %1771 = vmatpush1.bf16.msra.mxu0 %v5017_v3  ;;  %1885 = vmatprep.subr.bf16.mxu1 %v5028_v7  ;;  %v5890_v3 = vld [vmem:[#allocation2 + $0xa4] ss:$24 sps:$4 sm:$0xff]   ;;  %v5095_v7 = vld [vmem:[#allocation5 + $0x2c8] ss:$16 sps:$4 sm:$0xff]  }
  0xa4   :  { %1772 = vmatprep.subr.bf16.mxu0 %v5025_v6  ;;  %1616 = vmatprep.mubr.bf16.mxu1 %v5842_v8  ;;  %v5896_v6 = vld [vmem:[#allocation2 + $0xa0] ss:$24 sps:$4 sm:$0xff]  }
  0xa5   :  { %1729 = vmatprep.mubr.bf16.mxu0 %v5844_v9 }
  0xa6   :  { %1886 = vmatpush1.bf16.msra.mxu1 %v5026_v12  ;;  %v5100_v12 = vld [vmem:[#allocation5 + $0x2ec] ss:$16 sps:$4 sm:$0xff]  }
  0xa7   :  { %1773 = vmatpush1.bf16.msra.mxu0 %v5023_v11  ;;  %1887 = vmatprep.subr.bf16.mxu1 %v5040_v14  ;;  %v5898_v11 = vld [vmem:[#allocation2 + $0xd4] ss:$24 sps:$4 sm:$0xff]   ;;  %v5104_v14 = vld [vmem:[#allocation5 + $0x308] ss:$16 sps:$4 sm:$0xff]  }
  0xa8   :  { %1774 = vmatprep.subr.bf16.mxu0 %v5037_v13  ;;  %v5904_v13 = vld [vmem:[#allocation2 + $0xd0] ss:$24 sps:$4 sm:$0xff]  }
  0xa9   :  { %1617 = vmatmul.mubr.bf16.gmra.mrb[24].mxu1 %v5850_v15 }
  0xaa   :  { %1730 = vmatmul.mubr.bf16.gmra.mrb[24].mxu0 %v5852_v18  ;;  %1888 = vmatpush1.bf16.msra.mxu1 %v5038_v20  ;;  %v5906_v20 = vld [vmem:[#allocation2 + $0x104] ss:$24 sps:$4 sm:$0xff]  }
  0xab   :  { %1775 = vmatpush1.bf16.msra.mxu0 %v5035_v19  ;;  %1889 = vmatprep.subr.bf16.mxu1 %v5046_v24  ;;  %v5109_v19 = vld [vmem:[#allocation5 + $0x32c] ss:$16 sps:$4 sm:$0xff]   ;;  %v5113_v24 = vld [vmem:[#allocation5 + $0x348] ss:$16 sps:$4 sm:$0xff]  }
  0xac   :  { %1776 = vmatprep.subr.bf16.mxu0 %v5043_v21  ;;  %1626 = vmatprep.mubr.bf16.mxu1 %v5854_v25  ;;  %v5107_v21 = vld [vmem:[#allocation5 + $0x328] ss:$16 sps:$4 sm:$0xff]  }
  0xad   :  { %1739 = vmatprep.mubr.bf16.mxu0 %v5856_v26 }
  0xae   :  { %1890 = vmatpush1.bf16.msra.mxu1 %v5044_v30  ;;  %v5118_v30 = vld [vmem:[#allocation5 + $0x36c] ss:$16 sps:$4 sm:$0xff]  }
  0xaf   :  { %1777 = vmatpush1.bf16.msra.mxu0 %v5041_v27  ;;  %1891 = vmatprep.subr.bf16.mxu1 %v5058_v32  ;;  %v5914_v27 = vld [vmem:[#allocation2 + $0x134] ss:$24 sps:$4 sm:$0xff]   ;;  %v5122_v32 = vld [vmem:[#allocation5 + $0x388] ss:$16 sps:$4 sm:$0xff]  }
  0xb0   :  { %1778 = vmatprep.subr.bf16.mxu0 %v5055_v31  ;;  %v5116_v31 = vld [vmem:[#allocation5 + $0x368] ss:$16 sps:$4 sm:$0xff]  }
  0xb1   :  { %1627 = vmatmul.mubr.bf16.gmra.mrb[28].mxu1 %v5862_v33 }
  0xb2   :  { %1740 = vmatmul.mubr.bf16.gmra.mrb[28].mxu0 %v5864_v36  ;;  %1892 = vmatpush1.bf16.msra.mxu1 %v5056_v38  ;;  %v5127_v38 = vld [vmem:[#allocation5 + $0x3ac] ss:$16 sps:$4 sm:$0xff]  }
  0xb3   :  { %1779 = vmatpush1.bf16.msra.mxu0 %v5053_v37  ;;  %1893 = vmatprep.subr.bf16.mxu1 %v5064_v42  ;;  %v5922_v37 = vld [vmem:[#allocation2 + $0x164] ss:$24 sps:$4 sm:$0xff]   ;;  %v5131_v42 = vld [vmem:[#allocation5 + $0x3c8] ss:$16 sps:$4 sm:$0xff]  }
  0xb4   :  { %1780 = vmatprep.subr.bf16.mxu0 %v5061_v39  ;;  %1782 = vmatprep.mubr.bf16.mxu0 %v5866_v43  ;;  %v5125_v39 = vld [vmem:[#allocation5 + $0x3a8] ss:$16 sps:$4 sm:$0xff]  }
  0xb5   :  { %1895 = vmatprep.mubr.bf16.mxu1 %v5781_v49  ;;  %v5079_v49 = vld [vmem:[#allocation5 + $0x24c] ss:$16 sps:$4 sm:$0xff]  }
  0xb6   :  { %1894 = vmatpush1.bf16.msra.mxu1 %v5062_v45  ;;  %v5187_v45 = vld [vmem:[#allocation7 + $0x4] ss:$8 sps:$4 sm:$0xff]  }
  0xb7   :  { %1781 = vmatpush1.bf16.msra.mxu0 %v5059_v44  ;;  %1976 = vmatprep.subr.bf16.mxu1 %v5070_v48  ;;  %v5136_v44 = vld [vmem:[#allocation5 + $0x3ec] ss:$16 sps:$4 sm:$0xff]   ;;  %v5185_v48 = vld [vmem:[#allocation7] ss:$8 sps:$4 sm:$0xff]  }
  0xb8   :  { %3078 = vmatprep.subr.bf16.mxu0 %v5187_v45  ;;  %v5214_v45 = vld [vmem:[#allocation7 + $0x94] ss:$8 sps:$4 sm:$0xff]  }
  0xb9   :  { %1896 = vmatmul.mubr.bf16.vlgmr.msra.gmra.mrb[32].mxu1 %v5784_v4  ;;  %v5080_v4 = vld [vmem:[#allocation5 + $0x268] ss:$16 sps:$4 sm:$0xff]  }
  0xba   :  { %1783 = vmatmul.mubr.bf16.vlgmr.msra.gmra.mrb[0].mxu0 %v5872_v50  ;;  %1977 = vmatpush1.bf16.msra.mxu1 %v5068_v51  ;;  %v5601_v51 = vld [vmem:[#allocation2 + $0xc] ss:$24 sps:$4 sm:$0xff]  }
  0xbb   :  { %1792 = vmatprep.mubr.bf16.mxu0 %v5874_v52  ;;  %1978 = vmatprep.subr.bf16.mxu1 %v5073_v55  ;;  %v5139_v55 = vld [vmem:[#allocation5 + $0x40c] ss:$16 sps:$4 sm:$0xff]  }
  0xbc   :  { %1905 = vmatprep.mubr.bf16.mxu1 %v5786_v10  ;;  %v5088_v10 = vld [vmem:[#allocation5 + $0x28c] ss:$16 sps:$4 sm:$0xff]   ;;  %3079 = vmatpush1.bf16.msra.mxu0 %v5185_v48  ;;  %v5212_v48 = vld [vmem:[#allocation7 + $0x90] ss:$8 sps:$4 sm:$0xff]  }
  0xbe   :  { %1979 = vmatpush1.bf16.msra.mxu1 %v5071_v56  ;;  %v5188_v56 = vld [vmem:[#allocation7 + $0x10] ss:$8 sps:$4 sm:$0xff]  }
  0xbf   :  { %1980 = vmatprep.subr.bf16.mxu1 %v5079_v49  ;;  %v5137_v49 = vld [vmem:[#allocation5 + $0x408] ss:$16 sps:$4 sm:$0xff]  }
  0xc1   :  { %1906 = vmatmul.mubr.bf16.gmra.mrb[36].mxu1 %v5790_v16  ;;  %v5089_v16 = vld [vmem:[#allocation5 + $0x2a8] ss:$16 sps:$4 sm:$0xff]  }
  0xc2   :  { %1793 = vmatmul.mubr.bf16.gmra.mrb[4].mxu0 %v5880_v57  ;;  %1981 = vmatpush1.bf16.msra.mxu1 %v5077_v58  ;;  %v5142_v58 = vld [vmem:[#allocation5 + $0x42c] ss:$16 sps:$4 sm:$0xff]  }
  0xc3   :  { %1802 = vmatprep.mubr.bf16.mxu0 %v5882_v61  ;;  %1982 = vmatprep.subr.bf16.mxu1 %v5082_v62  ;;  %v5193_v62 = vld [vmem:[#allocation7 + $0x24] ss:$8 sps:$4 sm:$0xff]  }
  0xc4   :  { %1915 = vmatprep.mubr.bf16.mxu1 %v5794_v22  ;;  %v5097_v22 = vld [vmem:[#allocation5 + $0x2cc] ss:$16 sps:$4 sm:$0xff]  }
  0xc6   :  { %1983 = vmatpush1.bf16.msra.mxu1 %v5080_v4  ;;  %v5191_v4 = vld [vmem:[#allocation7 + $0x20] ss:$8 sps:$4 sm:$0xff]  }
  0xc7   :  { %1984 = vmatprep.subr.bf16.mxu1 %v5088_v10  ;;  %v5602_v10 = vld [vmem:[#allocation2 + $0x8] ss:$24 sps:$4 sm:$0xff]  }
  0xc9   :  { %1916 = vmatmul.mubr.bf16.gmra.mrb[40].mxu1 %v5802_v28  ;;  %v5098_v28 = vld [vmem:[#allocation5 + $0x2e8] ss:$16 sps:$4 sm:$0xff]  }
  0xca   :  { %1803 = vmatmul.mubr.bf16.gmra.mrb[8].mxu0 %v5888_v63  ;;  %1985 = vmatpush1.bf16.msra.mxu1 %v5086_v0  ;;  %v5603_v0 = vld [vmem:[#allocation2 + $0x3c] ss:$24 sps:$4 sm:$0xff]  }
  0xcb   :  { %1812 = vmatprep.mubr.bf16.mxu0 %v5890_v3  ;;  %1986 = vmatprep.subr.bf16.mxu1 %v5091_v5  ;;  %v5145_v5 = vld [vmem:[#allocation5 + $0x44c] ss:$16 sps:$4 sm:$0xff]  }
  0xcc   :  { %1925 = vmatprep.mubr.bf16.mxu1 %v5806_v34  ;;  %v5106_v34 = vld [vmem:[#allocation5 + $0x30c] ss:$16 sps:$4 sm:$0xff]  }
  0xce   :  { %1987 = vmatpush1.bf16.msra.mxu1 %v5089_v16  ;;  %v5196_v16 = vld [vmem:[#allocation7 + $0x34] ss:$8 sps:$4 sm:$0xff]  }
  0xcf   :  { %1988 = vmatprep.subr.bf16.mxu1 %v5097_v22  ;;  %v5194_v22 = vld [vmem:[#allocation7 + $0x30] ss:$8 sps:$4 sm:$0xff]  }
  0xd1   :  { %1926 = vmatmul.mubr.bf16.gmra.mrb[44].mxu1 %v5814_v40  ;;  %v5115_v40 = vld [vmem:[#allocation5 + $0x34c] ss:$16 sps:$4 sm:$0xff]  }
  0xd2   :  { %1813 = vmatmul.mubr.bf16.gmra.mrb[12].mxu0 %v5896_v6  ;;  %1989 = vmatpush1.bf16.msra.mxu1 %v5095_v7  ;;  %v5143_v7 = vld [vmem:[#allocation5 + $0x448] ss:$16 sps:$4 sm:$0xff]  }
  0xd3   :  { %1822 = vmatprep.mubr.bf16.mxu0 %v5898_v11  ;;  %1990 = vmatprep.subr.bf16.mxu1 %v5100_v12  ;;  %v5148_v12 = vld [vmem:[#allocation5 + $0x46c] ss:$16 sps:$4 sm:$0xff]  }
  0xd4   :  { %1935 = vmatprep.mubr.bf16.mxu1 %v5818_v46  ;;  %v5912_v46 = vld [vmem:[#allocation2 + $0x100] ss:$24 sps:$4 sm:$0xff]  }
  0xd6   :  { %1991 = vmatpush1.bf16.msra.mxu1 %v5098_v28  ;;  %v5199_v28 = vld [vmem:[#allocation7 + $0x44] ss:$8 sps:$4 sm:$0xff]  }
  0xd7   :  { %1992 = vmatprep.subr.bf16.mxu1 %v5106_v34  ;;  %v5197_v34 = vld [vmem:[#allocation7 + $0x40] ss:$8 sps:$4 sm:$0xff]  }
  0xd9   :  { %1936 = vmatmul.mubr.bf16.gmra.mrb[48].mxu1 %v5826_v53  ;;  %v5124_v53 = vld [vmem:[#allocation5 + $0x38c] ss:$16 sps:$4 sm:$0xff]  }
  0xda   :  { %1823 = vmatmul.mubr.bf16.gmra.mrb[16].mxu0 %v5904_v13  ;;  %1993 = vmatpush1.bf16.msra.mxu1 %v5104_v14  ;;  %v5146_v14 = vld [vmem:[#allocation5 + $0x468] ss:$16 sps:$4 sm:$0xff]  }
  0xdb   :  { %1832 = vmatprep.mubr.bf16.mxu0 %v5906_v20  ;;  %1994 = vmatprep.subr.bf16.mxu1 %v5109_v19  ;;  %v5151_v19 = vld [vmem:[#allocation5 + $0x48c] ss:$16 sps:$4 sm:$0xff]  }
  0xdc   :  { %1945 = vmatprep.mubr.bf16.mxu1 %v5830_v59  ;;  %v5920_v59 = vld [vmem:[#allocation2 + $0x130] ss:$24 sps:$4 sm:$0xff]  }
  0xde   :  { %1995 = vmatpush1.bf16.msra.mxu1 %v5107_v21  ;;  %v5202_v21 = vld [vmem:[#allocation7 + $0x54] ss:$8 sps:$4 sm:$0xff]  }
  0xdf   :  { %1996 = vmatprep.subr.bf16.mxu1 %v5115_v40  ;;  %v5200_v40 = vld [vmem:[#allocation7 + $0x50] ss:$8 sps:$4 sm:$0xff]  }
  0xe1   :  { %1946 = vmatmul.mubr.bf16.gmra.mrb[52].mxu1 %v5838_v1  ;;  %v5133_v1 = vld [vmem:[#allocation5 + $0x3cc] ss:$16 sps:$4 sm:$0xff]  }
  0xe2   :  { %1833 = vmatmul.mubr.bf16.gmra.mrb[20].mxu0 %v5912_v46  ;;  %1997 = vmatpush1.bf16.msra.mxu1 %v5113_v24  ;;  %v5149_v24 = vld [vmem:[#allocation5 + $0x488] ss:$16 sps:$4 sm:$0xff]  }
  0xe3   :  { %1842 = vmatprep.mubr.bf16.mxu0 %v5914_v27  ;;  %1998 = vmatprep.subr.bf16.mxu1 %v5118_v30  ;;  %v5154_v30 = vld [vmem:[#allocation5 + $0x4ac] ss:$16 sps:$4 sm:$0xff]  }
  0xe4   :  { %1955 = vmatprep.mubr.bf16.mxu1 %v5842_v8  ;;  %v5928_v8 = vld [vmem:[#allocation2 + $0x160] ss:$24 sps:$4 sm:$0xff]  }
  0xe6   :  { %1999 = vmatpush1.bf16.msra.mxu1 %v5116_v31  ;;  %v5205_v31 = vld [vmem:[#allocation7 + $0x64] ss:$8 sps:$4 sm:$0xff]  }
  0xe7   :  { %2000 = vmatprep.subr.bf16.mxu1 %v5124_v53  ;;  %v5203_v53 = vld [vmem:[#allocation7 + $0x60] ss:$8 sps:$4 sm:$0xff]  }
  0xe9   :  { %1956 = vmatmul.mubr.bf16.gmra.mrb[56].mxu1 %v5850_v15  ;;  %v5134_v15 = vld [vmem:[#allocation5 + $0x3e8] ss:$16 sps:$4 sm:$0xff]  }
  0xea   :  { %1843 = vmatmul.mubr.bf16.gmra.mrb[24].mxu0 %v5920_v59  ;;  %2001 = vmatpush1.bf16.msra.mxu1 %v5122_v32  ;;  %v5208_v32 = vld [vmem:[#allocation7 + $0x74] ss:$8 sps:$4 sm:$0xff]  }
  0xeb   :  { %1852 = vmatprep.mubr.bf16.mxu0 %v5922_v37  ;;  %2002 = vmatprep.subr.bf16.mxu1 %v5127_v38  ;;  %v5206_v38 = vld [vmem:[#allocation7 + $0x70] ss:$8 sps:$4 sm:$0xff]  }
  0xec   :  { %1965 = vmatprep.mubr.bf16.mxu1 %v5854_v25  ;;  %v5190_v25 = vld [vmem:[#allocation7 + $0x14] ss:$8 sps:$4 sm:$0xff]  }
  0xed   :  { %3080 = vmatprep.subr.bf16.mxu0 %v5190_v25  ;;  %v5215_v25 = vld [vmem:[#allocation7 + $0xa0] ss:$8 sps:$4 sm:$0xff]  }
  0xee   :  { %2003 = vmatpush1.bf16.msra.mxu1 %v5125_v39  ;;  %3081 = vmatpush1.bf16.msra.mxu0 %v5188_v56  ;;  %v5155_v39 = vld [vmem:[#allocation5 + $0x4c8] ss:$16 sps:$4 sm:$0xff]   ;;  %v5220_v56 = vld [vmem:[#allocation7 + $0xb4] ss:$8 sps:$4 sm:$0xff]  }
  0xef   :  { %2004 = vmatprep.subr.bf16.mxu1 %v5133_v1  ;;  %3082 = vmatprep.subr.bf16.mxu0 %v5193_v62  ;;  %v5160_v1 = vld [vmem:[#allocation5 + $0x4ec] ss:$16 sps:$4 sm:$0xff]  }
  0xf0   :  { %v5172_v62 = vld [vmem:[#allocation5 + $0x56c] ss:$16 sps:$4 sm:$0xff]  }
  0xf1   :  { %1966 = vmatmul.mubr.bf16.gmra.mrb[60].mxu1 %v5862_v33  ;;  %v5140_v33 = vld [vmem:[#allocation5 + $0x428] ss:$16 sps:$4 sm:$0xff]  }
  0xf2   :  { %1853 = vmatmul.mubr.bf16.gmra.mrb[28].mxu0 %v5928_v8  ;;  %2005 = vmatpush1.bf16.msra.mxu1 %v5131_v42  ;;  %v5211_v42 = vld [vmem:[#allocation7 + $0x84] ss:$8 sps:$4 sm:$0xff]  }
  0xf3   :  { %2008 = vmatprep.mubr.bf16.mxu1 %v5601_v51  ;;  %2006 = vmatprep.subr.bf16.mxu1 %v5136_v44  ;;  %v5209_v44 = vld [vmem:[#allocation7 + $0x80] ss:$8 sps:$4 sm:$0xff]   ;;  %v5166_v51 = vld [vmem:[#allocation5 + $0x52c] ss:$16 sps:$4 sm:$0xff]  }
  0xf4   :  { %3083 = vmatpush1.bf16.msra.mxu0 %v5191_v4  ;;  %v5223_v4 = vld [vmem:[#allocation7 + $0xc4] ss:$8 sps:$4 sm:$0xff]  }
  0xf5   :  { %3084 = vmatprep.subr.bf16.mxu0 %v5196_v16  ;;  %v5178_v16 = vld [vmem:[#allocation5 + $0x5ac] ss:$16 sps:$4 sm:$0xff]  }
  0xf6   :  { %2007 = vmatpush1.bf16.msra.mxu1 %v5134_v15  ;;  %v5161_v15 = vld [vmem:[#allocation5 + $0x508] ss:$16 sps:$4 sm:$0xff]  }
  0xf7   :  { %2089 = vmatprep.subr.bf16.mxu1 %v5139_v55  ;;  %v5217_v55 = vld [vmem:[#allocation7 + $0xa4] ss:$8 sps:$4 sm:$0xff]  }
  0xf8   :  { %3085 = vmatpush1.bf16.msra.mxu0 %v5194_v22  ;;  %v5229_v22 = vld [vmem:[#allocation7 + $0xe4] ss:$8 sps:$4 sm:$0xff]  }
  0xf9   :  { %2009 = vmatmul.mubr.bf16.vlgmr.msra.gmra.mrb[32].mxu1 %v5602_v10  ;;  %3086 = vmatprep.subr.bf16.mxu0 %v5199_v28  ;;  %v5170_v10 = vld [vmem:[#allocation5 + $0x568] ss:$16 sps:$4 sm:$0xff]  }
  0xfa   :  { %2090 = vmatpush1.bf16.msra.mxu1 %v5137_v49  ;;  %2018 = vmatprep.mubr.bf16.mxu1 %v5603_v0  ;;  %v5218_v49 = vld [vmem:[#allocation7 + $0xb0] ss:$8 sps:$4 sm:$0xff]  }
  0xfb   :  { %2091 = vmatprep.subr.bf16.mxu1 %v5142_v58  ;;  %v5167_v58 = vld [vmem:[#allocation5 + $0x548] ss:$16 sps:$4 sm:$0xff]  }
  0xfc   :  { %3087 = vmatpush1.bf16.msra.mxu0 %v5197_v34  ;;  %v5224_v0 = vld [vmem:[#allocation7 + $0xd0] ss:$8 sps:$4 sm:$0xff]  }
  0xfd   :  { %3088 = vmatprep.subr.bf16.mxu0 %v5202_v21  ;;  %v5179_v28 = vld [vmem:[#allocation5 + $0x5c8] ss:$16 sps:$4 sm:$0xff]  }
  0xfe   :  { %2092 = vmatpush1.bf16.msra.mxu1 %v5140_v33  ;;  %v5226_v33 = vld [vmem:[#allocation7 + $0xd4] ss:$8 sps:$4 sm:$0xff]   ;;  %v5230_v34 = vld [vmem:[#allocation7 + $0xf0] ss:$8 sps:$4 sm:$0xff]  }
  0xff   :  { %2093 = vmatprep.subr.bf16.mxu1 %v5145_v5  ;;  %v5173_v5 = vld [vmem:[#allocation5 + $0x588] ss:$16 sps:$4 sm:$0xff]  }
 0x100   :  { %3089 = vmatpush1.bf16.msra.mxu0 %v5200_v40 }
 0x101   :  { %2019 = vmatmul.mubr.bf16.gmra.mrb[36].mxu1 %v5792_v17  ;;  %3090 = vmatprep.subr.bf16.mxu0 %v5205_v31  ;;  %v5152_v17 = vld [vmem:[#allocation5 + $0x4a8] ss:$16 sps:$4 sm:$0xff]  }
 0x102   :  { %2094 = vmatpush1.bf16.msra.mxu1 %v5143_v7  ;;  %2028 = vmatprep.mubr.bf16.mxu1 %v5796_v23  ;;  %v5157_v23 = vld [vmem:[#allocation5 + $0x4cc] ss:$16 sps:$4 sm:$0xff]   ;;  %v5176_v7 = vld [vmem:[#allocation5 + $0x5a8] ss:$16 sps:$4 sm:$0xff]  }
 0x103   :  { %2095 = vmatprep.subr.bf16.mxu1 %v5148_v12  ;;  %v5232_v12 = vld [vmem:[#allocation7 + $0xf4] ss:$8 sps:$4 sm:$0xff]  }
 0x104   :  { %3091 = vmatpush1.bf16.msra.mxu0 %v5203_v53 }
 0x105   :  { %3092 = vmatprep.subr.bf16.mxu0 %v5208_v32 }
 0x106   :  { %2096 = vmatpush1.bf16.msra.mxu1 %v5146_v14  ;;  %v5184_v14 = vld [vmem:[#allocation5 + $0x5ec] ss:$16 sps:$4 sm:$0xff]  }
 0x107   :  { %2097 = vmatprep.subr.bf16.mxu1 %v5151_v19 }
 0x108   :  { %3093 = vmatpush1.bf16.msra.mxu0 %v5206_v38 }
 0x109   :  { %2029 = vmatmul.mubr.bf16.gmra.mrb[40].mxu1 %v5804_v29  ;;  %3094 = vmatprep.subr.bf16.mxu0 %v5211_v42  ;;  %v5158_v29 = vld [vmem:[#allocation5 + $0x4e8] ss:$16 sps:$4 sm:$0xff]  }
 0x10a   :  { %2098 = vmatpush1.bf16.msra.mxu1 %v5149_v24  ;;  %2038 = vmatprep.mubr.bf16.mxu1 %v5808_v35  ;;  %v5163_v35 = vld [vmem:[#allocation5 + $0x50c] ss:$16 sps:$4 sm:$0xff]  }
 0x10b   :  { %2099 = vmatprep.subr.bf16.mxu1 %v5154_v30  ;;  %v5235_v30 = vld [vmem:[#allocation7 + $0x104] ss:$8 sps:$4 sm:$0xff]  }
 0x10c   :  { %3095 = vmatpush1.bf16.msra.mxu0 %v5209_v44  ;;  %v6013_v44 = vld [vmem:[%s6808_s2] sm:$0xf] }
 0x10d   :  { %3096 = vmatprep.subr.bf16.mxu0 %v5214_v45 }
 0x10e   :  { %2100 = vmatpush1.bf16.msra.mxu1 %v5152_v17 }
 0x10f   :  { %2101 = vmatprep.subr.bf16.mxu1 %v5157_v23 }
 0x110   :  { %3097 = vmatpush1.bf16.msra.mxu0 %v5212_v48 }
 0x111   :  { %2039 = vmatmul.mubr.bf16.gmra.mrb[44].mxu1 %v5816_v41  ;;  %3098 = vmatprep.subr.bf16.mxu0 %v5217_v55  ;;  %v5164_v41 = vld [vmem:[#allocation5 + $0x528] ss:$16 sps:$4 sm:$0xff]  }
 0x112   :  { %2102 = vmatpush1.bf16.msra.mxu1 %v5155_v39  ;;  %2048 = vmatprep.mubr.bf16.mxu1 %v5820_v47  ;;  %v5169_v47 = vld [vmem:[#allocation5 + $0x54c] ss:$16 sps:$4 sm:$0xff]  }
 0x113   :  { %2103 = vmatprep.subr.bf16.mxu1 %v5160_v1 }
 0x114   :  { %3099 = vmatpush1.bf16.msra.mxu0 %v5215_v25 }
 0x115   :  { %3100 = vmatprep.subr.bf16.mxu0 %v5220_v56 }
 0x116   :  { %2104 = vmatpush1.bf16.msra.mxu1 %v5158_v29 }
 0x117   :  { %2105 = vmatprep.subr.bf16.mxu1 %v5163_v35 }
 0x118   :  { %3101 = vmatpush1.bf16.msra.mxu0 %v5218_v49 }
 0x119   :  { %2049 = vmatmul.mubr.bf16.gmra.mrb[48].mxu1 %v5828_v54  ;;  %v5221_v54 = vld [vmem:[#allocation7 + $0xc0] ss:$8 sps:$4 sm:$0xff]   ;;  %3102 = vmatprep.subr.bf16.mxu0 %v5223_v4 }
 0x11a   :  { %2106 = vmatpush1.bf16.msra.mxu1 %v5161_v15  ;;  %2058 = vmatprep.mubr.bf16.mxu1 %v5832_v60  ;;  %v5175_v60 = vld [vmem:[#allocation5 + $0x58c] ss:$16 sps:$4 sm:$0xff]  }
 0x11b   :  { %2107 = vmatprep.subr.bf16.mxu1 %v5166_v51 }
 0x11c   :  { %3103 = vmatpush1.bf16.msra.mxu0 %v5221_v54 }
 0x11d   :  { %3104 = vmatprep.subr.bf16.mxu0 %v5226_v33 }
 0x11e   :  { %2108 = vmatpush1.bf16.msra.mxu1 %v5164_v41 }
 0x11f   :  { %2109 = vmatprep.subr.bf16.mxu1 %v5169_v47 }
 0x120   :  { %3105 = vmatpush1.bf16.msra.mxu0 %v5224_v0 }
 0x121   :  { %2059 = vmatmul.mubr.bf16.gmra.mrb[52].mxu1 %v5840_v2  ;;  %v5227_v2 = vld [vmem:[#allocation7 + $0xe0] ss:$8 sps:$4 sm:$0xff]   ;;  %3106 = vmatprep.subr.bf16.mxu0 %v5229_v22 }
 0x122   :  { %2110 = vmatpush1.bf16.msra.mxu1 %v5167_v58  ;;  %2068 = vmatprep.mubr.bf16.mxu1 %v5844_v9  ;;  %v5181_v9 = vld [vmem:[#allocation5 + $0x5cc] ss:$16 sps:$4 sm:$0xff]  }
 0x123   :  { %2111 = vmatprep.subr.bf16.mxu1 %v5172_v62 }
 0x124   :  { %3107 = vmatpush1.bf16.msra.mxu0 %v5227_v2 }
 0x125   :  { %3108 = vmatprep.subr.bf16.mxu0 %v5232_v12 }
 0x126   :  { %2112 = vmatpush1.bf16.msra.mxu1 %v5170_v10 }
 0x127   :  { %2113 = vmatprep.subr.bf16.mxu1 %v5175_v60 }
 0x128   :  { %3109 = vmatpush1.bf16.msra.mxu0 %v5230_v34 }
 0x129   :  { %2069 = vmatmul.mubr.bf16.gmra.mrb[56].mxu1 %v5852_v18  ;;  %v5182_v18 = vld [vmem:[#allocation5 + $0x5e8] ss:$16 sps:$4 sm:$0xff]   ;;  %3191 = vmatprep.subr.bf16.mxu0 %v5235_v30 }
 0x12a   :  { %2114 = vmatpush1.bf16.msra.mxu1 %v5173_v5  ;;  %2078 = vmatprep.mubr.bf16.mxu1 %v5856_v26 }
 0x12b   :  { %2115 = vmatprep.subr.bf16.mxu1 %v5178_v16 }
 0x12e   :  { %2116 = vmatpush1.bf16.msra.mxu1 %v5176_v7 }
 0x12f   :  { %2117 = vmatprep.subr.bf16.mxu1 %v5181_v9 }
 0x131   :  { %2079 = vmatmul.mubr.bf16.gmra.mrb[60].mxu1 %v5864_v36 }
 0x132   :  { %2118 = vmatpush1.bf16.msra.mxu1 %v5179_v28  ;;  %2121 = vmatprep.mubr.bf16.mxu1 %v5866_v43 }
 0x133   :  { %2119 = vmatprep.subr.bf16.mxu1 %v5184_v14 }
 0x136   :  { %2120 = vmatpush1.bf16.msra.mxu1 %v5182_v18 }
 0x139   :  { %2122 = vmatmul.mubr.bf16.vlgmr.msra.gmra.mrb[32].mxu1 %v5872_v50 }
 0x13a   :  { %2131 = vmatprep.mubr.bf16.mxu1 %v5874_v52 }
 0x141   :  { %2132 = vmatmul.mubr.bf16.gmra.mrb[36].mxu1 %v5880_v57 }
 0x142   :  { %2141 = vmatprep.mubr.bf16.mxu1 %v5882_v61 }
 0x149   :  { %2142 = vmatmul.mubr.bf16.gmra.mrb[40].mxu1 %v5888_v63 }
 0x14a   :  { %2151 = vmatprep.mubr.bf16.mxu1 %v5890_v3 }
 0x14c   :  { %v1558_v26 = vpop.f32.mrb[0].mxu1 }
 0x14d   :  { %v1560_v36 = vpop.f32.mrb[1].mxu1 }
 0x14e   :  { %v1562_v19 = vpop.f32.mrb[2].mxu1 }
 0x14f   :  { %v1564_v21 = vpop.f32.mrb[3].mxu1 }
 0x151   :  { %2152 = vmatmul.mubr.bf16.gmra.mrb[44].mxu1 %v5896_v6 }
 0x152   :  { %2161 = vmatprep.mubr.bf16.mxu1 %v5898_v11 }
 0x154   :  { %v1568_v43 = vpop.f32.mrb[4].mxu1 }
 0x155   :  { %v5954_v50 = vpop.f32.mrb[5].mxu1 }
 0x156   :  { %v5956_v52 = vpop.f32.mrb[6].mxu1 }
 0x157   :  { %v5958_v57 = vpop.f32.mrb[7].mxu1 }
 0x159   :  { %2162 = vmatmul.mubr.bf16.gmra.mrb[48].mxu1 %v5904_v13 }
 0x15a   :  { %2171 = vmatprep.mubr.bf16.mxu1 %v5906_v20 }
 0x15c   :  { %v5962_v61 = vpop.f32.mrb[8].mxu1 }
 0x15d   :  { %v5964_v63 = vpop.f32.mrb[9].mxu1 }
 0x15e   :  { %v5966_v3 = vpop.f32.mrb[10].mxu1 }
 0x15f   :  { %v5968_v6 = vpop.f32.mrb[11].mxu1 }
 0x161   :  { %2172 = vmatmul.mubr.bf16.gmra.mrb[52].mxu1 %v5912_v46 }
 0x162   :  { %2181 = vmatprep.mubr.bf16.mxu1 %v5914_v27 }
 0x164   :  { %v5972_v11 = vpop.f32.mrb[12].mxu1 }
 0x165   :  { %v5974_v40 = vpop.f32.mrb[13].mxu1 }
 0x166   :  { %v5976_v24 = vpop.f32.mrb[14].mxu1 }
 0x167   :  { %v5978_v13 = vpop.f32.mrb[15].mxu1 }
 0x169   :  { %2182 = vmatmul.mubr.bf16.gmra.mrb[56].mxu1 %v5920_v59 }
 0x16a   :  { %2191 = vmatprep.mubr.bf16.mxu1 %v5922_v37  ;;  %v304_v37 = vlaneseq }
 0x16c   :  { %v5982_v20 = vpop.f32.mrb[16].mxu1  ;;  %v6005_v1 = vshrl.u32 %v304_v37, 7 }
 0x16d   :  { %v5984_v31 = vpop.f32.mrb[17].mxu1 }
 0x16e   :  { %v5986_v46 = vpop.f32.mrb[18].mxu1  ;;  %v310_v29 = vsub.s32 1, %v6005_v1 }
 0x16f   :  { %v5988_v27 = vpop.f32.mrb[19].mxu1 }
 0x170   :  { %v6032_v55 = vrot.slane %v6013_v44, %v310_v29 }
 0x171   :  { %2192 = vmatmul.mubr.bf16.gmra.mrb[60].mxu1 %v5928_v8  ;;  %v306_v8 = vsub.s32 0, %v6005_v1 }
 0x172   :  { %v1561_v41 = vadd.f32 %v1560_v36, %v6032_v55  ;;  %v1565_v62 = vadd.f32 %v1564_v21, %v6032_v55  ;;  %v1571_v7 = vadd.f32 %v5954_v50, %v6032_v55  ;;  %v1575_v14 = vadd.f32 %v5958_v57, %v6032_v55 }
 0x173   :  { %v6025_v15 = vrot.slane %v6013_v44, %v306_v8 }
 0x174   :  { %v5991_v53 = vpop.f32.mrb[20].mxu1 }
 0x175   :  { %v5993_v17 = vpop.f32.mrb[21].mxu1  ;;  %v1559_v25 = vadd.f32 %v1558_v26, %v6025_v15  ;;  %v1563_v56 = vadd.f32 %v1562_v19, %v6025_v15  ;;  %v1569_v2 = vadd.f32 %v1568_v43, %v6025_v15  ;;  %v1573_v12 = vadd.f32 %v5956_v52, %v6025_v15 }
 0x176   :  { %v5995_v23 = vpop.f32.mrb[22].mxu1  ;;  %v1579_v57 = vadd.f32 %v5962_v61, %v6025_v15  ;;  %v1585_v61 = vadd.f32 %v5968_v6, %v6032_v55 }
 0x177   :  { %v5997_v59 = vpop.f32.mrb[23].mxu1 }
 0x17c   :  { %v5999_v32 = vpop.f32.mrb[24].mxu1 }
 0x17d   :  { %v6001_v38 = vpop.f32.mrb[25].mxu1 }
 0x17e   :  { %v6003_v39 = vpop.f32.mrb[26].mxu1 }
 0x17f   :  { %v6007_v42 = vpop.f32.mrb[27].mxu1 }
 0x184   :  { %v6016_v35 = vpop.f32.mrb[28].mxu1 }
 0x185   :  { %v6018_v45 = vpop.f32.mrb[29].mxu1 }
 0x186   :  { %v6020_v48 = vpop.f32.mrb[30].mxu1 }
 0x187   :  { %v6027_v51 = vpop.f32.mrb[31].mxu1 }
 0x18d   :  { %v1784_v47 = vpop.f32.mrb[0].mxu0 }
 0x18e   :  { %v6037_v49 = vadd.f32 %v1784_v47, %v1559_v25  ;;  %v1786_v58 = vpop.f32.mrb[1].mxu0 }
 0x18f   :  { %v6040_v4 = vadd.f32 %v1786_v58, %v1561_v41  ;;  %v1788_v54 = vpop.f32.mrb[2].mxu0  ;;  %v1581_v41 = vadd.f32 %v5964_v63, %v6032_v55 }
 0x190   :  { %v4299_v10 = vmul.f32 -1.442695, %v6037_v49  ;;  %v6043_v60 = vadd.f32 %v1788_v54, %v1563_v56  ;;  %v1790_v33 = vpop.f32.mrb[3].mxu0 }
 0x191   :  { %v4300_v0 = vmul.f32 -1.442695, %v6040_v4  ;;  %v6046_v5 = vadd.f32 %v1790_v33, %v1565_v62  ;;  %v1583_v62 = vadd.f32 %v5966_v3, %v6025_v15 }
 0x192   :  { %5281 = vpow2.f32 %v4299_v10  ;;  %v4303_v16 = vmul.f32 -1.442695, %v6043_v60 }
 0x193   :  { %5283 = vpow2.f32 %v4300_v0  ;;  %v4304_v22 = vmul.f32 -1.442695, %v6046_v5 }
 0x194   :  { %5285 = vpow2.f32 %v4303_v16 }
 0x195   :  { %5287 = vpow2.f32 %v4304_v22  ;;  %v1794_v9 = vpop.f32.mrb[4].mxu0 }
 0x196   :  { %v6055_v28 = vadd.f32 %v1794_v9, %v1569_v2  ;;  %v1796_v34 = vpop.f32.mrb[5].mxu0 }
 0x197   :  { %v6059_v18 = vadd.f32 %v1796_v34, %v1571_v7  ;;  %v1798_v26 = vpop.f32.mrb[6].mxu0 }
 0x198   :  { %v4307_v36 = vmul.f32 -1.442695, %v6055_v28  ;;  %v6062_v19 = vadd.f32 %v1798_v26, %v1573_v12  ;;  %v1800_v21 = vpop.f32.mrb[7].mxu0 }
 0x199   :  { %v4308_v43 = vmul.f32 -1.442695, %v6059_v18  ;;  %v6065_v50 = vadd.f32 %v1800_v21, %v1575_v14 }
 0x19a   :  { %5289 = vpow2.f32 %v4307_v36  ;;  %v4311_v52 = vmul.f32 -1.442695, %v6062_v19  ;;  %v1589_v36 = vadd.f32 %v5972_v11, %v6025_v15  ;;  %v1595_v11 = vadd.f32 %v5978_v13, %v6032_v55 }
 0x19b   :  { %5291 = vpow2.f32 %v4308_v43  ;;  %v4312_v30 = vmul.f32 -1.442695, %v6065_v50  ;;  %v1591_v43 = vadd.f32 %v5974_v40, %v6032_v55 }
 0x19c   :  { %v5282_v37 = vpop.eup %5281  ;;  %5293 = vpow2.f32 %v4311_v52 }
 0x19d   :  { %v5284_v25 = vpop.eup %5283  ;;  %v2394_v47 = vadd.f32 1.0, %v5282_v37  ;;  %5295 = vpow2.f32 %v4312_v30  ;;  %v1804_v56 = vpop.f32.mrb[8].mxu0 }
 0x19e   :  { %v5286_v58 = vpop.eup %5285  ;;  %v2395_v54 = vadd.f32 1.0, %v5284_v25  ;;  %v6075_v10 = vadd.f32 %v1804_v56, %v1579_v57  ;;  %v1806_v33 = vpop.f32.mrb[9].mxu0  ;;  %v1593_v57 = vadd.f32 %v5976_v24, %v6025_v15 }
 0x19f   :  { %v5288_v0 = vpop.eup %5287  ;;  %5297 = vrcp.f32 %v2394_v47  ;;  %v2398_v16 = vadd.f32 1.0, %v5286_v58  ;;  %v6079_v22 = vadd.f32 %v1806_v33, %v1581_v41  ;;  %v1808_v63 = vpop.f32.mrb[10].mxu0 }
 0x1a0   :  { %5299 = vrcp.f32 %v2395_v54  ;;  %v2399_v2 = vadd.f32 1.0, %v5288_v0  ;;  %v4315_v7 = vmul.f32 -1.442695, %v6075_v10  ;;  %v6082_v9 = vadd.f32 %v1808_v63, %v1583_v62  ;;  %v1810_v3 = vpop.f32.mrb[11].mxu0 }
 0x1a1   :  { %5301 = vrcp.f32 %v2398_v16  ;;  %v4316_v12 = vmul.f32 -1.442695, %v6079_v22  ;;  %v6085_v34 = vadd.f32 %v1810_v3, %v1585_v61  ;;  %v1599_v3 = vadd.f32 %v5982_v20, %v6025_v15 }
 0x1a2   :  { %5303 = vrcp.f32 %v2399_v2  ;;  %v4319_v6 = vmul.f32 -1.442695, %v6082_v9 }
 0x1a3   :  { %5305 = vpow2.f32 %v4315_v7  ;;  %v4320_v14 = vmul.f32 -1.442695, %v6085_v34 }
 0x1a4   :  { %v5290_v26 = vpop.eup %5289  ;;  %5307 = vpow2.f32 %v4316_v12 }
 0x1a5   :  { %v5292_v21 = vpop.eup %5291  ;;  %v2402_v52 = vadd.f32 1.0, %v5290_v26  ;;  %5309 = vpow2.f32 %v4319_v6  ;;  %v1814_v30 = vpop.f32.mrb[12].mxu0 }
 0x1a6   :  { %v5294_v37 = vpop.eup %5293  ;;  %v2403_v25 = vadd.f32 1.0, %v5292_v21  ;;  %5311 = vpow2.f32 %v4320_v14  ;;  %v6095_v41 = vadd.f32 %v1814_v30, %v1589_v36  ;;  %v1816_v47 = vpop.f32.mrb[13].mxu0  ;;  %v1601_v14 = vadd.f32 %v5984_v31, %v6032_v55 }
 0x1a7   :  { %v5296_v56 = vpop.eup %5295  ;;  %5313 = vrcp.f32 %v2402_v52  ;;  %v2406_v58 = vadd.f32 1.0, %v5294_v37  ;;  %v6099_v62 = vadd.f32 %v1816_v47, %v1591_v43  ;;  %v1818_v40 = vpop.f32.mrb[14].mxu0  ;;  %v1603_v43 = vadd.f32 %v5986_v46, %v6025_v15 }
 0x1a8   :  { %5315 = vrcp.f32 %v2403_v25  ;;  %v2407_v54 = vadd.f32 1.0, %v5296_v56  ;;  %v4323_v33 = vmul.f32 -1.442695, %v6095_v41  ;;  %v6102_v0 = vadd.f32 %v1818_v40, %v1593_v57  ;;  %v1820_v24 = vpop.f32.mrb[15].mxu0 }
 0x1a9   :  { %v5298_v61 = vpop.eup %5297  ;;  %5317 = vrcp.f32 %v2406_v58  ;;  %v4324_v16 = vmul.f32 -1.442695, %v6099_v62  ;;  %v6105_v63 = vadd.f32 %v1820_v24, %v1595_v11  ;;  %v5233_v58 = vld [vmem:[#allocation7 + $0x100] ss:$8 sps:$4 sm:$0xff]  }
 0x1aa   :  { %v5300_v2 = vpop.eup %5299  ;;  %5319 = vrcp.f32 %v2407_v54  ;;  %v4327_v13 = vmul.f32 -1.442695, %v6102_v0  ;;  %v2586_v26 = vmul.f32 %v5298_v61, %v6037_v49  ;;  %v5238_v61 = vld [vmem:[#allocation7 + $0x114] ss:$8 sps:$4 sm:$0xff]  }
 0x1ab   :  { %v5302_v7 = vpop.eup %5301  ;;  %5321 = vpow2.f32 %v4323_v33  ;;  %v4328_v12 = vmul.f32 -1.442695, %v6105_v63  ;;  %v2587_v52 = vmul.f32 %v5300_v2, %v6040_v4 }
 0x1ac   :  { %v5304_v6 = vpop.eup %5303  ;;  %v2590_v36 = vmul.f32 %v5302_v7, %v6043_v60  ;;  %5323 = vpow2.f32 %v4324_v16  ;;  %v1605_v60 = vadd.f32 %v5988_v27, %v6032_v55 }
 0x1ad   :  { %v5306_v21 = vpop.eup %5305  ;;  %v2591_v20 = vmul.f32 %v5304_v6, %v6046_v5  ;;  %5325 = vpow2.f32 %v4327_v13  ;;  %v1824_v30 = vpop.f32.mrb[16].mxu0  ;;  %v1609_v6 = vadd.f32 %v5991_v53, %v6025_v15 }
 0x1ae   :  { %v5308_v37 = vpop.eup %5307  ;;  %v2650_v57 = vpack.c.bf16 %v2590_v36, %v2586_v26  ;;  %v2410_v25 = vadd.f32 1.0, %v5306_v21  ;;  %5327 = vpow2.f32 %v4328_v12  ;;  %v6119_v31 = vadd.f32 %v1824_v30, %v1599_v3  ;;  %v1826_v49 = vpop.f32.mrb[17].mxu0  ;;  %v5236_v36 = vld [vmem:[#allocation7 + $0x110] ss:$8 sps:$4 sm:$0xff]   ;;  %v5241_v30 = vld [vmem:[#allocation7 + $0x124] ss:$8 sps:$4 sm:$0xff]  }
 0x1af   :  { %v5310_v47 = vpop.eup %5309  ;;  %v2411_v56 = vadd.f32 1.0, %v5308_v37  ;;  %v6123_v11 = vadd.f32 %v1826_v49, %v1601_v14  ;;  %v1828_v46 = vpop.f32.mrb[18].mxu0  ;;  %v2651_v4 = vpack.c.bf16 %v2591_v20, %v2587_v52  ;;  %v1611_v14 = vadd.f32 %v5993_v17, %v6032_v55 }
 0x1b0   :  { %v5312_v5 = vpop.eup %5311  ;;  %5329 = vrcp.f32 %v2410_v25  ;;  %v2414_v40 = vadd.f32 1.0, %v5310_v47  ;;  %v4331_v54 = vmul.f32 -1.442695, %v6119_v31  ;;  %v6126_v33 = vadd.f32 %v1828_v46, %v1603_v43  ;;  %v1830_v24 = vpop.f32.mrb[19].mxu0 }
 0x1b1   :  { %v5314_v16 = vpop.eup %5313  ;;  %5331 = vrcp.f32 %v2411_v56  ;;  %v2415_v2 = vadd.f32 1.0, %v5312_v5  ;;  %v4332_v27 = vmul.f32 -1.442695, %v6123_v11  ;;  %v6129_v13 = vadd.f32 %v1830_v24, %v1605_v60  ;;  %3110 = vmatprep.mubr.bf16.mxu0 %v2651_v4  ;;  %v5244_v24 = vld [vmem:[#allocation7 + $0x134] ss:$8 sps:$4 sm:$0xff]  }
 0x1b2   :  { %v5316_v7 = vpop.eup %5315  ;;  %5333 = vrcp.f32 %v2414_v40  ;;  %v4335_v3 = vmul.f32 -1.442695, %v6126_v33  ;;  %3111 = vmatmul.mubr.bf16.vlgmr.msra.gmra.mrb[32].mxu0 %v2650_v57  ;;  %v1613_v43 = vadd.f32 %v5995_v23, %v6025_v15  ;;  %v2594_v52 = vmul.f32 %v5314_v16, %v6055_v28 }
 0x1b3   :  { %v5318_v12 = vpop.eup %5317  ;;  %5335 = vrcp.f32 %v2415_v2  ;;  %v4336_v26 = vmul.f32 -1.442695, %v6129_v13  ;;  %3192 = vmatpush1.bf16.msra.mxu0 %v5233_v58  ;;  %v1615_v17 = vadd.f32 %v5997_v59, %v6032_v55  ;;  %v2595_v37 = vmul.f32 %v5316_v7, %v6059_v18  ;;  %v5239_v18 = vld [vmem:[#allocation7 + $0x120] ss:$8 sps:$4 sm:$0xff]  }
 0x1b4   :  { %v5320_v21 = vpop.eup %5319  ;;  %v2598_v20 = vmul.f32 %v5318_v12, %v6062_v19  ;;  %5337 = vpow2.f32 %v4331_v54  ;;  %3193 = vmatprep.subr.bf16.mxu0 %v5238_v61 }
 0x1b5   :  { %v5322_v53 = vpop.eup %5321  ;;  %v2599_v57 = vmul.f32 %v5320_v21, %v6065_v50  ;;  %5339 = vpow2.f32 %v4332_v27  ;;  %v1834_v25 = vpop.f32.mrb[20].mxu0  ;;  %v1623_v21 = vadd.f32 %v6003_v39, %v6025_v15 }
 0x1b6   :  { %v5324_v49 = vpop.eup %5323  ;;  %v2418_v47 = vadd.f32 1.0, %v5322_v53  ;;  %5341 = vpow2.f32 %v4335_v3  ;;  %v6145_v23 = vadd.f32 %v1834_v25, %v1609_v6  ;;  %v1836_v28 = vpop.f32.mrb[21].mxu0  ;;  %v2654_v19 = vpack.c.bf16 %v2598_v20, %v2594_v52  ;;  %v5242_v6 = vld [vmem:[#allocation7 + $0x130] ss:$8 sps:$4 sm:$0xff]  }
 0x1b7   :  { %v5326_v60 = vpop.eup %5325  ;;  %v2419_v56 = vadd.f32 1.0, %v5324_v49  ;;  %5343 = vpow2.f32 %v4336_v26  ;;  %v6147_v46 = vadd.f32 %v1836_v28, %v1611_v14  ;;  %v1838_v4 = vpop.f32.mrb[22].mxu0  ;;  %v2655_v59 = vpack.c.bf16 %v2599_v57, %v2595_v37  ;;  %3194 = vmatpush1.bf16.msra.mxu0 %v5236_v36 }
 0x1b8   :  { %v5328_v58 = vpop.eup %5327  ;;  %5345 = vrcp.f32 %v2418_v47  ;;  %v2422_v50 = vadd.f32 1.0, %v5326_v60  ;;  %v4339_v5 = vmul.f32 -1.442695, %v6145_v23  ;;  %v6150_v40 = vadd.f32 %v1838_v4, %v1613_v43  ;;  %v1840_v54 = vpop.f32.mrb[23].mxu0  ;;  %3195 = vmatprep.subr.bf16.mxu0 %v5241_v30  ;;  %v5247_v43 = vld [vmem:[#allocation7 + $0x144] ss:$8 sps:$4 sm:$0xff]  }
 0x1b9   :  { %5347 = vrcp.f32 %v2419_v56  ;;  %v2423_v61 = vadd.f32 1.0, %v5328_v58  ;;  %v4340_v16 = vmul.f32 -1.442695, %v6147_v46  ;;  %v6153_v2 = vadd.f32 %v1840_v54, %v1615_v17  ;;  %3120 = vmatprep.mubr.bf16.mxu0 %v2655_v59  ;;  %v5245_v56 = vld [vmem:[#allocation7 + $0x140] ss:$8 sps:$4 sm:$0xff]  }
 0x1ba   :  { %v5330_v27 = vpop.eup %5329  ;;  %5349 = vrcp.f32 %v2422_v50  ;;  %v4343_v7 = vmul.f32 -1.442695, %v6150_v40  ;;  %3121 = vmatmul.mubr.bf16.gmra.mrb[36].mxu0 %v2654_v19  ;;  %v1619_v26 = vadd.f32 %v5999_v32, %v6025_v15  ;;  %v1621_v36 = vadd.f32 %v6001_v38, %v6032_v55  ;;  %v5250_v58 = vld [vmem:[#allocation7 + $0x154] ss:$8 sps:$4 sm:$0xff]  }
 0x1bb   :  { %v5332_v3 = vpop.eup %5331  ;;  %5351 = vrcp.f32 %v2423_v61  ;;  %v4344_v12 = vmul.f32 -1.442695, %v6153_v2  ;;  %3196 = vmatpush1.bf16.msra.mxu0 %v5239_v18  ;;  %v1625_v20 = vadd.f32 %v6007_v42, %v6032_v55  ;;  %v2602_v30 = vmul.f32 %v5330_v27, %v6075_v10 }
 0x1bc   :  { %v5334_v14 = vpop.eup %5333  ;;  %5353 = vpow2.f32 %v4339_v5  ;;  %3197 = vmatprep.subr.bf16.mxu0 %v5244_v24  ;;  %v2603_v37 = vmul.f32 %v5332_v3, %v6079_v22  ;;  %v1629_v27 = vadd.f32 %v6016_v35, %v6025_v15  ;;  %v5253_v35 = vld [vmem:[#allocation7 + $0x164] ss:$8 sps:$4 sm:$0xff]  }
 0x1bd   :  { %v5336_v52 = vpop.eup %5335  ;;  %v2606_v53 = vmul.f32 %v5334_v14, %v6082_v9  ;;  %5355 = vpow2.f32 %v4340_v16  ;;  %v1844_v17 = vpop.f32.mrb[24].mxu0  ;;  %v1633_v14 = vadd.f32 %v6020_v48, %v6025_v15 }
 0x1be   :  { %v5338_v32 = vpop.eup %5337  ;;  %v2607_v38 = vmul.f32 %v5336_v52, %v6085_v34  ;;  %5357 = vpow2.f32 %v4343_v7  ;;  %v6169_v39 = vadd.f32 %v1844_v17, %v1619_v26  ;;  %v1846_v57 = vpop.f32.mrb[25].mxu0  ;;  %v1631_v7 = vadd.f32 %v6018_v45, %v6032_v55 }
 0x1bf   :  { %v5340_v25 = vpop.eup %5339  ;;  %v2426_v49 = vadd.f32 1.0, %v5338_v32  ;;  %5359 = vpow2.f32 %v4344_v12  ;;  %v6171_v47 = vadd.f32 %v1846_v57, %v1621_v36  ;;  %v1848_v42 = vpop.f32.mrb[26].mxu0  ;;  %v2658_v10 = vpack.c.bf16 %v2606_v53, %v2602_v30  ;;  %3198 = vmatpush1.bf16.msra.mxu0 %v5242_v6  ;;  %v5248_v12 = vld [vmem:[#allocation7 + $0x150] ss:$8 sps:$4 sm:$0xff]  }
 0x1c0   :  { %v5342_v9 = vpop.eup %5341  ;;  %v2427_v28 = vadd.f32 1.0, %v5340_v25  ;;  %v6173_v19 = vadd.f32 %v1848_v42, %v1623_v21  ;;  %v1850_v60 = vpop.f32.mrb[27].mxu0  ;;  %v2659_v22 = vpack.c.bf16 %v2607_v38, %v2603_v37  ;;  %3199 = vmatprep.subr.bf16.mxu0 %v5247_v43  ;;  %v4347_v59 = vmul.f32 -1.442695, %v6169_v39  ;;  %v5256_v42 = vld [vmem:[#allocation7 + $0x174] ss:$8 sps:$4 sm:$0xff]  }
 0x1c1   :  { %v5344_v34 = vpop.eup %5343  ;;  %5361 = vrcp.f32 %v2426_v49  ;;  %v2430_v4 = vadd.f32 1.0, %v5342_v9  ;;  %v6176_v18 = vadd.f32 %v1850_v60, %v1625_v20  ;;  %v4348_v54 = vmul.f32 -1.442695, %v6171_v47 }
 0x1c2   :  { %v5346_v50 = vpop.eup %5345  ;;  %5363 = vrcp.f32 %v2427_v28  ;;  %v2431_v5 = vadd.f32 1.0, %v5344_v34  ;;  %3130 = vmatprep.mubr.bf16.mxu0 %v2659_v22  ;;  %v4351_v61 = vmul.f32 -1.442695, %v6173_v19  ;;  %v1635_v45 = vadd.f32 %v6027_v51, %v6032_v55  ;;  %v5251_v55 = vld [vmem:[#allocation7 + $0x160] ss:$8 sps:$4 sm:$0xff]  }
 0x1c3   :  { %v5348_v24 = vpop.eup %5347  ;;  %5365 = vrcp.f32 %v2430_v4  ;;  %3131 = vmatmul.mubr.bf16.gmra.mrb[40].mxu0 %v2658_v10  ;;  %v4352_v3 = vmul.f32 -1.442695, %v6176_v18  ;;  %v2610_v26 = vmul.f32 %v5346_v50, %v6095_v41  ;;  %v5254_v34 = vld [vmem:[#allocation7 + $0x170] ss:$8 sps:$4 sm:$0xff]  }
 0x1c4   :  { %v5350_v16 = vpop.eup %5349  ;;  %5367 = vrcp.f32 %v2431_v5  ;;  %3200 = vmatpush1.bf16.msra.mxu0 %v5245_v56  ;;  %v2611_v32 = vmul.f32 %v5348_v24, %v6099_v62 }
 0x1c5   :  { %v5352_v6 = vpop.eup %5351  ;;  %v2614_v36 = vmul.f32 %v5350_v16, %v6102_v0  ;;  %5369 = vpow2.f32 %v4347_v59  ;;  %v1854_v21 = vpop.f32.mrb[28].mxu0  ;;  %3201 = vmatprep.subr.bf16.mxu0 %v5250_v58  ;;  %v5259_v59 = vld [vmem:[#allocation7 + $0x184] ss:$8 sps:$4 sm:$0xff]  }
 0x1c6   :  { %v5354_v43 = vpop.eup %5353  ;;  %v2615_v52 = vmul.f32 %v5352_v6, %v6105_v63  ;;  %5371 = vpow2.f32 %v4348_v54  ;;  %v6192_v20 = vadd.f32 %v1854_v21, %v1629_v27  ;;  %v1856_v30 = vpop.f32.mrb[29].mxu0  ;;  %v5260_v21 = vld [vmem:[#allocation7 + $0x190] ss:$8 sps:$4 sm:$0xff]  }
 0x1c7   :  { %v5356_v53 = vpop.eup %5355  ;;  %v2434_v48 = vadd.f32 1.0, %v5354_v43  ;;  %5373 = vpow2.f32 %v4351_v61  ;;  %v6194_v15 = vadd.f32 %v1856_v30, %v1631_v7  ;;  %v1858_v41 = vpop.f32.mrb[30].mxu0  ;;  %v2662_v0 = vpack.c.bf16 %v2614_v36, %v2610_v26  ;;  %v5265_v43 = vld [vmem:[#allocation7 + $0x1a4] ss:$8 sps:$4 sm:$0xff]  }
 0x1c8   :  { %v5358_v17 = vpop.eup %5357  ;;  %v2435_v37 = vadd.f32 1.0, %v5356_v53  ;;  %5375 = vpow2.f32 %v4352_v3  ;;  %v6197_v38 = vadd.f32 %v1858_v41, %v1633_v14  ;;  %v1860_v51 = vpop.f32.mrb[31].mxu0  ;;  %3202 = vmatpush1.bf16.msra.mxu0 %v5248_v12  ;;  %v4355_v25 = vmul.f32 -1.442695, %v6192_v20  ;;  %v5257_v3 = vld [vmem:[#allocation7 + $0x180] ss:$8 sps:$4 sm:$0xff]  }
 0x1c9   :  { %v5360_v63 = vpop.eup %5359  ;;  %5377 = vrcp.f32 %v2434_v48  ;;  %v2438_v57 = vadd.f32 1.0, %v5358_v17  ;;  %v6200_v49 = vadd.f32 %v1860_v51, %v1635_v45  ;;  %3203 = vmatprep.subr.bf16.mxu0 %v5253_v35  ;;  %v4356_v62 = vmul.f32 -1.442695, %v6194_v15 }
 0x1ca   :  { %5379 = vrcp.f32 %v2435_v37  ;;  %v2439_v10 = vadd.f32 1.0, %v5360_v63  ;;  %v2663_v9 = vpack.c.bf16 %v2615_v52, %v2611_v32  ;;  %v4359_v60 = vmul.f32 -1.442695, %v6197_v38  ;;  %v5263_v37 = vld [vmem:[#allocation7 + $0x1a0] ss:$8 sps:$4 sm:$0xff]  }
 0x1cb   :  { %v5362_v28 = vpop.eup %5361  ;;  %5381 = vrcp.f32 %v2438_v57  ;;  %v4360_v56 = vmul.f32 -1.442695, %v6200_v49  ;;  %v5268_v57 = vld [vmem:[#allocation7 + $0x1b4] ss:$8 sps:$4 sm:$0xff]  }
 0x1cc   :  { %v5364_v22 = vpop.eup %5363  ;;  %5383 = vrcp.f32 %v2439_v10  ;;  %3140 = vmatprep.mubr.bf16.mxu0 %v2663_v9  ;;  %3204 = vmatpush1.bf16.msra.mxu0 %v5251_v55  ;;  %v2618_v50 = vmul.f32 %v5362_v28, %v6119_v31  ;;  %v5262_v31 = vld [vmem:[#allocation7 + $0x194] ss:$8 sps:$4 sm:$0xff]   ;;  %v5271_v10 = vld [vmem:[#allocation7 + $0x1c4] ss:$8 sps:$4 sm:$0xff]  }
 0x1cd   :  { %v5366_v4 = vpop.eup %5365  ;;  %5385 = vpow2.f32 %v4355_v25  ;;  %3141 = vmatmul.mubr.bf16.gmra.mrb[44].mxu0 %v2662_v0  ;;  %3205 = vmatprep.subr.bf16.mxu0 %v5256_v42  ;;  %v2619_v24 = vmul.f32 %v5364_v22, %v6123_v11 }
 0x1ce   :  { %v5368_v58 = vpop.eup %5367  ;;  %v2622_v5 = vmul.f32 %v5366_v4, %v6126_v33  ;;  %5387 = vpow2.f32 %v4356_v62 }
 0x1cf   :  { %v5370_v54 = vpop.eup %5369  ;;  %v2623_v61 = vmul.f32 %v5368_v58, %v6129_v13  ;;  %5389 = vpow2.f32 %v4359_v60 }
 0x1d0   :  { %v5372_v16 = vpop.eup %5371  ;;  %v2442_v27 = vadd.f32 1.0, %v5370_v54  ;;  %5391 = vpow2.f32 %v4360_v56  ;;  %v2666_v7 = vpack.c.bf16 %v2622_v5, %v2618_v50  ;;  %3206 = vmatpush1.bf16.msra.mxu0 %v5254_v34  ;;  %v5269_v34 = vld [vmem:[#allocation7 + $0x1c0] ss:$8 sps:$4 sm:$0xff]   ;;  %v5272_v5 = vld [vmem:[#allocation7 + $0x1d0] ss:$8 sps:$4 sm:$0xff]  }
 0x1d1   :  { %v5374_v12 = vpop.eup %5373  ;;  %v2443_v6 = vadd.f32 1.0, %v5372_v16  ;;  %v2667_v14 = vpack.c.bf16 %v2623_v61, %v2619_v24  ;;  %3207 = vmatprep.subr.bf16.mxu0 %v5259_v59  ;;  %v5274_v59 = vld [vmem:[#allocation7 + $0x1d4] ss:$8 sps:$4 sm:$0xff]  }
 0x1d2   :  { %v5376_v26 = vpop.eup %5375  ;;  %5393 = vrcp.f32 %v2442_v27  ;;  %v2446_v33 = vadd.f32 1.0, %v5374_v12  ;;  %v5275_v27 = vld [vmem:[#allocation7 + $0x1e0] ss:$8 sps:$4 sm:$0xff]  }
 0x1d3   :  { %v5378_v36 = vpop.eup %5377  ;;  %5395 = vrcp.f32 %v2443_v6  ;;  %v2447_v11 = vadd.f32 1.0, %v5376_v26  ;;  %3150 = vmatprep.mubr.bf16.mxu0 %v2667_v14  ;;  %v5278_v6 = vld [vmem:[#allocation7 + $0x1f0] ss:$8 sps:$4 sm:$0xff]  }
 0x1d4   :  { %v5380_v13 = vpop.eup %5379  ;;  %5397 = vrcp.f32 %v2446_v33  ;;  %3208 = vmatpush1.bf16.msra.mxu0 %v5257_v3  ;;  %v2626_v52 = vmul.f32 %v5378_v36, %v6145_v23  ;;  %v5280_v3 = vld [vmem:[#allocation7 + $0x1f4] ss:$8 sps:$4 sm:$0xff]  }
 0x1d5   :  { %v5382_v35 = vpop.eup %5381  ;;  %5399 = vrcp.f32 %v2447_v11  ;;  %3151 = vmatmul.mubr.bf16.gmra.mrb[48].mxu0 %v2666_v7  ;;  %3209 = vmatprep.subr.bf16.mxu0 %v5262_v31  ;;  %v2627_v48 = vmul.f32 %v5380_v13, %v6147_v46  ;;  %v5266_v46 = vld [vmem:[#allocation7 + $0x1b0] ss:$8 sps:$4 sm:$0xff]  }
 0x1d6   :  { %v5384_v45 = vpop.eup %5383  ;;  %v2630_v30 = vmul.f32 %v5382_v35, %v6150_v40 }
 0x1d7   :  { %v5386_v53 = vpop.eup %5385  ;;  %v2631_v41 = vmul.f32 %v5384_v45, %v6153_v2 }
 0x1d8   :  { %v5388_v0 = vpop.eup %5387  ;;  %v2450_v17 = vadd.f32 1.0, %v5386_v53  ;;  %v2670_v32 = vpack.c.bf16 %v2630_v30, %v2626_v52  ;;  %3210 = vmatpush1.bf16.msra.mxu0 %v5260_v21 }
 0x1d9   :  { %v5390_v51 = vpop.eup %5389  ;;  %v2451_v55 = vadd.f32 1.0, %v5388_v0  ;;  %v2671_v63 = vpack.c.bf16 %v2631_v41, %v2627_v48  ;;  %3211 = vmatprep.subr.bf16.mxu0 %v5265_v43 }
 0x1da   :  { %v5392_v25 = vpop.eup %5391  ;;  %5401 = vrcp.f32 %v2450_v17  ;;  %v2454_v23 = vadd.f32 1.0, %v5390_v51 }
 0x1db   :  { %5403 = vrcp.f32 %v2451_v55  ;;  %v2455_v40 = vadd.f32 1.0, %v5392_v25  ;;  %3160 = vmatprep.mubr.bf16.mxu0 %v2671_v63 }
 0x1dc   :  { %v5394_v42 = vpop.eup %5393  ;;  %5405 = vrcp.f32 %v2454_v23  ;;  %3212 = vmatpush1.bf16.msra.mxu0 %v5263_v37 }
 0x1dd   :  { %v5396_v2 = vpop.eup %5395  ;;  %5407 = vrcp.f32 %v2455_v40  ;;  %3161 = vmatmul.mubr.bf16.gmra.mrb[52].mxu0 %v2670_v32  ;;  %3213 = vmatprep.subr.bf16.mxu0 %v5268_v57  ;;  %v2634_v28 = vmul.f32 %v5394_v42, %v6169_v39  ;;  %v5277_v39 = vld [vmem:[#allocation7 + $0x1e4] ss:$8 sps:$4 sm:$0xff]  }
 0x1de   :  { %v5398_v62 = vpop.eup %5397  ;;  %v2635_v22 = vmul.f32 %v5396_v2, %v6171_v47 }
 0x1df   :  { %v5400_v9 = vpop.eup %5399  ;;  %v2638_v60 = vmul.f32 %v5398_v62, %v6173_v19 }
 0x1e0   :  { %v2639_v56 = vmul.f32 %v5400_v9, %v6176_v18  ;;  %3214 = vmatpush1.bf16.msra.mxu0 %v5266_v46 }
 0x1e1   :  { %v2674_v4 = vpack.c.bf16 %v2638_v60, %v2634_v28  ;;  %3215 = vmatprep.subr.bf16.mxu0 %v5271_v10 }
 0x1e2   :  { %v2675_v58 = vpack.c.bf16 %v2639_v56, %v2635_v22 }
 0x1e4   :  { %v5402_v50 = vpop.eup %5401  ;;  %3170 = vmatprep.mubr.bf16.mxu0 %v2675_v58  ;;  %3216 = vmatpush1.bf16.msra.mxu0 %v5269_v34 }
 0x1e5   :  { %v5404_v54 = vpop.eup %5403  ;;  %3171 = vmatmul.mubr.bf16.gmra.mrb[56].mxu0 %v2674_v4  ;;  %3217 = vmatprep.subr.bf16.mxu0 %v5274_v59  ;;  %v2642_v47 = vmul.f32 %v5402_v50, %v6192_v20  ;;  %v314_v20 = vsub.s32 2, %v6005_v1 }
 0x1e6   :  { %v5406_v24 = vpop.eup %5405  ;;  %v2643_v61 = vmul.f32 %v5404_v54, %v6194_v15 }
 0x1e7   :  { %v5408_v19 = vpop.eup %5407  ;;  %v2646_v18 = vmul.f32 %v5406_v24, %v6197_v38  ;;  %v318_v38 = vsub.s32 3, %v6005_v1  ;;  %v6224_v15 = vrot.slane %v6013_v44, %v314_v20 }
 0x1e8   :  { %v2647_v16 = vmul.f32 %v5408_v19, %v6200_v49  ;;  %3218 = vmatpush1.bf16.msra.mxu0 %v5272_v5 }
 0x1e9   :  { %v2678_v7 = vpack.c.bf16 %v2646_v18, %v2642_v47  ;;  %3219 = vmatprep.subr.bf16.mxu0 %v5277_v39  ;;  %v6227_v49 = vrot.slane %v6013_v44, %v318_v38 }
 0x1ea   :  { %v2679_v12 = vpack.c.bf16 %v2647_v16, %v2643_v61 }
 0x1ec   :  { %3180 = vmatprep.mubr.bf16.mxu0 %v2679_v12  ;;  %3220 = vmatpush1.bf16.msra.mxu0 %v5275_v27 }
 0x1ed   :  { %3181 = vmatmul.mubr.bf16.gmra.mrb[60].mxu0 %v2678_v7  ;;  %3221 = vmatprep.subr.bf16.mxu0 %v5280_v3 }
 0x1f0   :  { %3222 = vmatpush1.bf16.msra.mxu0 %v5278_v6 }
 0x20c   :  { %v2123_v14 = vpop.f32.mrb[32].mxu1 }
 0x20d   :  { %v6230_v31 = vadd.f32 %v2123_v14, %v6224_v15  ;;  %v2125_v26 = vpop.f32.mrb[33].mxu1 }
 0x20e   :  { %v6233_v33 = vadd.f32 %v2125_v26, %v6227_v49  ;;  %v2127_v36 = vpop.f32.mrb[34].mxu1 }
 0x20f   :  { %v4301_v11 = vmul.f32 -1.442695, %v6230_v31  ;;  %v6237_v13 = vadd.f32 %v2127_v36, %v6224_v15  ;;  %v2129_v21 = vpop.f32.mrb[35].mxu1 }
 0x210   :  { %v4302_v35 = vmul.f32 -1.442695, %v6233_v33  ;;  %v6241_v44 = vadd.f32 %v2129_v21, %v6227_v49 }
 0x211   :  { %5409 = vpow2.f32 %v4301_v11  ;;  %v4305_v43 = vmul.f32 -1.442695, %v6237_v13 }
 0x212   :  { %5411 = vpow2.f32 %v4302_v35  ;;  %v4306_v45 = vmul.f32 -1.442695, %v6241_v44 }
 0x213   :  { %5413 = vpow2.f32 %v4305_v43 }
 0x214   :  { %5415 = vpow2.f32 %v4306_v45  ;;  %v2133_v52 = vpop.f32.mrb[36].mxu1 }
 0x215   :  { %v6246_v30 = vadd.f32 %v2133_v52, %v6224_v15  ;;  %v2135_v53 = vpop.f32.mrb[37].mxu1 }
 0x216   :  { %v6249_v48 = vadd.f32 %v2135_v53, %v6227_v49  ;;  %v2137_v41 = vpop.f32.mrb[38].mxu1 }
 0x217   :  { %v4309_v0 = vmul.f32 -1.442695, %v6246_v30  ;;  %v6253_v17 = vadd.f32 %v2137_v41, %v6224_v15  ;;  %v2139_v32 = vpop.f32.mrb[39].mxu1 }
 0x218   :  { %v4310_v37 = vmul.f32 -1.442695, %v6249_v48  ;;  %v6257_v51 = vadd.f32 %v2139_v32, %v6227_v49 }
 0x219   :  { %5417 = vpow2.f32 %v4309_v0  ;;  %v4313_v55 = vmul.f32 -1.442695, %v6253_v17 }
 0x21a   :  { %5419 = vpow2.f32 %v4310_v37  ;;  %v4314_v63 = vmul.f32 -1.442695, %v6257_v51 }
 0x21b   :  { %v5410_v57 = vpop.eup %5409  ;;  %5421 = vpow2.f32 %v4313_v55 }
 0x21c   :  { %v5412_v25 = vpop.eup %5411  ;;  %v2396_v23 = vadd.f32 1.0, %v5410_v57  ;;  %5423 = vpow2.f32 %v4314_v63  ;;  %v2143_v40 = vpop.f32.mrb[40].mxu1 }
 0x21d   :  { %v5414_v42 = vpop.eup %5413  ;;  %v2397_v46 = vadd.f32 1.0, %v5412_v25  ;;  %v6262_v2 = vadd.f32 %v2143_v40, %v6224_v15  ;;  %v2145_v10 = vpop.f32.mrb[41].mxu1 }
 0x21e   :  { %v5416_v62 = vpop.eup %5415  ;;  %5425 = vrcp.f32 %v2396_v23  ;;  %v2400_v9 = vadd.f32 1.0, %v5414_v42  ;;  %v6265_v28 = vadd.f32 %v2145_v10, %v6227_v49  ;;  %v2147_v60 = vpop.f32.mrb[42].mxu1 }
 0x21f   :  { %5427 = vrcp.f32 %v2397_v46  ;;  %v2401_v22 = vadd.f32 1.0, %v5416_v62  ;;  %v4317_v56 = vmul.f32 -1.442695, %v6262_v2  ;;  %v6269_v34 = vadd.f32 %v2147_v60, %v6224_v15  ;;  %v2149_v4 = vpop.f32.mrb[43].mxu1 }
 0x220   :  { %5429 = vrcp.f32 %v2400_v9  ;;  %v4318_v59 = vmul.f32 -1.442695, %v6265_v28  ;;  %v6273_v58 = vadd.f32 %v2149_v4, %v6227_v49 }
 0x221   :  { %5431 = vrcp.f32 %v2401_v22  ;;  %v4321_v50 = vmul.f32 -1.442695, %v6269_v34 }
 0x222   :  { %5433 = vpow2.f32 %v4317_v56  ;;  %v4322_v5 = vmul.f32 -1.442695, %v6273_v58 }
 0x223   :  { %v5418_v54 = vpop.eup %5417  ;;  %5435 = vpow2.f32 %v4318_v59 }
 0x224   :  { %v5420_v39 = vpop.eup %5419  ;;  %v2404_v24 = vadd.f32 1.0, %v5418_v54  ;;  %5437 = vpow2.f32 %v4321_v50  ;;  %v2153_v19 = vpop.f32.mrb[44].mxu1 }
 0x225   :  { %v5422_v47 = vpop.eup %5421  ;;  %v2405_v18 = vadd.f32 1.0, %v5420_v39  ;;  %5439 = vpow2.f32 %v4322_v5  ;;  %v6278_v61 = vadd.f32 %v2153_v19, %v6224_v15  ;;  %v2155_v16 = vpop.f32.mrb[45].mxu1 }
 0x226   :  { %v5424_v27 = vpop.eup %5423  ;;  %5441 = vrcp.f32 %v2404_v24  ;;  %v2408_v7 = vadd.f32 1.0, %v5422_v47  ;;  %v6281_v3 = vadd.f32 %v2155_v16, %v6227_v49  ;;  %v2157_v12 = vpop.f32.mrb[46].mxu1 }
 0x227   :  { %5443 = vrcp.f32 %v2405_v18  ;;  %v2409_v6 = vadd.f32 1.0, %v5424_v27  ;;  %v4325_v20 = vmul.f32 -1.442695, %v6278_v61  ;;  %v6285_v38 = vadd.f32 %v2157_v12, %v6224_v15  ;;  %v2159_v14 = vpop.f32.mrb[47].mxu1 }
 0x228   :  { %v5426_v26 = vpop.eup %5425  ;;  %5445 = vrcp.f32 %v2408_v7  ;;  %v4326_v36 = vmul.f32 -1.442695, %v6281_v3  ;;  %v6289_v11 = vadd.f32 %v2159_v14, %v6227_v49 }
 0x229   :  { %v5428_v21 = vpop.eup %5427  ;;  %5447 = vrcp.f32 %v2409_v6  ;;  %v4329_v35 = vmul.f32 -1.442695, %v6285_v38  ;;  %v2588_v53 = vmul.f32 %v5426_v26, %v6230_v31 }
 0x22a   :  { %v5430_v43 = vpop.eup %5429  ;;  %5449 = vpow2.f32 %v4325_v20  ;;  %v4330_v45 = vmul.f32 -1.442695, %v6289_v11  ;;  %v2589_v32 = vmul.f32 %v5428_v21, %v6233_v33 }
 0x22b   :  { %v5432_v52 = vpop.eup %5431  ;;  %v2592_v41 = vmul.f32 %v5430_v43, %v6237_v13  ;;  %5451 = vpow2.f32 %v4326_v36 }
 0x22c   :  { %v5434_v0 = vpop.eup %5433  ;;  %v2593_v37 = vmul.f32 %v5432_v52, %v6241_v44  ;;  %5453 = vpow2.f32 %v4329_v35  ;;  %v2163_v55 = vpop.f32.mrb[48].mxu1 }
 0x22d   :  { %v5436_v63 = vpop.eup %5435  ;;  %v2652_v57 = vpack.c.bf16 %v2592_v41, %v2588_v53  ;;  %v2412_v25 = vadd.f32 1.0, %v5434_v0  ;;  %5455 = vpow2.f32 %v4330_v45  ;;  %v6298_v23 = vadd.f32 %v2163_v55, %v6224_v15  ;;  %v2165_v40 = vpop.f32.mrb[49].mxu1 }
 0x22e   :  { %v5438_v42 = vpop.eup %5437  ;;  %v2413_v31 = vadd.f32 1.0, %v5436_v63  ;;  %v6301_v13 = vadd.f32 %v2165_v40, %v6227_v49  ;;  %v2167_v46 = vpop.f32.mrb[50].mxu1  ;;  %v2653_v10 = vpack.c.bf16 %v2593_v37, %v2589_v32 }
 0x22f   :  { %v5440_v33 = vpop.eup %5439  ;;  %5457 = vrcp.f32 %v2412_v25  ;;  %v2416_v44 = vadd.f32 1.0, %v5438_v42  ;;  %v4333_v62 = vmul.f32 -1.442695, %v6298_v23  ;;  %v6305_v9 = vadd.f32 %v2167_v46, %v6224_v15  ;;  %v2169_v60 = vpop.f32.mrb[51].mxu1 }
 0x230   :  { %v5442_v22 = vpop.eup %5441  ;;  %5459 = vrcp.f32 %v2413_v31  ;;  %v2417_v56 = vadd.f32 1.0, %v5440_v33  ;;  %v4334_v4 = vmul.f32 -1.442695, %v6301_v13  ;;  %v6309_v59 = vadd.f32 %v2169_v60, %v6227_v49  ;;  %3223 = vmatprep.mubr.bf16.mxu0 %v2653_v10 }
 0x231   :  { %v5444_v50 = vpop.eup %5443  ;;  %5461 = vrcp.f32 %v2416_v44  ;;  %v4337_v5 = vmul.f32 -1.442695, %v6305_v9  ;;  %3224 = vmatmul.mubr.bf16.vlgmr.msra.gmra.mrb[32].mxu0 %v2652_v57  ;;  %v2596_v19 = vmul.f32 %v5442_v22, %v6246_v30 }
 0x232   :  { %v5446_v54 = vpop.eup %5445  ;;  %5463 = vrcp.f32 %v2417_v56  ;;  %v4338_v39 = vmul.f32 -1.442695, %v6309_v59  ;;  %v2597_v16 = vmul.f32 %v5444_v50, %v6249_v48 }
 0x233   :  { %v5448_v24 = vpop.eup %5447  ;;  %v2600_v47 = vmul.f32 %v5446_v54, %v6253_v17  ;;  %5465 = vpow2.f32 %v4333_v62 }
 0x234   :  { %v5450_v18 = vpop.eup %5449  ;;  %v2601_v27 = vmul.f32 %v5448_v24, %v6257_v51  ;;  %5467 = vpow2.f32 %v4334_v4  ;;  %v2173_v7 = vpop.f32.mrb[52].mxu1 }
 0x235   :  { %v5452_v12 = vpop.eup %5451  ;;  %v2420_v6 = vadd.f32 1.0, %v5450_v18  ;;  %5469 = vpow2.f32 %v4337_v5  ;;  %v6318_v20 = vadd.f32 %v2173_v7, %v6224_v15  ;;  %v2175_v14 = vpop.f32.mrb[53].mxu1  ;;  %v2656_v26 = vpack.c.bf16 %v2600_v47, %v2596_v19 }
 0x236   :  { %v5454_v36 = vpop.eup %5453  ;;  %v2421_v30 = vadd.f32 1.0, %v5452_v12  ;;  %5471 = vpow2.f32 %v4338_v39  ;;  %v6321_v17 = vadd.f32 %v2175_v14, %v6227_v49  ;;  %v2177_v21 = vpop.f32.mrb[54].mxu1  ;;  %v2657_v48 = vpack.c.bf16 %v2601_v27, %v2597_v16 }
 0x237   :  { %v5456_v35 = vpop.eup %5455  ;;  %5473 = vrcp.f32 %v2420_v6  ;;  %v2424_v51 = vadd.f32 1.0, %v5454_v36  ;;  %v4341_v43 = vmul.f32 -1.442695, %v6318_v20  ;;  %v6325_v45 = vadd.f32 %v2177_v21, %v6224_v15  ;;  %v2179_v52 = vpop.f32.mrb[55].mxu1 }
 0x238   :  { %5475 = vrcp.f32 %v2421_v30  ;;  %v2425_v53 = vadd.f32 1.0, %v5456_v35  ;;  %v4342_v41 = vmul.f32 -1.442695, %v6321_v17  ;;  %v6329_v0 = vadd.f32 %v2179_v52, %v6227_v49  ;;  %3233 = vmatprep.mubr.bf16.mxu0 %v2657_v48 }
 0x239   :  { %v5458_v32 = vpop.eup %5457  ;;  %5477 = vrcp.f32 %v2424_v51  ;;  %v4345_v37 = vmul.f32 -1.442695, %v6325_v45  ;;  %3234 = vmatmul.mubr.bf16.gmra.mrb[36].mxu0 %v2656_v26 }
 0x23a   :  { %v5460_v55 = vpop.eup %5459  ;;  %5479 = vrcp.f32 %v2425_v53  ;;  %v4346_v63 = vmul.f32 -1.442695, %v6329_v0  ;;  %v2604_v40 = vmul.f32 %v5458_v32, %v6262_v2 }
 0x23b   :  { %v5462_v57 = vpop.eup %5461  ;;  %5481 = vpow2.f32 %v4341_v43  ;;  %v2605_v10 = vmul.f32 %v5460_v55, %v6265_v28 }
 0x23c   :  { %v5464_v25 = vpop.eup %5463  ;;  %v2608_v42 = vmul.f32 %v5462_v57, %v6269_v34  ;;  %5483 = vpow2.f32 %v4342_v41  ;;  %v2183_v31 = vpop.f32.mrb[56].mxu1 }
 0x23d   :  { %v5466_v46 = vpop.eup %5465  ;;  %v2609_v33 = vmul.f32 %v5464_v25, %v6273_v58  ;;  %5485 = vpow2.f32 %v4345_v37  ;;  %v6338_v44 = vadd.f32 %v2183_v31, %v6224_v15  ;;  %v2185_v62 = vpop.f32.mrb[57].mxu1 }
 0x23e   :  { %v5468_v60 = vpop.eup %5467  ;;  %v2428_v22 = vadd.f32 1.0, %v5466_v46  ;;  %5487 = vpow2.f32 %v4346_v63  ;;  %v6341_v56 = vadd.f32 %v2185_v62, %v6227_v49  ;;  %v2187_v2 = vpop.f32.mrb[58].mxu1  ;;  %v2660_v34 = vpack.c.bf16 %v2608_v42, %v2604_v40 }
 0x23f   :  { %v5470_v4 = vpop.eup %5469  ;;  %v2429_v50 = vadd.f32 1.0, %v5468_v60  ;;  %v6344_v5 = vadd.f32 %v2187_v2, %v6224_v15  ;;  %v2189_v28 = vpop.f32.mrb[59].mxu1  ;;  %v2661_v58 = vpack.c.bf16 %v2609_v33, %v2605_v10  ;;  %v4349_v24 = vmul.f32 -1.442695, %v6338_v44 }
 0x240   :  { %v5472_v54 = vpop.eup %5471  ;;  %5489 = vrcp.f32 %v2428_v22  ;;  %v2432_v39 = vadd.f32 1.0, %v5470_v4  ;;  %v6348_v19 = vadd.f32 %v2189_v28, %v6227_v49  ;;  %v4350_v16 = vmul.f32 -1.442695, %v6341_v56 }
 0x241   :  { %v5474_v47 = vpop.eup %5473  ;;  %5491 = vrcp.f32 %v2429_v50  ;;  %v2433_v18 = vadd.f32 1.0, %v5472_v54  ;;  %3243 = vmatprep.mubr.bf16.mxu0 %v2661_v58  ;;  %v4353_v7 = vmul.f32 -1.442695, %v6344_v5 }
 0x242   :  { %v5476_v27 = vpop.eup %5475  ;;  %5493 = vrcp.f32 %v2432_v39  ;;  %3244 = vmatmul.mubr.bf16.gmra.mrb[40].mxu0 %v2660_v34  ;;  %v4354_v6 = vmul.f32 -1.442695, %v6348_v19  ;;  %v2612_v26 = vmul.f32 %v5474_v47, %v6278_v61 }
 0x243   :  { %v5478_v12 = vpop.eup %5477  ;;  %5495 = vrcp.f32 %v2433_v18 }
 0x244   :  { %v5480_v14 = vpop.eup %5479  ;;  %v2616_v36 = vmul.f32 %v5478_v12, %v6285_v38  ;;  %5497 = vpow2.f32 %v4349_v24  ;;  %v2193_v30 = vpop.f32.mrb[60].mxu1  ;;  %v2613_v38 = vmul.f32 %v5476_v27, %v6281_v3 }
 0x245   :  { %v5482_v21 = vpop.eup %5481  ;;  %v2617_v48 = vmul.f32 %v5480_v14, %v6289_v11  ;;  %5499 = vpow2.f32 %v4350_v16  ;;  %v6357_v35 = vadd.f32 %v2193_v30, %v6224_v15  ;;  %v2195_v51 = vpop.f32.mrb[61].mxu1 }
 0x246   :  { %v5484_v43 = vpop.eup %5483  ;;  %v2436_v52 = vadd.f32 1.0, %v5482_v21  ;;  %5501 = vpow2.f32 %v4353_v7  ;;  %v6360_v53 = vadd.f32 %v2195_v51, %v6227_v49  ;;  %v2197_v41 = vpop.f32.mrb[62].mxu1  ;;  %v2664_v61 = vpack.c.bf16 %v2616_v36, %v2612_v26 }
 0x247   :  { %v5486_v32 = vpop.eup %5485  ;;  %v2437_v37 = vadd.f32 1.0, %v5484_v43  ;;  %5503 = vpow2.f32 %v4354_v6  ;;  %v6364_v11 = vadd.f32 %v2197_v41, %v6224_v15  ;;  %v2199_v55 = vpop.f32.mrb[63].mxu1  ;;  %v4357_v25 = vmul.f32 -1.442695, %v6357_v35 }
 0x248   :  { %v5488_v63 = vpop.eup %5487  ;;  %5505 = vrcp.f32 %v2436_v52  ;;  %v2440_v57 = vadd.f32 1.0, %v5486_v32  ;;  %v6368_v40 = vadd.f32 %v2199_v55, %v6227_v49  ;;  %v4358_v31 = vmul.f32 -1.442695, %v6360_v53 }
 0x249   :  { %5507 = vrcp.f32 %v2437_v37  ;;  %v2441_v42 = vadd.f32 1.0, %v5488_v63  ;;  %v2665_v46 = vpack.c.bf16 %v2617_v48, %v2613_v38  ;;  %v4361_v10 = vmul.f32 -1.442695, %v6364_v11 }
 0x24a   :  { %v5490_v3 = vpop.eup %5489  ;;  %5509 = vrcp.f32 %v2440_v57  ;;  %v4362_v33 = vmul.f32 -1.442695, %v6368_v40 }
 0x24b   :  { %v5492_v15 = vpop.eup %5491  ;;  %5511 = vrcp.f32 %v2441_v42  ;;  %3253 = vmatprep.mubr.bf16.mxu0 %v2665_v46  ;;  %v2620_v49 = vmul.f32 %v5490_v3, %v6298_v23 }
 0x24c   :  { %v5494_v62 = vpop.eup %5493  ;;  %5513 = vpow2.f32 %v4357_v25  ;;  %3254 = vmatmul.mubr.bf16.gmra.mrb[44].mxu0 %v2664_v61  ;;  %v2621_v34 = vmul.f32 %v5492_v15, %v6301_v13 }
 0x24d   :  { %v5496_v60 = vpop.eup %5495  ;;  %v2624_v22 = vmul.f32 %v5494_v62, %v6305_v9  ;;  %5515 = vpow2.f32 %v4358_v31 }
 0x24e   :  { %v5498_v2 = vpop.eup %5497  ;;  %v2625_v4 = vmul.f32 %v5496_v60, %v6309_v59  ;;  %5517 = vpow2.f32 %v4361_v10 }
 0x24f   :  { %v5500_v50 = vpop.eup %5499  ;;  %v2444_v28 = vadd.f32 1.0, %v5498_v2  ;;  %5519 = vpow2.f32 %v4362_v33  ;;  %v2668_v58 = vpack.c.bf16 %v2624_v22, %v2620_v49 }
 0x250   :  { %v5502_v54 = vpop.eup %5501  ;;  %v2445_v39 = vadd.f32 1.0, %v5500_v50  ;;  %v2669_v24 = vpack.c.bf16 %v2625_v4, %v2621_v34 }
 0x251   :  { %v5504_v47 = vpop.eup %5503  ;;  %5521 = vrcp.f32 %v2444_v28  ;;  %v2448_v18 = vadd.f32 1.0, %v5502_v54 }
 0x252   :  { %v5506_v23 = vpop.eup %5505  ;;  %5523 = vrcp.f32 %v2445_v39  ;;  %v2449_v9 = vadd.f32 1.0, %v5504_v47  ;;  %3263 = vmatprep.mubr.bf16.mxu0 %v2669_v24 }
 0x253   :  { %v5508_v16 = vpop.eup %5507  ;;  %5525 = vrcp.f32 %v2448_v18  ;;  %v2628_v27 = vmul.f32 %v5506_v23, %v6318_v20 }
 0x254   :  { %v5510_v13 = vpop.eup %5509  ;;  %5527 = vrcp.f32 %v2449_v9  ;;  %3264 = vmatmul.mubr.bf16.gmra.mrb[48].mxu0 %v2668_v58  ;;  %v2629_v6 = vmul.f32 %v5508_v16, %v6321_v17 }
 0x255   :  { %v5512_v59 = vpop.eup %5511  ;;  %v2632_v7 = vmul.f32 %v5510_v13, %v6325_v45 }
 0x256   :  { %v5514_v12 = vpop.eup %5513  ;;  %v2633_v14 = vmul.f32 %v5512_v59, %v6329_v0 }
 0x257   :  { %v5516_v26 = vpop.eup %5515  ;;  %v2452_v36 = vadd.f32 1.0, %v5514_v12  ;;  %v2672_v30 = vpack.c.bf16 %v2632_v7, %v2628_v27 }
 0x258   :  { %v5518_v21 = vpop.eup %5517  ;;  %v2453_v48 = vadd.f32 1.0, %v5516_v26  ;;  %v2673_v51 = vpack.c.bf16 %v2633_v14, %v2629_v6 }
 0x259   :  { %v5520_v43 = vpop.eup %5519  ;;  %5529 = vrcp.f32 %v2452_v36  ;;  %v2456_v52 = vadd.f32 1.0, %v5518_v21 }
 0x25a   :  { %5531 = vrcp.f32 %v2453_v48  ;;  %v2457_v41 = vadd.f32 1.0, %v5520_v43  ;;  %3273 = vmatprep.mubr.bf16.mxu0 %v2673_v51 }
 0x25b   :  { %v5522_v20 = vpop.eup %5521  ;;  %5533 = vrcp.f32 %v2456_v52 }
 0x25c   :  { %v5524_v45 = vpop.eup %5523  ;;  %5535 = vrcp.f32 %v2457_v41  ;;  %3274 = vmatmul.mubr.bf16.gmra.mrb[52].mxu0 %v2672_v30  ;;  %v2636_v0 = vmul.f32 %v5522_v20, %v6338_v44 }
 0x25d   :  { %v5526_v17 = vpop.eup %5525  ;;  %v2637_v38 = vmul.f32 %v5524_v45, %v6341_v56 }
 0x25e   :  { %v5528_v61 = vpop.eup %5527  ;;  %v2640_v32 = vmul.f32 %v5526_v17, %v6344_v5 }
 0x25f   :  { %v2641_v37 = vmul.f32 %v5528_v61, %v6348_v19  ;;  %v2746_v19 = vld [vmem:[%s6810_s4] sm:$0x3]  ;;  %s5711_s4 = smov [#allocation8]  }
 0x260   :  { %v2676_v55 = vpack.c.bf16 %v2640_v32, %v2636_v0  ;;  %v6394_v15 = vrot.slane %v2746_v19, %v310_v29  ;;  %v6428_v39 = vrot.slane %v2746_v19, %v306_v8  ;;  %s4046_s12 = sshll.u32 %s5711_s4, 4  ;;  %s4047_s12 = int_to_ptr.vmem [resolvable:$true] %s4046_s12 }
 0x261   :  { %v2677_v63 = vpack.c.bf16 %v2641_v37, %v2637_v38  ;;  %s5670_s13 = scalar_lea.vmem %s4047_s12, 4096  ;;  %p5675_p11 = scmp.lt.s32.totalorder %s4047_s12, %s4047_s12 }
 0x262   :  { %p5671_p10 = scmp.ne.s32.totalorder %s4047_s12, %s5670_s13  ;;  %p5676_p12 = scmp.lt.s32.totalorder %s5670_s13, %s5670_s13 }
 0x263   :  { %v5530_v57 = vpop.eup %5529  ;;  %3283 = vmatprep.mubr.bf16.mxu0 %v2677_v63 }
 0x264   :  { %v5532_v25 = vpop.eup %5531  ;;  %3284 = vmatmul.mubr.bf16.gmra.mrb[56].mxu0 %v2676_v55  ;;  %v2644_v46 = vmul.f32 %v5530_v57, %v6357_v35  ;;  %p5677_p13 = por %p5676_p12, %p5675_p11 }
 0x265   :  { %v5534_v42 = vpop.eup %5533  ;;  %v2645_v44 = vmul.f32 %v5532_v25, %v6360_v53 }
 0x266   :  { %v5536_v31 = vpop.eup %5535  ;;  %v2648_v3 = vmul.f32 %v5534_v42, %v6364_v11  ;;  %p5678_p0 = pnand %p5677_p13, %p5671_p10 }
 0x267   :  { %v2649_v5 = vmul.f32 %v5536_v31, %v6368_v40 }
 0x268   :  { %v2680_v10 = vpack.c.bf16 %v2648_v3, %v2644_v46 }
 0x269   :  { %v2681_v56 = vpack.c.bf16 %v2649_v5, %v2645_v44 }
 0x26b   :  { %3293 = vmatprep.mubr.bf16.mxu0 %v2681_v56 }
 0x26c   :  { %3294 = vmatmul.mubr.bf16.gmra.mrb[60].mxu0 %v2680_v10 }
 0x304   :  { %v6396_v33 = vpop.f32.mrb[32].mxu0 }
 0x305   :  { %v3227_v35 = vpop.f32.mrb[33].mxu0 }
 0x306   :  { %v6399_v53 = vadd.f32 %v3227_v35, %v6394_v15  ;;  %v6401_v11 = vpop.f32.mrb[34].mxu0 }
 0x307   :  { %v3231_v40 = vpop.f32.mrb[35].mxu0 }
 0x308   :  { %v6404_v62 = vadd.f32 %v3231_v40, %v6394_v15  ;;  %v3305_v60 = vsel %vm3304_vm0, %v6399_v53, -inf }
 0x309   :  { %3306 = vmax.xlane.f32.xlu0 %v3305_v60 }
 0x30a   :  { %v3308_v29 = vsel %vm3304_vm0, %v6404_v62, -inf }
 0x30c   :  { %v6408_v49 = vpop.f32.mrb[36].mxu0 }
 0x30d   :  { %v3237_v22 = vpop.f32.mrb[37].mxu0  ;;  %3309 = vmax.xlane.f32.xlu0 %v3308_v29 }
 0x30e   :  { %v6413_v2 = vadd.f32 %v3237_v22, %v6394_v15  ;;  %v6415_v34 = vpop.f32.mrb[38].mxu0 }
 0x30f   :  { %v3241_v4 = vpop.f32.mrb[39].mxu0 }
 0x310   :  { %v6418_v50 = vadd.f32 %v3241_v4, %v6394_v15  ;;  %v3311_v28 = vsel %vm3304_vm0, %v6413_v2, -inf }
 0x311   :  { %3312 = vmax.xlane.f32.xlu1 %v3311_v28 }
 0x312   :  { %v3314_v58 = vsel %vm3304_vm0, %v6418_v50, -inf }
 0x315   :  { %v6424_v54 = vpop.f32.mrb[40].mxu0  ;;  %3315 = vmax.xlane.f32.xlu1 %v3314_v58 }
 0x316   :  { %v3247_v24 = vpop.f32.mrb[41].mxu0 }
 0x317   :  { %v6431_v47 = vadd.f32 %v3247_v24, %v6394_v15  ;;  %v3249_v18 = vpop.f32.mrb[42].mxu0 }
 0x318   :  { %v6434_v23 = vadd.f32 %v3249_v18, %v6428_v39  ;;  %v3251_v9 = vpop.f32.mrb[43].mxu0 }
 0x319   :  { %v6437_v16 = vadd.f32 %v3251_v9, %v6394_v15  ;;  %v3317_v13 = vsel %vm3304_vm0, %v6431_v47, -inf }
 0x31a   :  { %3318 = vmax.xlane.f32.xlu0 %v3317_v13 }
 0x31b   :  { %v3320_v1 = vsel %vm3304_vm0, %v6437_v16, -inf }
 0x31c   :  { %3321 = vmax.xlane.f32.xlu1 %v3320_v1 }
 0x31f   :  { %v3255_v8 = vpop.f32.mrb[44].mxu0 }
 0x320   :  { %v6444_v59 = vadd.f32 %v3255_v8, %v6428_v39  ;;  %v3257_v27 = vpop.f32.mrb[45].mxu0 }
 0x321   :  { %v6447_v7 = vadd.f32 %v3257_v27, %v6394_v15  ;;  %v3259_v12 = vpop.f32.mrb[46].mxu0 }
 0x322   :  { %v6450_v6 = vadd.f32 %v3259_v12, %v6428_v39  ;;  %v3261_v14 = vpop.f32.mrb[47].mxu0 }
 0x323   :  { %v6453_v26 = vadd.f32 %v3261_v14, %v6394_v15  ;;  %v3323_v36 = vsel %vm3304_vm0, %v6447_v7, -inf }
 0x324   :  { %3324 = vmax.xlane.f32.xlu0 %v3323_v36 }
 0x325   :  { %v3326_v30 = vsel %vm3304_vm0, %v6453_v26, -inf }
 0x326   :  { %3327 = vmax.xlane.f32.xlu1 %v3326_v30 }
 0x327   :  { %v3265_v21 = vpop.f32.mrb[48].mxu0 }
 0x328   :  { %v6460_v48 = vadd.f32 %v3265_v21, %v6428_v39  ;;  %v3267_v51 = vpop.f32.mrb[49].mxu0 }
 0x329   :  { %v6463_v43 = vadd.f32 %v3267_v51, %v6394_v15  ;;  %v3269_v52 = vpop.f32.mrb[50].mxu0 }
 0x32a   :  { %v6466_v41 = vadd.f32 %v3269_v52, %v6428_v39  ;;  %v3271_v20 = vpop.f32.mrb[51].mxu0 }
 0x32b   :  { %v6469_v45 = vadd.f32 %v3271_v20, %v6394_v15  ;;  %v3329_v17 = vsel %vm3304_vm0, %v6463_v43, -inf }
 0x32c   :  { %3330 = vmax.xlane.f32.xlu0 %v3329_v17 }
 0x32d   :  { %v3332_v61 = vsel %vm3304_vm0, %v6469_v45, -inf }
 0x32e   :  { %3333 = vmax.xlane.f32.xlu1 %v3332_v61 }
 0x32f   :  { %v3275_v0 = vpop.f32.mrb[52].mxu0 }
 0x330   :  { %v6476_v32 = vadd.f32 %v3275_v0, %v6428_v39  ;;  %v3277_v38 = vpop.f32.mrb[53].mxu0 }
 0x331   :  { %v6479_v37 = vadd.f32 %v3277_v38, %v6394_v15  ;;  %v3279_v55 = vpop.f32.mrb[54].mxu0 }
 0x332   :  { %v6482_v63 = vadd.f32 %v3279_v55, %v6428_v39  ;;  %v3281_v57 = vpop.f32.mrb[55].mxu0 }
 0x333   :  { %v6485_v25 = vadd.f32 %v3281_v57, %v6394_v15  ;;  %v3335_v42 = vsel %vm3304_vm0, %v6479_v37, -inf }
 0x334   :  { %3336 = vmax.xlane.f32.xlu0 %v3335_v42 }
 0x335   :  { %v3338_v31 = vsel %vm3304_vm0, %v6485_v25, -inf }
 0x336   :  { %3339 = vmax.xlane.f32.xlu1 %v3338_v31 }
 0x337   :  { %v3285_v46 = vpop.f32.mrb[56].mxu0 }
 0x338   :  { %v6492_v3 = vadd.f32 %v3285_v46, %v6428_v39  ;;  %v3287_v44 = vpop.f32.mrb[57].mxu0 }
 0x339   :  { %v6495_v5 = vadd.f32 %v3287_v44, %v6394_v15  ;;  %v3289_v10 = vpop.f32.mrb[58].mxu0 }
 0x33a   :  { %v6498_v56 = vadd.f32 %v3289_v10, %v6428_v39  ;;  %v3291_v19 = vpop.f32.mrb[59].mxu0 }
 0x33b   :  { %v6501_v35 = vadd.f32 %v3291_v19, %v6394_v15  ;;  %v3341_v40 = vsel %vm3304_vm0, %v6495_v5, -inf }
 0x33c   :  { %3342 = vmax.xlane.f32.xlu0 %v3341_v40 }
 0x33d   :  { %v3344_v60 = vsel %vm3304_vm0, %v6501_v35, -inf }
 0x33e   :  { %3345 = vmax.xlane.f32.xlu1 %v3344_v60 }
 0x33f   :  { %v3295_v29 = vpop.f32.mrb[60].mxu0 }
 0x340   :  { %v6508_v22 = vadd.f32 %v3295_v29, %v6428_v39  ;;  %v3297_v4 = vpop.f32.mrb[61].mxu0 }
 0x341   :  { %v6511_v28 = vadd.f32 %v3297_v4, %v6394_v15  ;;  %v3299_v58 = vpop.f32.mrb[62].mxu0 }
 0x342   :  { %v6514_v24 = vadd.f32 %v3299_v58, %v6428_v39  ;;  %v3301_v18 = vpop.f32.mrb[63].mxu0 }
 0x343   :  { %v6517_v9 = vadd.f32 %v3301_v18, %v6394_v15  ;;  %v3347_v13 = vsel %vm3304_vm0, %v6511_v28, -inf }
 0x344   :  { %3348 = vmax.xlane.f32.xlu0 %v3347_v13 }
 0x345   :  { %v3350_v1 = vsel %vm3304_vm0, %v6517_v9, -inf }
 0x346   :  { %3351 = vmax.xlane.f32.xlu1 %v3350_v1 }
 0x396   :  { %v3307_v8 = vpop.xlane.xlu0 %3306 }
 0x397   :  { %v3353_v27 = vsub.f32 %v6399_v53, %v3307_v8 }
 0x399   :  { %v3369_v12 = vmul.f32 1.442695, %v3353_v27 }
 0x39a   :  { %v3310_v14 = vpop.xlane.xlu0 %3309 }
 0x39b   :  { %5537 = vpow2.f32 %v3369_v12  ;;  %v3354_v36 = vsub.f32 %v6404_v62, %v3310_v14 }
 0x39d   :  { %v3371_v30 = vmul.f32 1.442695, %v3354_v36 }
 0x39e   :  { %v3313_v21 = vpop.xlane.xlu1 %3312 }
 0x39f   :  { %5539 = vpow2.f32 %v3371_v30  ;;  %v3355_v15 = vsub.f32 %v6413_v2, %v3313_v21 }
 0x3a1   :  { %v3373_v51 = vmul.f32 1.442695, %v3355_v15 }
 0x3a2   :  { %v3316_v52 = vpop.xlane.xlu1 %3315 }
 0x3a3   :  { %5541 = vpow2.f32 %v3373_v51  ;;  %v3356_v20 = vsub.f32 %v6418_v50, %v3316_v52  ;;  %v5708_v52 = vmov 0  }
 0x3a4   :  { %4761 = vset.pattern.permute.xlu0 %v5708_v52 }
 0x3a5   :  { %v6527_v17 = vpop.eup %5537  ;;  %v3375_v61 = vmul.f32 1.442695, %v3356_v20 }
 0x3a6   :  { %v3401_v53 = vsel %vm3304_vm0, %v6527_v17, 0.0 }
 0x3a7   :  { %5543 = vpow2.f32 %v3375_v61  ;;  %v3319_v0 = vpop.xlane.xlu0 %3318  ;;  %3402 = vadd.xlane.f32.xlu0 %v3401_v53 }
 0x3a8   :  { %v3357_v62 = vsub.f32 %v6431_v47, %v3319_v0 }
 0x3a9   :  { %v6532_v38 = vpop.eup %5539  ;;  %v3322_v55 = vpop.xlane.xlu1 %3321 }
 0x3aa   :  { %v3377_v2 = vmul.f32 1.442695, %v3357_v62  ;;  %v3358_v57 = vsub.f32 %v6437_v16, %v3322_v55  ;;  %v3404_v50 = vsel %vm3304_vm0, %v6532_v38, 0.0 }
 0x3ab   :  { %3405 = vadd.xlane.f32.xlu1 %v3404_v50 }
 0x3ac   :  { %5545 = vpow2.f32 %v3377_v2  ;;  %v3379_v42 = vmul.f32 1.442695, %v3358_v57 }
 0x3ad   :  { %v6537_v31 = vpop.eup %5541 }
 0x3ae   :  { %5547 = vpow2.f32 %v3379_v42  ;;  %v3407_v46 = vsel %vm3304_vm0, %v6537_v31, 0.0 }
 0x3af   :  { %3408 = vadd.xlane.f32.xlu0 %v3407_v46 }
 0x3b1   :  { %v6541_v47 = vpop.eup %5543  ;;  %v3325_v44 = vpop.xlane.xlu0 %3324 }
 0x3b2   :  { %v3359_v10 = vsub.f32 %v6447_v7, %v3325_v44  ;;  %v3410_v16 = vsel %vm3304_vm0, %v6541_v47, 0.0 }
 0x3b3   :  { %v3328_v19 = vpop.xlane.xlu1 %3327  ;;  %3411 = vadd.xlane.f32.xlu1 %v3410_v16 }
 0x3b4   :  { %v3381_v40 = vmul.f32 1.442695, %v3359_v10  ;;  %v3360_v60 = vsub.f32 %v6453_v26, %v3328_v19 }
 0x3b6   :  { %v6547_v29 = vpop.eup %5545  ;;  %5549 = vpow2.f32 %v3381_v40  ;;  %v3383_v4 = vmul.f32 1.442695, %v3360_v60 }
 0x3b7   :  { %v3413_v58 = vsel %vm3304_vm0, %v6547_v29, 0.0 }
 0x3b8   :  { %v6551_v18 = vpop.eup %5547  ;;  %5551 = vpow2.f32 %v3383_v4  ;;  %3414 = vadd.xlane.f32.xlu0 %v3413_v58 }
 0x3b9   :  { %v3331_v7 = vpop.xlane.xlu0 %3330  ;;  %v3416_v13 = vsel %vm3304_vm0, %v6551_v18, 0.0 }
 0x3ba   :  { %v3361_v1 = vsub.f32 %v6463_v43, %v3331_v7  ;;  %3417 = vadd.xlane.f32.xlu1 %v3416_v13  ;;  %v5707_v43 = vmov 1  }
 0x3bb   :  { %v3334_v8 = vpop.xlane.xlu1 %3333  ;;  %4762 = vset.pattern.permute.xlu1 %v5707_v43 }
 0x3bc   :  { %v3385_v26 = vmul.f32 1.442695, %v3361_v1  ;;  %v3362_v27 = vsub.f32 %v6469_v45, %v3334_v8 }
 0x3be   :  { %5553 = vpow2.f32 %v3385_v26  ;;  %v3387_v12 = vmul.f32 1.442695, %v3362_v27 }
 0x3c0   :  { %v6557_v14 = vpop.eup %5549  ;;  %5555 = vpow2.f32 %v3387_v12 }
 0x3c1   :  { %v3337_v36 = vpop.xlane.xlu0 %3336  ;;  %v3419_v30 = vsel %vm3304_vm0, %v6557_v14, 0.0 }
 0x3c2   :  { %v6561_v21 = vpop.eup %5551  ;;  %v3363_v15 = vsub.f32 %v6479_v37, %v3337_v36  ;;  %3420 = vadd.xlane.f32.xlu0 %v3419_v30 }
 0x3c3   :  { %v3340_v51 = vpop.xlane.xlu1 %3339  ;;  %v3422_v45 = vsel %vm3304_vm0, %v6561_v21, 0.0 }
 0x3c4   :  { %v3389_v20 = vmul.f32 1.442695, %v3363_v15  ;;  %v3364_v61 = vsub.f32 %v6485_v25, %v3340_v51  ;;  %3423 = vadd.xlane.f32.xlu1 %v3422_v45 }
 0x3c6   :  { %5557 = vpow2.f32 %v3389_v20  ;;  %v3391_v53 = vmul.f32 1.442695, %v3364_v61  ;;  %v5709_v20 = vmov 3   ;;  %v5710_v61 = vmov 2  }
 0x3c8   :  { %v6569_v0 = vpop.eup %5553  ;;  %5559 = vpow2.f32 %v3391_v53 }
 0x3c9   :  { %v3343_v37 = vpop.xlane.xlu0 %3342  ;;  %v3425_v62 = vsel %vm3304_vm0, %v6569_v0, 0.0 }
 0x3ca   :  { %v6573_v55 = vpop.eup %5555  ;;  %v3365_v2 = vsub.f32 %v6495_v5, %v3343_v37  ;;  %3426 = vadd.xlane.f32.xlu0 %v3425_v62 }
 0x3cb   :  { %v3346_v57 = vpop.xlane.xlu1 %3345  ;;  %v3428_v50 = vsel %vm3304_vm0, %v6573_v55, 0.0 }
 0x3cc   :  { %v3393_v25 = vmul.f32 1.442695, %v3365_v2  ;;  %v3366_v42 = vsub.f32 %v6501_v35, %v3346_v57  ;;  %3429 = vadd.xlane.f32.xlu1 %v3428_v50 }
 0x3ce   :  { %5561 = vpow2.f32 %v3393_v25  ;;  %v3395_v46 = vmul.f32 1.442695, %v3366_v42 }
 0x3d0   :  { %v6579_v44 = vpop.eup %5557  ;;  %5563 = vpow2.f32 %v3395_v46 }
 0x3d1   :  { %v3349_v10 = vpop.xlane.xlu0 %3348  ;;  %v3431_v16 = vsel %vm3304_vm0, %v6579_v44, 0.0 }
 0x3d2   :  { %v6583_v19 = vpop.eup %5559  ;;  %v3367_v5 = vsub.f32 %v6511_v28, %v3349_v10  ;;  %3432 = vadd.xlane.f32.xlu0 %v3431_v16 }
 0x3d3   :  { %v3352_v40 = vpop.xlane.xlu1 %3351  ;;  %v3434_v60 = vsel %vm3304_vm0, %v6583_v19, 0.0 }
 0x3d4   :  { %v3397_v35 = vmul.f32 1.442695, %v3367_v5  ;;  %v3368_v4 = vsub.f32 %v6517_v9, %v3352_v40  ;;  %3435 = vadd.xlane.f32.xlu1 %v3434_v60 }
 0x3d6   :  { %5565 = vpow2.f32 %v3397_v35  ;;  %v3399_v58 = vmul.f32 1.442695, %v3368_v4 }
 0x3d8   :  { %v6589_v7 = vpop.eup %5561  ;;  %5567 = vpow2.f32 %v3399_v58 }
 0x3d9   :  { %v3437_v13 = vsel %vm3304_vm0, %v6589_v7, 0.0 }
 0x3da   :  { %v6593_v1 = vpop.eup %5563  ;;  %3438 = vadd.xlane.f32.xlu0 %v3437_v13 }
 0x3db   :  { %v3440_v28 = vsel %vm3304_vm0, %v6593_v1, 0.0 }
 0x3dc   :  { %3441 = vadd.xlane.f32.xlu1 %v3440_v28 }
 0x3e0   :  { %v6597_v8 = vpop.eup %5565 }
 0x3e1   :  { %v3443_v9 = vsel %vm3304_vm0, %v6597_v8, 0.0 }
 0x3e2   :  { %v6601_v26 = vpop.eup %5567  ;;  %3444 = vadd.xlane.f32.xlu0 %v3443_v9 }
 0x3e3   :  { %v3446_v27 = vsel %vm3304_vm0, %v6601_v26, 0.0 }
 0x3e4   :  { %3447 = vadd.xlane.f32.xlu1 %v3446_v27 }
 0x434   :  { %v3403_v12 = vpop.xlane.xlu0 %3402 }
 0x435   :  { %5569 = vrcp.f32 %v3403_v12 }
 0x438   :  { %v3406_v36 = vpop.xlane.xlu1 %3405 }
 0x439   :  { %5571 = vrcp.f32 %v3406_v36 }
 0x43c   :  { %v3409_v51 = vpop.xlane.xlu0 %3408 }
 0x43d   :  { %5573 = vrcp.f32 %v3409_v51 }
 0x43f   :  { %v5570_v30 = vpop.eup %5569 }
 0x440   :  { %v3450_v15 = vmul.f32 %v5570_v30, %v6527_v17  ;;  %v3412_v45 = vpop.xlane.xlu1 %3411 }
 0x441   :  { %5575 = vrcp.f32 %v3412_v45 }
 0x442   :  { %3578 = vperm.xlu1 %4762, %v3450_v15   ;;  %3483 = vperm.xlu0 %4761, %v3450_v15  }
 0x443   :  { %v5572_v53 = vpop.eup %5571 }
 0x444   :  { %v3452_v62 = vmul.f32 %v5572_v53, %v6532_v38 }
 0x445   :  { %v3415_v37 = vpop.xlane.xlu0 %3414 }
 0x446   :  { %4764 = vset.pattern.permute.xlu1 %v5709_v20  ;;  %4763 = vset.pattern.permute.xlu0 %v5710_v61  ;;  %5577 = vrcp.f32 %v3415_v37 }
 0x447   :  { %3738 = vperm.xlu1 %4764, %v3450_v15   ;;  %3658 = vperm.xlu0 %4763, %v3450_v15   ;;  %v5574_v17 = vpop.eup %5573  ;;  %v3418_v57 = vpop.xlane.xlu1 %3417 }
 0x448   :  { %v3454_v38 = vmul.f32 %v5574_v17, %v6537_v31  ;;  %5579 = vrcp.f32 %v3418_v57 }
 0x44b   :  { %4765 = vset.pattern.permute.xlu1 %v5708_v52  ;;  %4766 = vset.pattern.permute.xlu0 %v5707_v43  ;;  %v5576_v2 = vpop.eup %5575 }
 0x44c   :  { %3488 = vperm.xlu1 %4765, %v3452_v62   ;;  %3582 = vperm.xlu0 %4766, %v3452_v62   ;;  %v3456_v50 = vmul.f32 %v5576_v2, %v6541_v47 }
 0x44f   :  { %v3421_v42 = vpop.xlane.xlu0 %3420 }
 0x450   :  { %4767 = vset.pattern.permute.xlu1 %v5710_v61  ;;  %4768 = vset.pattern.permute.xlu0 %v5709_v20  ;;  %v5578_v25 = vpop.eup %5577  ;;  %5581 = vrcp.f32 %v3421_v42  ;;  %v4589_v42 = vadd.f32 %v6401_v11, %v6428_v39 }
 0x451   :  { %3662 = vperm.xlu1 %4767, %v3452_v62   ;;  %3742 = vperm.xlu0 %4768, %v3452_v62   ;;  %v3458_v46 = vmul.f32 %v5578_v25, %v6547_v29  ;;  %v3424_v47 = vpop.xlane.xlu1 %3423 }
 0x452   :  { %v5580_v31 = vpop.eup %5579  ;;  %5583 = vrcp.f32 %v3424_v47 }
 0x453   :  { %v3460_v10 = vmul.f32 %v5580_v31, %v6551_v18 }
 0x455   :  { %4769 = vset.pattern.permute.xlu1 %v5708_v52  ;;  %4775 = vset.pattern.permute.xlu0 %v5710_v61 }
 0x456   :  { %3670 = vperm.xlu0 %4775, %v3456_v50   ;;  %3493 = vperm.xlu1 %4769, %v3454_v38  }
 0x457   :  { %v3427_v16 = vpop.xlane.xlu0 %3426 }
 0x458   :  { %5585 = vrcp.f32 %v3427_v16 }
 0x459   :  { %v3430_v40 = vpop.xlane.xlu1 %3429 }
 0x45a   :  { %4778 = vset.pattern.permute.xlu0 %v5707_v43  ;;  %4770 = vset.pattern.permute.xlu1 %v5707_v43  ;;  %v5582_v29 = vpop.eup %5581  ;;  %5587 = vrcp.f32 %v3430_v40 }
 0x45b   :  { %3586 = vperm.xlu1 %4770, %v3454_v38   ;;  %3594 = vperm.xlu0 %4778, %v3458_v46   ;;  %v3462_v5 = vmul.f32 %v5582_v29, %v6557_v14 }
 0x45c   :  { %v5584_v18 = vpop.eup %5583 }
 0x45d   :  { %v6631_v60 = vmul.f32 %v5584_v18, %v6561_v21 }
 0x45f   :  { %4771 = vset.pattern.permute.xlu1 %v5710_v61  ;;  %4780 = vset.pattern.permute.xlu0 %v5709_v20  ;;  %v3433_v21 = vpop.xlane.xlu0 %3432 }
 0x460   :  { %3666 = vperm.xlu1 %4771, %v3454_v38   ;;  %3754 = vperm.xlu0 %4780, %v3458_v46   ;;  %5589 = vrcp.f32 %v3433_v21 }
 0x461   :  { %v3436_v58 = vpop.xlane.xlu1 %3435 }
 0x462   :  { %v5586_v14 = vpop.eup %5585  ;;  %5591 = vrcp.f32 %v3436_v58 }
 0x463   :  { %v6637_v35 = vmul.f32 %v5586_v14, %v6569_v0  ;;  %v4591_v14 = vadd.f32 %v6408_v49, %v6428_v39 }
 0x464   :  { %4772 = vset.pattern.permute.xlu1 %v5709_v20  ;;  %4783 = vset.pattern.permute.xlu0 %v5710_v61  ;;  %v5588_v4 = vpop.eup %5587 }
 0x465   :  { %3746 = vperm.xlu1 %4772, %v3454_v38   ;;  %3678 = vperm.xlu0 %4783, %v3460_v10   ;;  %v6646_v0 = vmul.f32 %v5588_v4, %v6573_v55 }
 0x467   :  { %v3439_v28 = vpop.xlane.xlu0 %3438 }
 0x468   :  { %5593 = vrcp.f32 %v3439_v28 }
 0x469   :  { %4773 = vset.pattern.permute.xlu1 %v5708_v52  ;;  %4786 = vset.pattern.permute.xlu0 %v5707_v43  ;;  %v3442_v27 = vpop.xlane.xlu1 %3441 }
 0x46a   :  { %3498 = vperm.xlu1 %4773, %v3456_v50   ;;  %3602 = vperm.xlu0 %4786, %v3462_v5   ;;  %v5590_v13 = vpop.eup %5589  ;;  %5595 = vrcp.f32 %v3442_v27 }
 0x46b   :  { %v6655_v55 = vmul.f32 %v5590_v13, %v6579_v44 }
 0x46c   :  { %v5592_v9 = vpop.eup %5591 }
 0x46d   :  { %v6664_v44 = vmul.f32 %v5592_v9, %v6583_v19 }
 0x46e   :  { %4774 = vset.pattern.permute.xlu1 %v5707_v43  ;;  %4788 = vset.pattern.permute.xlu0 %v5709_v20 }
 0x46f   :  { %3590 = vperm.xlu1 %4774, %v3456_v50   ;;  %3762 = vperm.xlu0 %4788, %v3462_v5   ;;  %v3445_v36 = vpop.xlane.xlu0 %3444 }
 0x470   :  { %5597 = vrcp.f32 %v3445_v36 }
 0x472   :  { %v5594_v12 = vpop.eup %5593 }
 0x473   :  { %4776 = vset.pattern.permute.xlu1 %v5709_v20  ;;  %4791 = vset.pattern.permute.xlu0 %v5710_v61  ;;  %v6674_v19 = vmul.f32 %v5594_v12, %v6589_v7  ;;  %v3448_v7 = vpop.xlane.xlu1 %3447  ;;  %v4593_v12 = vadd.f32 %v6415_v34, %v6428_v39  ;;  %v4595_v34 = vadd.f32 %v6424_v54, %v6428_v39 }
 0x474   :  { %3750 = vperm.xlu1 %4776, %v3456_v50   ;;  %3686 = vperm.xlu0 %4791, %v6631_v60   ;;  %v5596_v30 = vpop.eup %5595  ;;  %5599 = vrcp.f32 %v3448_v7 }
 0x475   :  { %v6685_v15 = vmul.f32 %v5596_v30, %v6593_v1 }
 0x478   :  { %4777 = vset.pattern.permute.xlu1 %v5708_v52  ;;  %4794 = vset.pattern.permute.xlu0 %v5707_v43 }
 0x479   :  { %3503 = vperm.xlu1 %4777, %v3458_v46   ;;  %3610 = vperm.xlu0 %4794, %v6637_v35  }
 0x47a   :  { %v5598_v51 = vpop.eup %5597 }
 0x47b   :  { %v6696_v1 = vmul.f32 %v5598_v51, %v6597_v8  ;;  %v4587_v8 = vadd.f32 %v6396_v33, %v6428_v39 }
 0x47d   :  { %4779 = vset.pattern.permute.xlu1 %v5710_v61  ;;  %4796 = vset.pattern.permute.xlu0 %v5709_v20 }
 0x47e   :  { %3674 = vperm.xlu1 %4779, %v3458_v46   ;;  %3770 = vperm.xlu0 %4796, %v6637_v35   ;;  %v5600_v45 = vpop.eup %5599 }
 0x47f   :  { %v6703_v53 = vmul.f32 %v5600_v45, %v6601_v26 }
 0x482   :  { %4781 = vset.pattern.permute.xlu1 %v5708_v52  ;;  %4797 = vset.pattern.permute.xlu0 %v5708_v52 }
 0x483   :  { %3508 = vperm.xlu1 %4781, %v3460_v10   ;;  %3528 = vperm.xlu0 %4797, %v6646_v0  }
 0x487   :  { %4782 = vset.pattern.permute.xlu1 %v5707_v43  ;;  %4799 = vset.pattern.permute.xlu0 %v5710_v61 }
 0x488   :  { %3598 = vperm.xlu1 %4782, %v3460_v10   ;;  %3694 = vperm.xlu0 %4799, %v6646_v0  }
 0x48c   :  { %4784 = vset.pattern.permute.xlu1 %v5709_v20  ;;  %4802 = vset.pattern.permute.xlu0 %v5707_v43 }
 0x48d   :  { %3758 = vperm.xlu1 %4784, %v3460_v10   ;;  %3618 = vperm.xlu0 %4802, %v6655_v55  }
 0x491   :  { %4785 = vset.pattern.permute.xlu1 %v5708_v52  ;;  %4804 = vset.pattern.permute.xlu0 %v5709_v20 }
 0x492   :  { %3513 = vperm.xlu1 %4785, %v3462_v5   ;;  %3778 = vperm.xlu0 %4804, %v6655_v55  }
 0x496   :  { %4787 = vset.pattern.permute.xlu1 %v5710_v61  ;;  %4805 = vset.pattern.permute.xlu0 %v5708_v52 }
 0x497   :  { %3682 = vperm.xlu1 %4787, %v3462_v5   ;;  %3538 = vperm.xlu0 %4805, %v6664_v44  }
 0x49b   :  { %4789 = vset.pattern.permute.xlu1 %v5708_v52  ;;  %4807 = vset.pattern.permute.xlu0 %v5710_v61 }
 0x49c   :  { %3518 = vperm.xlu1 %4789, %v6631_v60   ;;  %3702 = vperm.xlu0 %4807, %v6664_v44  }
 0x4a0   :  { %4790 = vset.pattern.permute.xlu1 %v5707_v43  ;;  %4810 = vset.pattern.permute.xlu0 %v5707_v43 }
 0x4a1   :  { %3606 = vperm.xlu1 %4790, %v6631_v60   ;;  %3626 = vperm.xlu0 %4810, %v6674_v19  }
 0x4a5   :  { %4792 = vset.pattern.permute.xlu1 %v5709_v20  ;;  %4812 = vset.pattern.permute.xlu0 %v5709_v20 }
 0x4a6   :  { %3766 = vperm.xlu1 %4792, %v6631_v60   ;;  %3786 = vperm.xlu0 %4812, %v6674_v19  }
 0x4aa   :  { %4793 = vset.pattern.permute.xlu1 %v5708_v52  ;;  %4813 = vset.pattern.permute.xlu0 %v5708_v52 }
 0x4ab   :  { %3523 = vperm.xlu1 %4793, %v6637_v35   ;;  %3548 = vperm.xlu0 %4813, %v6685_v15  }
 0x4af   :  { %4795 = vset.pattern.permute.xlu1 %v5710_v61  ;;  %4815 = vset.pattern.permute.xlu0 %v5710_v61 }
 0x4b0   :  { %3690 = vperm.xlu1 %4795, %v6637_v35   ;;  %3710 = vperm.xlu0 %4815, %v6685_v15  }
 0x4b4   :  { %4798 = vset.pattern.permute.xlu1 %v5707_v43  ;;  %4818 = vset.pattern.permute.xlu0 %v5707_v43 }
 0x4b5   :  { %3614 = vperm.xlu1 %4798, %v6646_v0   ;;  %3634 = vperm.xlu0 %4818, %v6696_v1  }
 0x4b9   :  { %4800 = vset.pattern.permute.xlu1 %v5709_v20  ;;  %4820 = vset.pattern.permute.xlu0 %v5708_v52 }
 0x4ba   :  { %3774 = vperm.xlu1 %4800, %v6646_v0   ;;  %3558 = vperm.xlu0 %4820, %v6703_v53  }
 0x4be   :  { %4801 = vset.pattern.permute.xlu1 %v5708_v52  ;;  %4822 = vset.pattern.permute.xlu0 %v5710_v61 }
 0x4bf   :  { %3533 = vperm.xlu1 %4801, %v6655_v55   ;;  %3718 = vperm.xlu0 %4822, %v6703_v53  }
 0x4c1   :  { %v3579_v26 = vpop.permute.xlu1 %3578  ;;  %v3484_v37 = vpop.permute.xlu0 %3483 }
 0x4c2   :  { %v3641_v62 = vmul.f32 %v4587_v8, %v3579_v26  ;;  %v3561_v17 = vmul.f32 %v4587_v8, %v3484_v37 }
 0x4c3   :  { %4803 = vset.pattern.permute.xlu1 %v5710_v61  ;;  %4823 = vset.pattern.permute.xlu0 %v5709_v20 }
 0x4c4   :  { %v4459_v2 = vpack.c.bf16 %v3641_v62, %v3561_v17  ;;  %3698 = vperm.xlu1 %4803, %v6655_v55   ;;  %3794 = vperm.xlu0 %4823, %v6696_v1  }
 0x4c6   :  { %4009 = vst [vmem:[#allocation8] sm:$0xff] %v4459_v2  ;;  %v3739_v57 = vpop.permute.xlu1 %3738  ;;  %v3659_v50 = vpop.permute.xlu0 %3658 }
 0x4c7   :  { %v3801_v38 = vmul.f32 %v4587_v8, %v3739_v57  ;;  %v3721_v25 = vmul.f32 %v4587_v8, %v3659_v50 }
 0x4c8   :  { %4806 = vset.pattern.permute.xlu1 %v5707_v43 }
 0x4c9   :  { %v4460_v33 = vpack.c.bf16 %v3801_v38, %v3721_v25  ;;  %3622 = vperm.xlu1 %4806, %v6664_v44  }
 0x4cb   :  { %4010 = vst [vmem:[#allocation8 + $0x8] sm:$0xff] %v4460_v33  ;;  %v3489_v46 = vpop.permute.xlu1 %3488  ;;  %v3583_v31 = vpop.permute.xlu0 %3582 }
 0x4cc   :  { %v3562_v47 = vmul.f32 %v4589_v42, %v3489_v46  ;;  %v3642_v10 = vmul.f32 %v4589_v42, %v3583_v31 }
 0x4cd   :  { %4808 = vset.pattern.permute.xlu1 %v5709_v20 }
 0x4ce   :  { %v4461_v29 = vpack.c.bf16 %v3642_v10, %v3562_v47  ;;  %3782 = vperm.xlu1 %4808, %v6664_v44  }
 0x4d0   :  { %4011 = vst [vmem:[#allocation8 + $0x10] sm:$0xff] %v4461_v29  ;;  %v3663_v16 = vpop.permute.xlu1 %3662  ;;  %v3743_v5 = vpop.permute.xlu0 %3742 }
 0x4d1   :  { %v3722_v18 = vmul.f32 %v4589_v42, %v3663_v16  ;;  %v3802_v40 = vmul.f32 %v4589_v42, %v3743_v5 }
 0x4d2   :  { %4809 = vset.pattern.permute.xlu1 %v5708_v52 }
 0x4d3   :  { %v4462_v60 = vpack.c.bf16 %v3802_v40, %v3722_v18  ;;  %3543 = vperm.xlu1 %4809, %v6674_v19  }
 0x4d5   :  { %4012 = vst [vmem:[#allocation8 + $0x18] sm:$0xff] %v4462_v60  ;;  %v3494_v11 = vpop.permute.xlu1 %3493  ;;  %v3671_v55 = vpop.permute.xlu0 %3670 }
 0x4d6   :  { %v3563_v21 = vmul.f32 %v4591_v14, %v3494_v11  ;;  %v3724_v51 = vmul.f32 %v4593_v12, %v3671_v55 }
 0x4d7   :  { %4811 = vset.pattern.permute.xlu1 %v5710_v61 }
 0x4d8   :  { %3706 = vperm.xlu1 %4811, %v6674_v19  }
 0x4da   :  { %v3587_v35 = vpop.permute.xlu1 %3586  ;;  %v3595_v27 = vpop.permute.xlu0 %3594 }
 0x4db   :  { %v3643_v4 = vmul.f32 %v4591_v14, %v3587_v35 }
 0x4dc   :  { %4814 = vset.pattern.permute.xlu1 %v5707_v43 }
 0x4dd   :  { %v4463_v0 = vpack.c.bf16 %v3643_v4, %v3563_v21  ;;  %3630 = vperm.xlu1 %4814, %v6685_v15  }
 0x4df   :  { %4013 = vst [vmem:[#allocation8 + $0x20] sm:$0xff] %v4463_v0  ;;  %v3667_v58 = vpop.permute.xlu1 %3666  ;;  %v3755_v7 = vpop.permute.xlu0 %3754 }
 0x4e0   :  { %v3723_v28 = vmul.f32 %v4591_v14, %v3667_v58  ;;  %v3805_v2 = vmul.f32 %v4595_v34, %v3755_v7 }
 0x4e1   :  { %4816 = vset.pattern.permute.xlu1 %v5709_v20 }
 0x4e2   :  { %3790 = vperm.xlu1 %4816, %v6685_v15  }
 0x4e4   :  { %v3747_v13 = vpop.permute.xlu1 %3746 }
 0x4e5   :  { %v3803_v9 = vmul.f32 %v4591_v14, %v3747_v13 }
 0x4e6   :  { %4817 = vset.pattern.permute.xlu1 %v5708_v52 }
 0x4e7   :  { %v4464_v49 = vpack.c.bf16 %v3803_v9, %v3723_v28  ;;  %3553 = vperm.xlu1 %4817, %v6696_v1  }
 0x4e9   :  { %4014 = vst [vmem:[#allocation8 + $0x28] sm:$0xff] %v4464_v49  ;;  %v3499_v44 = vpop.permute.xlu1 %3498 }
 0x4ea   :  { %v3564_v36 = vmul.f32 %v4593_v12, %v3499_v44 }
 0x4eb   :  { %4819 = vset.pattern.permute.xlu1 %v5710_v61 }
 0x4ec   :  { %3714 = vperm.xlu1 %4819, %v6696_v1   ;;  %v3679_v1 = vpop.permute.xlu0 %3678 }
 0x4ed   :  { %v3726_v46 = vmul.f32 %v6434_v23, %v3679_v1 }
 0x4ee   :  { %v3591_v19 = vpop.permute.xlu1 %3590 }
 0x4ef   :  { %v3644_v30 = vmul.f32 %v4593_v12, %v3591_v19 }
 0x4f0   :  { %4821 = vset.pattern.permute.xlu1 %v5707_v43  ;;  %v3645_v43 = vmul.f32 %v4595_v34, %v3595_v27  ;;  %v3603_v62 = vpop.permute.xlu0 %3602 }
 0x4f1   :  { %v4465_v52 = vpack.c.bf16 %v3644_v30, %v3564_v36  ;;  %3638 = vperm.xlu1 %4821, %v6703_v53   ;;  %v3647_v16 = vmul.f32 %v6444_v59, %v3603_v62 }
 0x4f3   :  { %4015 = vst [vmem:[#allocation8 + $0x30] sm:$0xff] %v4465_v52  ;;  %v3751_v15 = vpop.permute.xlu1 %3750 }
 0x4f4   :  { %v3804_v45 = vmul.f32 %v4593_v12, %v3751_v15  ;;  %v3763_v38 = vpop.permute.xlu0 %3762 }
 0x4f5   :  { %4824 = vset.pattern.permute.xlu1 %v5709_v20  ;;  %v3807_v11 = vmul.f32 %v6444_v59, %v3763_v38 }
 0x4f6   :  { %v4466_v61 = vpack.c.bf16 %v3804_v45, %v3724_v51  ;;  %3798 = vperm.xlu1 %4824, %v6703_v53  }
 0x4f8   :  { %4016 = vst [vmem:[#allocation8 + $0x38] sm:$0xff] %v4466_v61  ;;  %v3504_v8 = vpop.permute.xlu1 %3503  ;;  %v3687_v39 = vpop.permute.xlu0 %3686 }
 0x4f9   :  { %v3565_v26 = vmul.f32 %v4595_v34, %v3504_v8  ;;  %v3728_v9 = vmul.f32 %v6450_v6, %v3687_v39 }
 0x4fb   :  { %v4467_v37 = vpack.c.bf16 %v3645_v43, %v3565_v26 }
 0x4fc   :  { %v3611_v47 = vpop.permute.xlu0 %3610 }
 0x4fd   :  { %4017 = vst [vmem:[#allocation8 + $0x40] sm:$0xff] %v4467_v37  ;;  %v3675_v17 = vpop.permute.xlu1 %3674  ;;  %v3649_v12 = vmul.f32 %v6460_v48, %v3611_v47 }
 0x4fe   :  { %v3725_v57 = vmul.f32 %v4595_v34, %v3675_v17 }
 0x500   :  { %v4468_v50 = vpack.c.bf16 %v3805_v2, %v3725_v57  ;;  %v3771_v40 = vpop.permute.xlu0 %3770 }
 0x501   :  { %v3809_v52 = vmul.f32 %v6460_v48, %v3771_v40 }
 0x502   :  { %4018 = vst [vmem:[#allocation8 + $0x48] sm:$0xff] %v4468_v50  ;;  %v3509_v20 = vpop.permute.xlu1 %3508 }
 0x503   :  { %v3566_v53 = vmul.f32 %v6434_v23, %v3509_v20 }
 0x504   :  { %v3529_v21 = vpop.permute.xlu0 %3528 }
 0x505   :  { %v3570_v61 = vmul.f32 %v6466_v41, %v3529_v21 }
 0x507   :  { %v3599_v25 = vpop.permute.xlu1 %3598 }
 0x508   :  { %v3646_v54 = vmul.f32 %v6434_v23, %v3599_v25  ;;  %v3695_v0 = vpop.permute.xlu0 %3694 }
 0x509   :  { %v3730_v26 = vmul.f32 %v6466_v41, %v3695_v0 }
 0x50a   :  { %v4469_v33 = vpack.c.bf16 %v3646_v54, %v3566_v53 }
 0x50c   :  { %4019 = vst [vmem:[#allocation8 + $0x50] sm:$0xff] %v4469_v33  ;;  %v3759_v42 = vpop.permute.xlu1 %3758  ;;  %v3619_v44 = vpop.permute.xlu0 %3618 }
 0x50d   :  { %v3806_v31 = vmul.f32 %v6434_v23, %v3759_v42 }
 0x50f   :  { %v4470_v10 = vpack.c.bf16 %v3806_v31, %v3726_v46 }
 0x511   :  { %4020 = vst [vmem:[#allocation8 + $0x58] sm:$0xff] %v4470_v10  ;;  %v3514_v29 = vpop.permute.xlu1 %3513  ;;  %v3779_v36 = vpop.permute.xlu0 %3778 }
 0x512   :  { %v3567_v5 = vmul.f32 %v6444_v59, %v3514_v29  ;;  %v3811_v38 = vmul.f32 %v6476_v32, %v3779_v36 }
 0x514   :  { %v4471_v18 = vpack.c.bf16 %v3647_v16, %v3567_v5 }
 0x516   :  { %4021 = vst [vmem:[#allocation8 + $0x60] sm:$0xff] %v4471_v18  ;;  %v3683_v60 = vpop.permute.xlu1 %3682  ;;  %v3539_v45 = vpop.permute.xlu0 %3538 }
 0x517   :  { %v3727_v14 = vmul.f32 %v6444_v59, %v3683_v60 }
 0x519   :  { %v4472_v35 = vpack.c.bf16 %v3807_v11, %v3727_v14 }
 0x51b   :  { %4022 = vst [vmem:[#allocation8 + $0x68] sm:$0xff] %v4472_v35  ;;  %v3519_v23 = vpop.permute.xlu1 %3518  ;;  %v3703_v8 = vpop.permute.xlu0 %3702 }
 0x51c   :  { %v3568_v58 = vmul.f32 %v6450_v6, %v3519_v23  ;;  %v3732_v47 = vmul.f32 %v6482_v63, %v3703_v8 }
 0x520   :  { %v3607_v4 = vpop.permute.xlu1 %3606  ;;  %v3627_v2 = vpop.permute.xlu0 %3626 }
 0x521   :  { %v3648_v13 = vmul.f32 %v6450_v6, %v3607_v4  ;;  %v3653_v5 = vmul.f32 %v6492_v3, %v3627_v2 }
 0x523   :  { %v4473_v55 = vpack.c.bf16 %v3648_v13, %v3568_v58 }
 0x525   :  { %4023 = vst [vmem:[#allocation8 + $0x70] sm:$0xff] %v4473_v55  ;;  %v3767_v28 = vpop.permute.xlu1 %3766  ;;  %v3787_v53 = vpop.permute.xlu0 %3786 }
 0x526   :  { %v3808_v49 = vmul.f32 %v6450_v6, %v3767_v28  ;;  %v3813_v14 = vmul.f32 %v6492_v3, %v3787_v53 }
 0x528   :  { %v4474_v27 = vpack.c.bf16 %v3808_v49, %v3728_v9 }
 0x52a   :  { %4024 = vst [vmem:[#allocation8 + $0x78] sm:$0xff] %v4474_v27  ;;  %v3524_v59 = vpop.permute.xlu1 %3523  ;;  %v3549_v42 = vpop.permute.xlu0 %3548 }
 0x52b   :  { %v3569_v19 = vmul.f32 %v6460_v48, %v3524_v59 }
 0x52d   :  { %v4475_v30 = vpack.c.bf16 %v3649_v12, %v3569_v19 }
 0x52f   :  { %4025 = vst [vmem:[#allocation8 + $0x80] sm:$0xff] %v4475_v30  ;;  %v3691_v7 = vpop.permute.xlu1 %3690  ;;  %v3711_v16 = vpop.permute.xlu0 %3710 }
 0x530   :  { %v3729_v15 = vmul.f32 %v6460_v48, %v3691_v7  ;;  %v3651_v48 = vmul.f32 %v6476_v32, %v3619_v44  ;;  %v3734_v55 = vmul.f32 %v6498_v56, %v3711_v16 }
 0x532   :  { %v4476_v51 = vpack.c.bf16 %v3809_v52, %v3729_v15 }
 0x534   :  { %4026 = vst [vmem:[#allocation8 + $0x88] sm:$0xff] %v4476_v51  ;;  %v3615_v6 = vpop.permute.xlu1 %3614  ;;  %v3635_v60 = vpop.permute.xlu0 %3634 }
 0x535   :  { %v3650_v34 = vmul.f32 %v6466_v41, %v3615_v6 }
 0x537   :  { %v4477_v1 = vpack.c.bf16 %v3650_v34, %v3570_v61 }
 0x539   :  { %4027 = vst [vmem:[#allocation8 + $0x90] sm:$0xff] %v4477_v1  ;;  %v3775_v43 = vpop.permute.xlu1 %3774  ;;  %v3559_v4 = vpop.permute.xlu0 %3558 }
 0x53a   :  { %v3810_v37 = vmul.f32 %v6466_v41, %v3775_v43  ;;  %v3572_v41 = vmul.f32 %v6482_v63, %v3539_v45 }
 0x53c   :  { %v4478_v62 = vpack.c.bf16 %v3810_v37, %v3730_v26 }
 0x53e   :  { %4028 = vst [vmem:[#allocation8 + $0x98] sm:$0xff] %v4478_v62  ;;  %v3534_v17 = vpop.permute.xlu1 %3533  ;;  %v3719_v9 = vpop.permute.xlu0 %3718 }
 0x53f   :  { %v3571_v57 = vmul.f32 %v6476_v32, %v3534_v17  ;;  %v3736_v6 = vmul.f32 %v6514_v24, %v3719_v9 }
 0x541   :  { %v4479_v50 = vpack.c.bf16 %v3651_v48, %v3571_v57 }
 0x543   :  { %4029 = vst [vmem:[#allocation8 + $0xa0] sm:$0xff] %v4479_v50  ;;  %v3699_v20 = vpop.permute.xlu1 %3698  ;;  %v3795_v59 = vpop.permute.xlu0 %3794 }
 0x544   :  { %v3731_v25 = vmul.f32 %v6476_v32, %v3699_v20  ;;  %v3815_v36 = vmul.f32 %v6508_v22, %v3795_v59 }
 0x546   :  { %v4480_v54 = vpack.c.bf16 %v3811_v38, %v3731_v25 }
 0x548   :  { %4030 = vst [vmem:[#allocation8 + $0xa8] sm:$0xff] %v4480_v54  ;;  %v3623_v39 = vpop.permute.xlu1 %3622 }
 0x549   :  { %v3652_v33 = vmul.f32 %v6482_v63, %v3623_v39 }
 0x54b   :  { %v4481_v46 = vpack.c.bf16 %v3652_v33, %v3572_v41 }
 0x54d   :  { %4031 = vst [vmem:[#allocation8 + $0xb0] sm:$0xff] %v4481_v46  ;;  %v3783_v31 = vpop.permute.xlu1 %3782 }
 0x54e   :  { %v3812_v10 = vmul.f32 %v6482_v63, %v3783_v31  ;;  %v3574_v63 = vmul.f32 %v6498_v56, %v3549_v42 }
 0x550   :  { %v4482_v29 = vpack.c.bf16 %v3812_v10, %v3732_v47 }
 0x552   :  { %4032 = vst [vmem:[#allocation8 + $0xb8] sm:$0xff] %v4482_v29  ;;  %v3544_v32 = vpop.permute.xlu1 %3543 }
 0x553   :  { %v3573_v18 = vmul.f32 %v6492_v3, %v3544_v32 }
 0x555   :  { %v4483_v40 = vpack.c.bf16 %v3653_v5, %v3573_v18 }
 0x557   :  { %4033 = vst [vmem:[#allocation8 + $0xc0] sm:$0xff] %v4483_v40  ;;  %v3707_v11 = vpop.permute.xlu1 %3706 }
 0x558   :  { %v3733_v35 = vmul.f32 %v6492_v3, %v3707_v11  ;;  %v3655_v3 = vmul.f32 %v6508_v22, %v3635_v60 }
 0x55a   :  { %v4484_v21 = vpack.c.bf16 %v3813_v14, %v3733_v35 }
 0x55c   :  { %4034 = vst [vmem:[#allocation8 + $0xc8] sm:$0xff] %v4484_v21  ;;  %v3631_v23 = vpop.permute.xlu1 %3630 }
 0x55d   :  { %v3654_v0 = vmul.f32 %v6498_v56, %v3631_v23 }
 0x55f   :  { %v4485_v58 = vpack.c.bf16 %v3654_v0, %v3574_v63 }
 0x561   :  { %4035 = vst [vmem:[#allocation8 + $0xd0] sm:$0xff] %v4485_v58  ;;  %v3791_v13 = vpop.permute.xlu1 %3790 }
 0x562   :  { %v3814_v28 = vmul.f32 %v6498_v56, %v3791_v13  ;;  %v3576_v56 = vmul.f32 %v6514_v24, %v3559_v4 }
 0x564   :  { %v4486_v49 = vpack.c.bf16 %v3814_v28, %v3734_v55 }
 0x566   :  { %4036 = vst [vmem:[#allocation8 + $0xd8] sm:$0xff] %v4486_v49  ;;  %v3554_v44 = vpop.permute.xlu1 %3553 }
 0x567   :  { %v3575_v27 = vmul.f32 %v6508_v22, %v3554_v44 }
 0x569   :  { %v4487_v12 = vpack.c.bf16 %v3655_v3, %v3575_v27 }
 0x56b   :  { %4037 = vst [vmem:[#allocation8 + $0xe0] sm:$0xff] %v4487_v12  ;;  %v3715_v19 = vpop.permute.xlu1 %3714 }
 0x56c   :  { %v3735_v30 = vmul.f32 %v6508_v22, %v3715_v19 }
 0x56e   :  { %v4488_v7 = vpack.c.bf16 %v3815_v36, %v3735_v30 }
 0x570   :  { %4038 = vst [vmem:[#allocation8 + $0xe8] sm:$0xff] %v4488_v7  ;;  %v3639_v52 = vpop.permute.xlu1 %3638 }
 0x571   :  { %v3656_v15 = vmul.f32 %v6514_v24, %v3639_v52 }
 0x573   :  { %v4489_v51 = vpack.c.bf16 %v3656_v15, %v3576_v56 }
 0x575   :  { %4039 = vst [vmem:[#allocation8 + $0xf0] sm:$0xff] %v4489_v51  ;;  %v3799_v45 = vpop.permute.xlu1 %3798 }
 0x576   :  { %v3816_v61 = vmul.f32 %v6514_v24, %v3799_v45 }
 0x578   :  { %v4490_v34 = vpack.c.bf16 %v3816_v61, %v3736_v6 }
 0x57a   :  { %4040 = vst [vmem:[#allocation8 + $0xf8] sm:$0xff] %v4490_v34 }
 0x57b   :  { %5681 = shalt.err (!%p5678_p0)
}
 0x57c   :  { %s5682_s16 = scalar_lea.hbm %s6811_s5, 4096 }
 0x57d   :  { %p5683_p1 = scmp.ne.s32.totalorder %s6811_s5, %s5682_s16  ;;  %p5686_p2 = scmp.lt.u32.totalorder %s5682_s16, %s6811_s5 }
 0x57f   :  { %p5688_p3 = pnand %p5686_p2, %p5683_p1 }
 0x581   :  { %5691 = shalt.err (!%p5688_p3)
}
 0x582   :  { %4052 = dma.vmem_to_hbm [thread:$0]  %s4047_s12, 4096, %s6811_s5, [#allocation4], %s5699_s28, %s5699_s28, %s5700_s29  }
 0x583   :  { %5696 = dma.done.wait [#allocation4], 4096  }
 0x584   :  { %5697 = vsyncadd [#allocation4], 4294963200 }
 0x585   :  { %4056 = vsyncpa [#allocation3], 1 }
 0x586   :  { %4057 = vsyncpa [#allocation6], 1 }
 0x587   :  { %4058 = vsyncpa [#allocation4], 1 }

</bundles_post_ra>
